<compile_context>
chip_gen: v6e
topology: v6e:2x2x1
jax: 0.10.0
libtpu: 0.0.40
codegen_flags: <defaults>
</compile_context>

<pallas_src>
import jax
import jax.numpy as jnp
from jax import lax
from jax.experimental import pallas as pl
from jax.experimental.pallas import tpu as pltpu


def _round_up(v, m):
    return ((v + m - 1) // m) * m


def _num_tensorcores():
    """Best-effort TensorCore count (v7x: 2 per chip, v5e/v6e: 1).  Fallback: 1."""
    try:
        info = pltpu.get_tpu_info()
        for name in ("num_cores", "core_count", "num_tensorcores", "tensorcore_count"):
            v = getattr(info, name, None)
            if isinstance(v, int) and 1 <= v <= 8:
                return v
    except Exception:
        pass
    try:
        v = getattr(jax.devices()[0], "num_cores", None)
        if isinstance(v, int) and 1 <= v <= 8:
            return v
    except Exception:
        pass
    return 1


# ----------------------------- Pallas kernels ------------------------------

def _conv_pool_kernel(p_ref, w_ref, b_ref, o_ref):
    """relu(patches @ w + b) fused with 2x2/stride-2 max pool.

    p_ref: (4, TM, K) — leading axis indexes the 4 corners (dh,dw) of each pooling
    window; rows within a corner are the pooled output pixels.  Pooling is therefore
    an elementwise max over 4 contiguous blocks — no strided ops in-kernel.
    """
    w = w_ref[...]
    b = b_ref[...]

    def corner(q):
        return jnp.maximum(
            jnp.dot(p_ref[q], w, preferred_element_type=jnp.float32) + b, 0.0)

    o_ref[...] = jnp.maximum(jnp.maximum(corner(0), corner(1)),
                             jnp.maximum(corner(2), corner(3)))


def _conv2_fc_fused_kernel(p_ref, w2_ref, b2_ref, wf1_ref, bf1_ref,
                           wf2_ref, bf2_ref, wf3_ref, bf3_ref, o_ref):
    """conv2 (as matmul) + relu + 2x2 pool + fc1(relu) + fc2(relu) + fc3, all in VMEM.

    p_ref : (4, 25*B, 150) conv2 patch matrix, rows ordered (spatial s=(i5*5+j5), b).
    wf1   : (25, 16, 120) fc1 weights grouped by spatial position (rows permuted at
            prep time to the pooled-NHWC order, so no activation transpose is needed).
    """
    w2 = w2_ref[...]
    b2 = b2_ref[...]

    def corner(q):
        return jnp.maximum(
            jnp.dot(p_ref[q], w2, preferred_element_type=jnp.float32) + b2, 0.0)

    # pooled conv2 activations: (25*B, 16), rows (s, b)
    h = jnp.maximum(jnp.maximum(corner(0), corner(1)),
                    jnp.maximum(corner(2), corner(3)))

    B = o_ref.shape[0]
    # fc1 as 25 per-spatial-position matmuls -> avoids a lane-crossing reshape of h.
    acc = jnp.zeros((B, wf1_ref.shape[2]), jnp.float32) + bf1_ref[...]
    for s in range(25):
        acc = acc + jnp.dot(h[s * B:(s + 1) * B, :], wf1_ref[s],
                            preferred_element_type=jnp.float32)
    h1 = jnp.maximum(acc, 0.0)                                           # (B, 120)
    h2 = jnp.maximum(
        jnp.dot(h1, wf2_ref[...], preferred_element_type=jnp.float32) + bf2_ref[...],
        0.0)                                                             # (B, 84)
    out = jnp.dot(h2, wf3_ref[...], preferred_element_type=jnp.float32) + bf3_ref[...]
    o_ref[...] = out.astype(o_ref.dtype)                                 # (B, 10)


# ------------------------------ wrappers -----------------------------------

def conv1_relu_pool(x_nhwc, w1, b1):
    """conv1(5x5, VALID) + relu + 2x2 maxpool as ONE Pallas kernel.

    Returns (B*14*14, 6) f32 with rows ordered (b, h, w) — i.e. pooled NHWC, flattened.
    """
    B = x_nhwc.shape[0]
    M = B * 14 * 14                    # pooled output pixels

    # im2col built directly in its final layout (corner-major rows, 75 lanes, no pad,
    # single concat -> no double materialization).
    corners = []
    for dh in range(2):
        for dw in range(2):
            taps = [x_nhwc[:, dh + kh:dh + kh + 28:2, dw + kw:dw + kw + 28:2, :]
                    for kh in range(5) for kw in range(5)]               # (B,14,14,3) each
            corners.append(jnp.concatenate(taps, axis=-1))               # (B,14,14,75)
    patches = jnp.stack(corners, axis=0).reshape(4, M, 75)
    # TODO(synk): for large batches move this gather in-kernel (DMA the NHWC block,
    #             form patches with static slices) to drop the last HBM round trip.

    # Row tiling: one block per TensorCore (only >1 on v7x), capped for VMEM safety.
    nblk = max(_num_tensorcores(), pl.cdiv(M, 2048))
    TM = _round_up(pl.cdiv(M, nblk), 8)
    Mp = TM * nblk
    if Mp != M:
        patches = jnp.concatenate(
            [patches, jnp.zeros((4, Mp - M, 75), patches.dtype)], axis=1)

    out = pl.pallas_call(
        _conv_pool_kernel,
        out_shape=jax.ShapeDtypeStruct((Mp, 6), jnp.float32),
        grid=(nblk,),
        in_specs=[
            pl.BlockSpec((4, TM, 75), lambda i: (0, i, 0)),
            pl.BlockSpec((75, 6), lambda i: (0, 0)),
            pl.BlockSpec((1, 6), lambda i: (0, 0)),
        ],
        out_specs=pl.BlockSpec((TM, 6), lambda i: (i, 0)),
        compiler_params=pltpu.CompilerParams(dimension_semantics=("parallel",)),
    )(patches, w1, b1)
    return out[:M] if Mp != M else out


def conv2_fc_fused(h1_flat, B, w2, b2, wf1, bf1, wf2, bf2, wf3, bf3):
    """conv2 + relu + pool + fc1/fc2/fc3 in ONE pallas_call (grid=(1,), full blocks)."""
    h1 = h1_flat.reshape(B, 14, 14, 6)                                   # pooled NHWC
    corners = []
    for dh in range(2):
        for dw in range(2):
            taps = [h1[:, dh + kh:dh + kh + 10:2, dw + kw:dw + kw + 10:2, :]
                    for kh in range(5) for kw in range(5)]               # (B,5,5,6) each
            corners.append(jnp.concatenate(taps, axis=-1))               # (B,5,5,150)
    p = jnp.stack(corners, axis=0)                                       # (4,B,5,5,150)
    p = jnp.transpose(p, (0, 2, 3, 1, 4)).reshape(4, 25 * B, 150)        # rows (s, b)
    # TODO(synk): grid this kernel over batch tiles if B grows large (VMEM budget).

    operands = (p, w2, b2, wf1, bf1, wf2, bf2, wf3, bf3)
    return pl.pallas_call(
        _conv2_fc_fused_kernel,
        out_shape=jax.ShapeDtypeStruct((B, 10), jnp.float32),
        grid=(1,),
        in_specs=[pl.BlockSpec(op.shape, lambda i, n=op.ndim: (0,) * n)
                  for op in operands],
        out_specs=pl.BlockSpec((B, 10), lambda i: (0, 0)),
        compiler_params=pltpu.CompilerParams(dimension_semantics=("arbitrary",)),
    )(*operands)


# ------------------------ one-time parameter prep ---------------------------

def prepare_params(params):
    """One-time weight layout prep (hoisted out of the per-call forward path)."""
    prep = {}
    # conv weights (Cout,Cin,KH,KW) -> (kh*kw*cin, cout) matching the im2col tap order.
    prep["w1"] = jnp.transpose(params["conv1_w"], (2, 3, 1, 0)).reshape(75, 6)
    prep["b1"] = params["conv1_b"].reshape(1, 6)
    prep["w2"] = jnp.transpose(params["conv2_w"], (2, 3, 1, 0)).reshape(150, 16)
    prep["b2"] = params["conv2_b"].reshape(1, 16)
    # fc1: torch flattens (c,h,w); we feed pooled-NHWC grouped by spatial position,
    # so permute rows once here -> (25 spatial, 16 cin, 120 out).
    prep["wf1"] = jnp.transpose(params["fc1_w"].reshape(120, 16, 5, 5),
                                (2, 3, 1, 0)).reshape(25, 16, 120)
    prep["bf1"] = params["fc1_b"].reshape(1, 120)
    prep["wf2"] = params["fc2_w"].T                                      # (120, 84)
    prep["bf2"] = params["fc2_b"].reshape(1, 84)
    prep["wf3"] = params["fc3_w"].T                                      # (84, 10)
    prep["bf3"] = params["fc3_b"].reshape(1, 10)
    return prep


# --------------------------------- model ------------------------------------

def net_forward(prep, x_nchw):
    x = jnp.transpose(x_nchw, (0, 2, 3, 1))                              # NHWC (tiny)
    B = x.shape[0]
    h1 = conv1_relu_pool(x, prep["w1"], prep["b1"])                      # (B*196, 6)
    return conv2_fc_fused(h1, B, prep["w2"], prep["b2"],
                          prep["wf1"], prep["bf1"],
                          prep["wf2"], prep["bf2"],
                          prep["wf3"], prep["bf3"])                      # (B, 10)


def net_forward_ref(params, x_nchw):
    """Pure-JAX reference (no Pallas) for correctness checking."""
    def conv(x, w, b):
        y = lax.conv_general_dilated(x, w, (1, 1), "VALID",
                                     dimension_numbers=("NCHW", "OIHW", "NCHW"))
        return jax.nn.relu(y + b[None, :, None, None])

    def pool(x):
        return lax.reduce_window(x, -jnp.inf, lax.max,
                                 (1, 1, 2, 2), (1, 1, 2, 2), "VALID")

    x = pool(conv(x_nchw, params["conv1_w"], params["conv1_b"]))
    x = pool(conv(x, params["conv2_w"], params["conv2_b"]))
    x = x.reshape(x.shape[0], -1)
    x = jax.nn.relu(x @ params["fc1_w"].T + params["fc1_b"])
    x = jax.nn.relu(x @ params["fc2_w"].T + params["fc2_b"])
    return x @ params["fc3_w"].T + params["fc3_b"]


def init_params(key):
    """Deterministic init matching torch default shapes / U(-1/sqrt(fan_in), +)."""
    def conv_p(k, cout, cin, ksz):
        bound = 1.0 / (cin * ksz * ksz) ** 0.5
        kw, kb = jax.random.split(k)
        return (jax.random.uniform(kw, (cout, cin, ksz, ksz), jnp.float32, -bound, bound),
                jax.random.uniform(kb, (cout,), jnp.float32, -bound, bound))

    def lin_p(k, out_f, in_f):
        bound = 1.0 / in_f ** 0.5
        kw, kb = jax.random.split(k)
        return (jax.random.uniform(kw, (out_f, in_f), jnp.float32, -bound, bound),
                jax.random.uniform(kb, (out_f,), jnp.float32, -bound, bound))

    k1, k2, k3, k4, k5 = jax.random.split(key, 5)
    p = {}
    p["conv1_w"], p["conv1_b"] = conv_p(k1, 6, 3, 5)
    p["conv2_w"], p["conv2_b"] = conv_p(k2, 16, 6, 5)
    p["fc1_w"], p["fc1_b"] = lin_p(k3, 120, 16 * 5 * 5)
    p["fc2_w"], p["fc2_b"] = lin_p(k4, 84, 120)
    p["fc3_w"], p["fc3_b"] = lin_p(k5, 10, 84)
    return p


if __name__ == "__main__":
    key = jax.random.PRNGKey(0)
    pkey, xkey = jax.random.split(key)
    params = init_params(pkey)
    prep = prepare_params(params)                 # one-time, outside the jitted forward
    x = jax.random.normal(xkey, (2, 3, 32, 32), jnp.float32)   # NCHW, like torch

    out = jax.block_until_ready(jax.jit(net_forward)(prep, x))
    ref = jax.block_until_ready(net_forward_ref(params, x))

    assert out.shape == (2, 10), out.shape
    if not jnp.allclose(out, ref, atol=1e-4, rtol=1e-4):
        raise AssertionError("Pallas output does not match pure-JAX reference")
    print("KERNEL_OK")
</pallas_src>

<mosaic_0001>
module attributes {stable_mosaic.version = 11 : i64} {
  func.func @_conv_pool_kernel(%arg0: i32, %arg1: memref<4x392x75xf32, #tpu.memory_space<vmem>>, %arg2: memref<75x6xf32, #tpu.memory_space<vmem>>, %arg3: memref<1x6xf32, #tpu.memory_space<vmem>>, %arg4: memref<392x6xf32, #tpu.memory_space<vmem>>) attributes {dimension_semantics = [#tpu.dimension_semantics<parallel>], iteration_bounds = array<i64: 1>, scalar_prefetch = 0 : i64, scratch_operands = 0 : i64, tpu.core_type = #tpu.core_type<tc>, window_params = [{transform_indices = @transform_0, window_bounds = array<i64: 4, 392, 75>}, {pipeline_mode = #tpu.pipeline_mode<synchronous>, transform_indices = @transform_1, window_bounds = array<i64: 75, 6>}, {pipeline_mode = #tpu.pipeline_mode<synchronous>, transform_indices = @transform_2, window_bounds = array<i64: 1, 6>}, {transform_indices = @transform_3, window_bounds = array<i64: 392, 6>}]} {
    %c0 = arith.constant 0 : index
    %c0_0 = arith.constant 0 : index
    %0 = vector.load %arg2[%c0, %c0_0] : memref<75x6xf32, #tpu.memory_space<vmem>>, vector<75x6xf32>
    %c0_1 = arith.constant 0 : index
    %c0_2 = arith.constant 0 : index
    %1 = vector.load %arg3[%c0_1, %c0_2] : memref<1x6xf32, #tpu.memory_space<vmem>>, vector<1x6xf32>
    %c0_3 = arith.constant 0 : index
    %c0_4 = arith.constant 0 : index
    %c0_5 = arith.constant 0 : index
    %2 = vector.load %arg1[%c0_3, %c0_4, %c0_5] : memref<4x392x75xf32, #tpu.memory_space<vmem>>, vector<1x392x75xf32>
    %3 = vector.shape_cast %2 : vector<1x392x75xf32> to vector<392x75xf32>
    %cst = arith.constant dense<0.000000e+00> : vector<392x6xf32>
    %4 = tpu.matmul %3, %0, %cst {dimension_numbers = #tpu.dot_dimension_numbers<[1], [0], [0], [1], [0, 0, 1, 1], [], []>} : vector<392x75xf32>, vector<75x6xf32>, vector<392x6xf32> -> vector<392x6xf32>
    %5 = vector.broadcast %1 : vector<1x6xf32> to vector<392x6xf32>
    %6 = arith.addf %4, %5 : vector<392x6xf32>
    %cst_6 = arith.constant 0.000000e+00 : f32
    %7 = vector.broadcast %cst_6 : f32 to vector<392x6xf32>
    %8 = arith.maximumf %6, %7 : vector<392x6xf32>
    %c1 = arith.constant 1 : index
    %c0_7 = arith.constant 0 : index
    %c0_8 = arith.constant 0 : index
    %9 = vector.load %arg1[%c1, %c0_7, %c0_8] : memref<4x392x75xf32, #tpu.memory_space<vmem>>, vector<1x392x75xf32>
    %10 = vector.shape_cast %9 : vector<1x392x75xf32> to vector<392x75xf32>
    %cst_9 = arith.constant dense<0.000000e+00> : vector<392x6xf32>
    %11 = tpu.matmul %10, %0, %cst_9 {dimension_numbers = #tpu.dot_dimension_numbers<[1], [0], [0], [1], [0, 0, 1, 1], [], []>} : vector<392x75xf32>, vector<75x6xf32>, vector<392x6xf32> -> vector<392x6xf32>
    %12 = vector.broadcast %1 : vector<1x6xf32> to vector<392x6xf32>
    %13 = arith.addf %11, %12 : vector<392x6xf32>
    %cst_10 = arith.constant 0.000000e+00 : f32
    %14 = vector.broadcast %cst_10 : f32 to vector<392x6xf32>
    %15 = arith.maximumf %13, %14 : vector<392x6xf32>
    %16 = arith.maximumf %8, %15 : vector<392x6xf32>
    %c2 = arith.constant 2 : index
    %c0_11 = arith.constant 0 : index
    %c0_12 = arith.constant 0 : index
    %17 = vector.load %arg1[%c2, %c0_11, %c0_12] : memref<4x392x75xf32, #tpu.memory_space<vmem>>, vector<1x392x75xf32>
    %18 = vector.shape_cast %17 : vector<1x392x75xf32> to vector<392x75xf32>
    %cst_13 = arith.constant dense<0.000000e+00> : vector<392x6xf32>
    %19 = tpu.matmul %18, %0, %cst_13 {dimension_numbers = #tpu.dot_dimension_numbers<[1], [0], [0], [1], [0, 0, 1, 1], [], []>} : vector<392x75xf32>, vector<75x6xf32>, vector<392x6xf32> -> vector<392x6xf32>
    %20 = vector.broadcast %1 : vector<1x6xf32> to vector<392x6xf32>
    %21 = arith.addf %19, %20 : vector<392x6xf32>
    %cst_14 = arith.constant 0.000000e+00 : f32
    %22 = vector.broadcast %cst_14 : f32 to vector<392x6xf32>
    %23 = arith.maximumf %21, %22 : vector<392x6xf32>
    %c3 = arith.constant 3 : index
    %c0_15 = arith.constant 0 : index
    %c0_16 = arith.constant 0 : index
    %24 = vector.load %arg1[%c3, %c0_15, %c0_16] : memref<4x392x75xf32, #tpu.memory_space<vmem>>, vector<1x392x75xf32>
    %25 = vector.shape_cast %24 : vector<1x392x75xf32> to vector<392x75xf32>
    %cst_17 = arith.constant dense<0.000000e+00> : vector<392x6xf32>
    %26 = tpu.matmul %25, %0, %cst_17 {dimension_numbers = #tpu.dot_dimension_numbers<[1], [0], [0], [1], [0, 0, 1, 1], [], []>} : vector<392x75xf32>, vector<75x6xf32>, vector<392x6xf32> -> vector<392x6xf32>
    %27 = vector.broadcast %1 : vector<1x6xf32> to vector<392x6xf32>
    %28 = arith.addf %26, %27 : vector<392x6xf32>
    %cst_18 = arith.constant 0.000000e+00 : f32
    %29 = vector.broadcast %cst_18 : f32 to vector<392x6xf32>
    %30 = arith.maximumf %28, %29 : vector<392x6xf32>
    %31 = arith.maximumf %23, %30 : vector<392x6xf32>
    %32 = arith.maximumf %16, %31 : vector<392x6xf32>
    %c0_19 = arith.constant 0 : index
    %c0_20 = arith.constant 0 : index
    %33 = vector.load %arg4[%c0_19, %c0_20] : memref<392x6xf32, #tpu.memory_space<vmem>>, vector<392x6xf32>
    tpu.vector_store %arg4[%c0_19, %c0_20], %32 {strides = array<i32>} : memref<392x6xf32, #tpu.memory_space<vmem>>, vector<392x6xf32>,
    return
  }
  func.func @transform_0(%arg0: i32) -> (i32, i32, i32) {
    %c0_i32 = arith.constant 0 : i32
    %c0_i32_0 = arith.constant 0 : i32
    %c0_i32_1 = arith.constant 0 : i32
    return %c0_i32, %arg0, %c0_i32_0 : i32, i32, i32
  }
  func.func @transform_1(%arg0: i32) -> (i32, i32) {
    %c0_i32 = arith.constant 0 : i32
    %c0_i32_0 = arith.constant 0 : i32
    %c0_i32_1 = arith.constant 0 : i32
    return %c0_i32, %c0_i32_0 : i32, i32
  }
  func.func @transform_2(%arg0: i32) -> (i32, i32) {
    %c0_i32 = arith.constant 0 : i32
    %c0_i32_0 = arith.constant 0 : i32
    %c0_i32_1 = arith.constant 0 : i32
    return %c0_i32, %c0_i32_0 : i32, i32
  }
  func.func @transform_3(%arg0: i32) -> (i32, i32) {
    %c0_i32 = arith.constant 0 : i32
    %c0_i32_0 = arith.constant 0 : i32
    return %arg0, %c0_i32 : i32, i32
  }
}

module attributes {stable_mosaic.version = 11 : i64} {
  func.func @_conv2_fc_fused_kernel(%arg0: i32, %arg1: memref<4x50x150xf32, #tpu.memory_space<vmem>>, %arg2: memref<150x16xf32, #tpu.memory_space<vmem>>, %arg3: memref<1x16xf32, #tpu.memory_space<vmem>>, %arg4: memref<25x16x120xf32, #tpu.memory_space<vmem>>, %arg5: memref<1x120xf32, #tpu.memory_space<vmem>>, %arg6: memref<120x84xf32, #tpu.memory_space<vmem>>, %arg7: memref<1x84xf32, #tpu.memory_space<vmem>>, %arg8: memref<84x10xf32, #tpu.memory_space<vmem>>, %arg9: memref<1x10xf32, #tpu.memory_space<vmem>>, %arg10: memref<2x10xf32, #tpu.memory_space<vmem>>) attributes {dimension_semantics = [#tpu.dimension_semantics<arbitrary>], iteration_bounds = array<i64: 1>, scalar_prefetch = 0 : i64, scratch_operands = 0 : i64, tpu.core_type = #tpu.core_type<tc>, window_params = [{pipeline_mode = #tpu.pipeline_mode<synchronous>, transform_indices = @transform_0, window_bounds = array<i64: 4, 50, 150>}, {pipeline_mode = #tpu.pipeline_mode<synchronous>, transform_indices = @transform_1, window_bounds = array<i64: 150, 16>}, {pipeline_mode = #tpu.pipeline_mode<synchronous>, transform_indices = @transform_2, window_bounds = array<i64: 1, 16>}, {pipeline_mode = #tpu.pipeline_mode<synchronous>, transform_indices = @transform_3, window_bounds = array<i64: 25, 16, 120>}, {pipeline_mode = #tpu.pipeline_mode<synchronous>, transform_indices = @transform_4, window_bounds = array<i64: 1, 120>}, {pipeline_mode = #tpu.pipeline_mode<synchronous>, transform_indices = @transform_5, window_bounds = array<i64: 120, 84>}, {pipeline_mode = #tpu.pipeline_mode<synchronous>, transform_indices = @transform_6, window_bounds = array<i64: 1, 84>}, {pipeline_mode = #tpu.pipeline_mode<synchronous>, transform_indices = @transform_7, window_bounds = array<i64: 84, 10>}, {pipeline_mode = #tpu.pipeline_mode<synchronous>, transform_indices = @transform_8, window_bounds = array<i64: 1, 10>}, {pipeline_mode = #tpu.pipeline_mode<synchronous>, transform_indices = @transform_9, window_bounds = array<i64: 2, 10>}]} {
    %c0 = arith.constant 0 : index
    %c0_0 = arith.constant 0 : index
    %0 = vector.load %arg2[%c0, %c0_0] : memref<150x16xf32, #tpu.memory_space<vmem>>, vector<150x16xf32>
    %c0_1 = arith.constant 0 : index
    %c0_2 = arith.constant 0 : index
    %1 = vector.load %arg3[%c0_1, %c0_2] : memref<1x16xf32, #tpu.memory_space<vmem>>, vector<1x16xf32>
    %c0_3 = arith.constant 0 : index
    %c0_4 = arith.constant 0 : index
    %c0_5 = arith.constant 0 : index
    %2 = vector.load %arg1[%c0_3, %c0_4, %c0_5] : memref<4x50x150xf32, #tpu.memory_space<vmem>>, vector<1x50x150xf32>
    %3 = vector.shape_cast %2 : vector<1x50x150xf32> to vector<50x150xf32>
    %cst = arith.constant dense<0.000000e+00> : vector<50x16xf32>
    %4 = tpu.matmul %3, %0, %cst {dimension_numbers = #tpu.dot_dimension_numbers<[1], [0], [0], [1], [0, 0, 1, 1], [], []>} : vector<50x150xf32>, vector<150x16xf32>, vector<50x16xf32> -> vector<50x16xf32>
    %5 = vector.broadcast %1 : vector<1x16xf32> to vector<50x16xf32>
    %6 = arith.addf %4, %5 : vector<50x16xf32>
    %cst_6 = arith.constant 0.000000e+00 : f32
    %7 = vector.broadcast %cst_6 : f32 to vector<50x16xf32>
    %8 = arith.maximumf %6, %7 : vector<50x16xf32>
    %c1 = arith.constant 1 : index
    %c0_7 = arith.constant 0 : index
    %c0_8 = arith.constant 0 : index
    %9 = vector.load %arg1[%c1, %c0_7, %c0_8] : memref<4x50x150xf32, #tpu.memory_space<vmem>>, vector<1x50x150xf32>
    %10 = vector.shape_cast %9 : vector<1x50x150xf32> to vector<50x150xf32>
    %cst_9 = arith.constant dense<0.000000e+00> : vector<50x16xf32>
    %11 = tpu.matmul %10, %0, %cst_9 {dimension_numbers = #tpu.dot_dimension_numbers<[1], [0], [0], [1], [0, 0, 1, 1], [], []>} : vector<50x150xf32>, vector<150x16xf32>, vector<50x16xf32> -> vector<50x16xf32>
    %12 = vector.broadcast %1 : vector<1x16xf32> to vector<50x16xf32>
    %13 = arith.addf %11, %12 : vector<50x16xf32>
    %cst_10 = arith.constant 0.000000e+00 : f32
    %14 = vector.broadcast %cst_10 : f32 to vector<50x16xf32>
    %15 = arith.maximumf %13, %14 : vector<50x16xf32>
    %16 = arith.maximumf %8, %15 : vector<50x16xf32>
    %c2 = arith.constant 2 : index
    %c0_11 = arith.constant 0 : index
    %c0_12 = arith.constant 0 : index
    %17 = vector.load %arg1[%c2, %c0_11, %c0_12] : memref<4x50x150xf32, #tpu.memory_space<vmem>>, vector<1x50x150xf32>
    %18 = vector.shape_cast %17 : vector<1x50x150xf32> to vector<50x150xf32>
    %cst_13 = arith.constant dense<0.000000e+00> : vector<50x16xf32>
    %19 = tpu.matmul %18, %0, %cst_13 {dimension_numbers = #tpu.dot_dimension_numbers<[1], [0], [0], [1], [0, 0, 1, 1], [], []>} : vector<50x150xf32>, vector<150x16xf32>, vector<50x16xf32> -> vector<50x16xf32>
    %20 = vector.broadcast %1 : vector<1x16xf32> to vector<50x16xf32>
    %21 = arith.addf %19, %20 : vector<50x16xf32>
    %cst_14 = arith.constant 0.000000e+00 : f32
    %22 = vector.broadcast %cst_14 : f32 to vector<50x16xf32>
    %23 = arith.maximumf %21, %22 : vector<50x16xf32>
    %c3 = arith.constant 3 : index
    %c0_15 = arith.constant 0 : index
    %c0_16 = arith.constant 0 : index
    %24 = vector.load %arg1[%c3, %c0_15, %c0_16] : memref<4x50x150xf32, #tpu.memory_space<vmem>>, vector<1x50x150xf32>
    %25 = vector.shape_cast %24 : vector<1x50x150xf32> to vector<50x150xf32>
    %cst_17 = arith.constant dense<0.000000e+00> : vector<50x16xf32>
    %26 = tpu.matmul %25, %0, %cst_17 {dimension_numbers = #tpu.dot_dimension_numbers<[1], [0], [0], [1], [0, 0, 1, 1], [], []>} : vector<50x150xf32>, vector<150x16xf32>, vector<50x16xf32> -> vector<50x16xf32>
    %27 = vector.broadcast %1 : vector<1x16xf32> to vector<50x16xf32>
    %28 = arith.addf %26, %27 : vector<50x16xf32>
    %cst_18 = arith.constant 0.000000e+00 : f32
    %29 = vector.broadcast %cst_18 : f32 to vector<50x16xf32>
    %30 = arith.maximumf %28, %29 : vector<50x16xf32>
    %31 = arith.maximumf %23, %30 : vector<50x16xf32>
    %32 = arith.maximumf %16, %31 : vector<50x16xf32>
    %cst_19 = arith.constant 0.000000e+00 : f32
    %33 = vector.broadcast %cst_19 : f32 to vector<2x120xf32>
    %c0_20 = arith.constant 0 : index
    %c0_21 = arith.constant 0 : index
    %34 = vector.load %arg5[%c0_20, %c0_21] : memref<1x120xf32, #tpu.memory_space<vmem>>, vector<1x120xf32>
    %35 = vector.broadcast %34 : vector<1x120xf32> to vector<2x120xf32>
    %36 = arith.addf %33, %35 : vector<2x120xf32>
    %37 = vector.extract_strided_slice %32 {offsets = [0, 0], sizes = [2, 16], strides = [1, 1]} : vector<50x16xf32> to vector<2x16xf32>
    %c0_22 = arith.constant 0 : index
    %c0_23 = arith.constant 0 : index
    %c0_24 = arith.constant 0 : index
    %38 = vector.load %arg4[%c0_22, %c0_23, %c0_24] : memref<25x16x120xf32, #tpu.memory_space<vmem>>, vector<1x16x120xf32>
    %39 = vector.shape_cast %38 : vector<1x16x120xf32> to vector<16x120xf32>
    %cst_25 = arith.constant dense<0.000000e+00> : vector<2x120xf32>
    %40 = tpu.matmul %37, %39, %cst_25 {dimension_numbers = #tpu.dot_dimension_numbers<[1], [0], [0], [1], [0, 0, 1, 1], [], []>} : vector<2x16xf32>, vector<16x120xf32>, vector<2x120xf32> -> vector<2x120xf32>
    %41 = arith.addf %36, %40 : vector<2x120xf32>
    %42 = vector.extract_strided_slice %32 {offsets = [2, 0], sizes = [2, 16], strides = [1, 1]} : vector<50x16xf32> to vector<2x16xf32>
    %c1_26 = arith.constant 1 : index
    %c0_27 = arith.constant 0 : index
    %c0_28 = arith.constant 0 : index
    %43 = vector.load %arg4[%c1_26, %c0_27, %c0_28] : memref<25x16x120xf32, #tpu.memory_space<vmem>>, vector<1x16x120xf32>
    %44 = vector.shape_cast %43 : vector<1x16x120xf32> to vector<16x120xf32>
    %cst_29 = arith.constant dense<0.000000e+00> : vector<2x120xf32>
    %45 = tpu.matmul %42, %44, %cst_29 {dimension_numbers = #tpu.dot_dimension_numbers<[1], [0], [0], [1], [0, 0, 1, 1], [], []>} : vector<2x16xf32>, vector<16x120xf32>, vector<2x120xf32> -> vector<2x120xf32>
    %46 = arith.addf %41, %45 : vector<2x120xf32>
    %47 = vector.extract_strided_slice %32 {offsets = [4, 0], sizes = [2, 16], strides = [1, 1]} : vector<50x16xf32> to vector<2x16xf32>
    %c2_30 = arith.constant 2 : index
    %c0_31 = arith.constant 0 : index
    %c0_32 = arith.constant 0 : index
    %48 = vector.load %arg4[%c2_30, %c0_31, %c0_32] : memref<25x16x120xf32, #tpu.memory_space<vmem>>, vector<1x16x120xf32>
    %49 = vector.shape_cast %48 : vector<1x16x120xf32> to vector<16x120xf32>
    %cst_33 = arith.constant dense<0.000000e+00> : vector<2x120xf32>
    %50 = tpu.matmul %47, %49, %cst_33 {dimension_numbers = #tpu.dot_dimension_numbers<[1], [0], [0], [1], [0, 0, 1, 1], [], []>} : vector<2x16xf32>, vector<16x120xf32>, vector<2x120xf32> -> vector<2x120xf32>
    %51 = arith.addf %46, %50 : vector<2x120xf32>
    %52 = vector.extract_strided_slice %32 {offsets = [6, 0], sizes = [2, 16], strides = [1, 1]} : vector<50x16xf32> to vector<2x16xf32>
    %c3_34 = arith.constant 3 : index
    %c0_35 = arith.constant 0 : index
    %c0_36 = arith.constant 0 : index
    %53 = vector.load %arg4[%c3_34, %c0_35, %c0_36] : memref<25x16x120xf32, #tpu.memory_space<vmem>>, vector<1x16x120xf32>
    %54 = vector.shape_cast %53 : vector<1x16x120xf32> to vector<16x120xf32>
    %cst_37 = arith.constant dense<0.000000e+00> : vector<2x120xf32>
    %55 = tpu.matmul %52, %54, %cst_37 {dimension_numbers = #tpu.dot_dimension_numbers<[1], [0], [0], [1], [0, 0, 1, 1], [], []>} : vector<2x16xf32>, vector<16x120xf32>, vector<2x120xf32> -> vector<2x120xf32>
    %56 = arith.addf %51, %55 : vector<2x120xf32>
    %57 = vector.extract_strided_slice %32 {offsets = [8, 0], sizes = [2, 16], strides = [1, 1]} : vector<50x16xf32> to vector<2x16xf32>
    %c4 = arith.constant 4 : index
    %c0_38 = arith.constant 0 : index
    %c0_39 = arith.constant 0 : index
    %58 = vector.load %arg4[%c4, %c0_38, %c0_39] : memref<25x16x120xf32, #tpu.memory_space<vmem>>, vector<1x16x120xf32>
    %59 = vector.shape_cast %58 : vector<1x16x120xf32> to vector<16x120xf32>
    %cst_40 = arith.constant dense<0.000000e+00> : vector<2x120xf32>
    %60 = tpu.matmul %57, %59, %cst_40 {dimension_numbers = #tpu.dot_dimension_numbers<[1], [0], [0], [1], [0, 0, 1, 1], [], []>} : vector<2x16xf32>, vector<16x120xf32>, vector<2x120xf32> -> vector<2x120xf32>
    %61 = arith.addf %56, %60 : vector<2x120xf32>
    %62 = vector.extract_strided_slice %32 {offsets = [10, 0], sizes = [2, 16], strides = [1, 1]} : vector<50x16xf32> to vector<2x16xf32>
    %c5 = arith.constant 5 : index
    %c0_41 = arith.constant 0 : index
    %c0_42 = arith.constant 0 : index
    %63 = vector.load %arg4[%c5, %c0_41, %c0_42] : memref<25x16x120xf32, #tpu.memory_space<vmem>>, vector<1x16x120xf32>
    %64 = vector.shape_cast %63 : vector<1x16x120xf32> to vector<16x120xf32>
    %cst_43 = arith.constant dense<0.000000e+00> : vector<2x120xf32>
    %65 = tpu.matmul %62, %64, %cst_43 {dimension_numbers = #tpu.dot_dimension_numbers<[1], [0], [0], [1], [0, 0, 1, 1], [], []>} : vector<2x16xf32>, vector<16x120xf32>, vector<2x120xf32> -> vector<2x120xf32>
    %66 = arith.addf %61, %65 : vector<2x120xf32>
    %67 = vector.extract_strided_slice %32 {offsets = [12, 0], sizes = [2, 16], strides = [1, 1]} : vector<50x16xf32> to vector<2x16xf32>
    %c6 = arith.constant 6 : index
    %c0_44 = arith.constant 0 : index
    %c0_45 = arith.constant 0 : index
    %68 = vector.load %arg4[%c6, %c0_44, %c0_45] : memref<25x16x120xf32, #tpu.memory_space<vmem>>, vector<1x16x120xf32>
    %69 = vector.shape_cast %68 : vector<1x16x120xf32> to vector<16x120xf32>
    %cst_46 = arith.constant dense<0.000000e+00> : vector<2x120xf32>
    %70 = tpu.matmul %67, %69, %cst_46 {dimension_numbers = #tpu.dot_dimension_numbers<[1], [0], [0], [1], [0, 0, 1, 1], [], []>} : vector<2x16xf32>, vector<16x120xf32>, vector<2x120xf32> -> vector<2x120xf32>
    %71 = arith.addf %66, %70 : vector<2x120xf32>
    %72 = vector.extract_strided_slice %32 {offsets = [14, 0], sizes = [2, 16], strides = [1, 1]} : vector<50x16xf32> to vector<2x16xf32>
    %c7 = arith.constant 7 : index
    %c0_47 = arith.constant 0 : index
    %c0_48 = arith.constant 0 : index
    %73 = vector.load %arg4[%c7, %c0_47, %c0_48] : memref<25x16x120xf32, #tpu.memory_space<vmem>>, vector<1x16x120xf32>
    %74 = vector.shape_cast %73 : vector<1x16x120xf32> to vector<16x120xf32>
    %cst_49 = arith.constant dense<0.000000e+00> : vector<2x120xf32>
    %75 = tpu.matmul %72, %74, %cst_49 {dimension_numbers = #tpu.dot_dimension_numbers<[1], [0], [0], [1], [0, 0, 1, 1], [], []>} : vector<2x16xf32>, vector<16x120xf32>, vector<2x120xf32> -> vector<2x120xf32>
    %76 = arith.addf %71, %75 : vector<2x120xf32>
    %77 = vector.extract_strided_slice %32 {offsets = [16, 0], sizes = [2, 16], strides = [1, 1]} : vector<50x16xf32> to vector<2x16xf32>
    %c8 = arith.constant 8 : index
    %c0_50 = arith.constant 0 : index
    %c0_51 = arith.constant 0 : index
    %78 = vector.load %arg4[%c8, %c0_50, %c0_51] : memref<25x16x120xf32, #tpu.memory_space<vmem>>, vector<1x16x120xf32>
    %79 = vector.shape_cast %78 : vector<1x16x120xf32> to vector<16x120xf32>
    %cst_52 = arith.constant dense<0.000000e+00> : vector<2x120xf32>
    %80 = tpu.matmul %77, %79, %cst_52 {dimension_numbers = #tpu.dot_dimension_numbers<[1], [0], [0], [1], [0, 0, 1, 1], [], []>} : vector<2x16xf32>, vector<16x120xf32>, vector<2x120xf32> -> vector<2x120xf32>
    %81 = arith.addf %76, %80 : vector<2x120xf32>
    %82 = vector.extract_strided_slice %32 {offsets = [18, 0], sizes = [2, 16], strides = [1, 1]} : vector<50x16xf32> to vector<2x16xf32>
    %c9 = arith.constant 9 : index
    %c0_53 = arith.constant 0 : index
    %c0_54 = arith.constant 0 : index
    %83 = vector.load %arg4[%c9, %c0_53, %c0_54] : memref<25x16x120xf32, #tpu.memory_space<vmem>>, vector<1x16x120xf32>
    %84 = vector.shape_cast %83 : vector<1x16x120xf32> to vector<16x120xf32>
    %cst_55 = arith.constant dense<0.000000e+00> : vector<2x120xf32>
    %85 = tpu.matmul %82, %84, %cst_55 {dimension_numbers = #tpu.dot_dimension_numbers<[1], [0], [0], [1], [0, 0, 1, 1], [], []>} : vector<2x16xf32>, vector<16x120xf32>, vector<2x120xf32> -> vector<2x120xf32>
    %86 = arith.addf %81, %85 : vector<2x120xf32>
    %87 = vector.extract_strided_slice %32 {offsets = [20, 0], sizes = [2, 16], strides = [1, 1]} : vector<50x16xf32> to vector<2x16xf32>
    %c10 = arith.constant 10 : index
    %c0_56 = arith.constant 0 : index
    %c0_57 = arith.constant 0 : index
    %88 = vector.load %arg4[%c10, %c0_56, %c0_57] : memref<25x16x120xf32, #tpu.memory_space<vmem>>, vector<1x16x120xf32>
    %89 = vector.shape_cast %88 : vector<1x16x120xf32> to vector<16x120xf32>
    %cst_58 = arith.constant dense<0.000000e+00> : vector<2x120xf32>
    %90 = tpu.matmul %87, %89, %cst_58 {dimension_numbers = #tpu.dot_dimension_numbers<[1], [0], [0], [1], [0, 0, 1, 1], [], []>} : vector<2x16xf32>, vector<16x120xf32>, vector<2x120xf32> -> vector<2x120xf32>
    %91 = arith.addf %86, %90 : vector<2x120xf32>
    %92 = vector.extract_strided_slice %32 {offsets = [22, 0], sizes = [2, 16], strides = [1, 1]} : vector<50x16xf32> to vector<2x16xf32>
    %c11 = arith.constant 11 : index
    %c0_59 = arith.constant 0 : index
    %c0_60 = arith.constant 0 : index
    %93 = vector.load %arg4[%c11, %c0_59, %c0_60] : memref<25x16x120xf32, #tpu.memory_space<vmem>>, vector<1x16x120xf32>
    %94 = vector.shape_cast %93 : vector<1x16x120xf32> to vector<16x120xf32>
    %cst_61 = arith.constant dense<0.000000e+00> : vector<2x120xf32>
    %95 = tpu.matmul %92, %94, %cst_61 {dimension_numbers = #tpu.dot_dimension_numbers<[1], [0], [0], [1], [0, 0, 1, 1], [], []>} : vector<2x16xf32>, vector<16x120xf32>, vector<2x120xf32> -> vector<2x120xf32>
    %96 = arith.addf %91, %95 : vector<2x120xf32>
    %97 = vector.extract_strided_slice %32 {offsets = [24, 0], sizes = [2, 16], strides = [1, 1]} : vector<50x16xf32> to vector<2x16xf32>
    %c12 = arith.constant 12 : index
    %c0_62 = arith.constant 0 : index
    %c0_63 = arith.constant 0 : index
    %98 = vector.load %arg4[%c12, %c0_62, %c0_63] : memref<25x16x120xf32, #tpu.memory_space<vmem>>, vector<1x16x120xf32>
    %99 = vector.shape_cast %98 : vector<1x16x120xf32> to vector<16x120xf32>
    %cst_64 = arith.constant dense<0.000000e+00> : vector<2x120xf32>
    %100 = tpu.matmul %97, %99, %cst_64 {dimension_numbers = #tpu.dot_dimension_numbers<[1], [0], [0], [1], [0, 0, 1, 1], [], []>} : vector<2x16xf32>, vector<16x120xf32>, vector<2x120xf32> -> vector<2x120xf32>
    %101 = arith.addf %96, %100 : vector<2x120xf32>
    %102 = vector.extract_strided_slice %32 {offsets = [26, 0], sizes = [2, 16], strides = [1, 1]} : vector<50x16xf32> to vector<2x16xf32>
    %c13 = arith.constant 13 : index
    %c0_65 = arith.constant 0 : index
    %c0_66 = arith.constant 0 : index
    %103 = vector.load %arg4[%c13, %c0_65, %c0_66] : memref<25x16x120xf32, #tpu.memory_space<vmem>>, vector<1x16x120xf32>
    %104 = vector.shape_cast %103 : vector<1x16x120xf32> to vector<16x120xf32>
    %cst_67 = arith.constant dense<0.000000e+00> : vector<2x120xf32>
    %105 = tpu.matmul %102, %104, %cst_67 {dimension_numbers = #tpu.dot_dimension_numbers<[1], [0], [0], [1], [0, 0, 1, 1], [], []>} : vector<2x16xf32>, vector<16x120xf32>, vector<2x120xf32> -> vector<2x120xf32>
    %106 = arith.addf %101, %105 : vector<2x120xf32>
    %107 = vector.extract_strided_slice %32 {offsets = [28, 0], sizes = [2, 16], strides = [1, 1]} : vector<50x16xf32> to vector<2x16xf32>
    %c14 = arith.constant 14 : index
    %c0_68 = arith.constant 0 : index
    %c0_69 = arith.constant 0 : index
    %108 = vector.load %arg4[%c14, %c0_68, %c0_69] : memref<25x16x120xf32, #tpu.memory_space<vmem>>, vector<1x16x120xf32>
    %109 = vector.shape_cast %108 : vector<1x16x120xf32> to vector<16x120xf32>
    %cst_70 = arith.constant dense<0.000000e+00> : vector<2x120xf32>
    %110 = tpu.matmul %107, %109, %cst_70 {dimension_numbers = #tpu.dot_dimension_numbers<[1], [0], [0], [1], [0, 0, 1, 1], [], []>} : vector<2x16xf32>, vector<16x120xf32>, vector<2x120xf32> -> vector<2x120xf32>
    %111 = arith.addf %106, %110 : vector<2x120xf32>
    %112 = vector.extract_strided_slice %32 {offsets = [30, 0], sizes = [2, 16], strides = [1, 1]} : vector<50x16xf32> to vector<2x16xf32>
    %c15 = arith.constant 15 : index
    %c0_71 = arith.constant 0 : index
    %c0_72 = arith.constant 0 : index
    %113 = vector.load %arg4[%c15, %c0_71, %c0_72] : memref<25x16x120xf32, #tpu.memory_space<vmem>>, vector<1x16x120xf32>
    %114 = vector.shape_cast %113 : vector<1x16x120xf32> to vector<16x120xf32>
    %cst_73 = arith.constant dense<0.000000e+00> : vector<2x120xf32>
    %115 = tpu.matmul %112, %114, %cst_73 {dimension_numbers = #tpu.dot_dimension_numbers<[1], [0], [0], [1], [0, 0, 1, 1], [], []>} : vector<2x16xf32>, vector<16x120xf32>, vector<2x120xf32> -> vector<2x120xf32>
    %116 = arith.addf %111, %115 : vector<2x120xf32>
    %117 = vector.extract_strided_slice %32 {offsets = [32, 0], sizes = [2, 16], strides = [1, 1]} : vector<50x16xf32> to vector<2x16xf32>
    %c16 = arith.constant 16 : index
    %c0_74 = arith.constant 0 : index
    %c0_75 = arith.constant 0 : index
    %118 = vector.load %arg4[%c16, %c0_74, %c0_75] : memref<25x16x120xf32, #tpu.memory_space<vmem>>, vector<1x16x120xf32>
    %119 = vector.shape_cast %118 : vector<1x16x120xf32> to vector<16x120xf32>
    %cst_76 = arith.constant dense<0.000000e+00> : vector<2x120xf32>
    %120 = tpu.matmul %117, %119, %cst_76 {dimension_numbers = #tpu.dot_dimension_numbers<[1], [0], [0], [1], [0, 0, 1, 1], [], []>} : vector<2x16xf32>, vector<16x120xf32>, vector<2x120xf32> -> vector<2x120xf32>
    %121 = arith.addf %116, %120 : vector<2x120xf32>
    %122 = vector.extract_strided_slice %32 {offsets = [34, 0], sizes = [2, 16], strides = [1, 1]} : vector<50x16xf32> to vector<2x16xf32>
    %c17 = arith.constant 17 : index
    %c0_77 = arith.constant 0 : index
    %c0_78 = arith.constant 0 : index
    %123 = vector.load %arg4[%c17, %c0_77, %c0_78] : memref<25x16x120xf32, #tpu.memory_space<vmem>>, vector<1x16x120xf32>
    %124 = vector.shape_cast %123 : vector<1x16x120xf32> to vector<16x120xf32>
    %cst_79 = arith.constant dense<0.000000e+00> : vector<2x120xf32>
    %125 = tpu.matmul %122, %124, %cst_79 {dimension_numbers = #tpu.dot_dimension_numbers<[1], [0], [0], [1], [0, 0, 1, 1], [], []>} : vector<2x16xf32>, vector<16x120xf32>, vector<2x120xf32> -> vector<2x120xf32>
    %126 = arith.addf %121, %125 : vector<2x120xf32>
    %127 = vector.extract_strided_slice %32 {offsets = [36, 0], sizes = [2, 16], strides = [1, 1]} : vector<50x16xf32> to vector<2x16xf32>
    %c18 = arith.constant 18 : index
    %c0_80 = arith.constant 0 : index
    %c0_81 = arith.constant 0 : index
    %128 = vector.load %arg4[%c18, %c0_80, %c0_81] : memref<25x16x120xf32, #tpu.memory_space<vmem>>, vector<1x16x120xf32>
    %129 = vector.shape_cast %128 : vector<1x16x120xf32> to vector<16x120xf32>
    %cst_82 = arith.constant dense<0.000000e+00> : vector<2x120xf32>
    %130 = tpu.matmul %127, %129, %cst_82 {dimension_numbers = #tpu.dot_dimension_numbers<[1], [0], [0], [1], [0, 0, 1, 1], [], []>} : vector<2x16xf32>, vector<16x120xf32>, vector<2x120xf32> -> vector<2x120xf32>
    %131 = arith.addf %126, %130 : vector<2x120xf32>
    %132 = vector.extract_strided_slice %32 {offsets = [38, 0], sizes = [2, 16], strides = [1, 1]} : vector<50x16xf32> to vector<2x16xf32>
    %c19 = arith.constant 19 : index
    %c0_83 = arith.constant 0 : index
    %c0_84 = arith.constant 0 : index
    %133 = vector.load %arg4[%c19, %c0_83, %c0_84] : memref<25x16x120xf32, #tpu.memory_space<vmem>>, vector<1x16x120xf32>
    %134 = vector.shape_cast %133 : vector<1x16x120xf32> to vector<16x120xf32>
    %cst_85 = arith.constant dense<0.000000e+00> : vector<2x120xf32>
    %135 = tpu.matmul %132, %134, %cst_85 {dimension_numbers = #tpu.dot_dimension_numbers<[1], [0], [0], [1], [0, 0, 1, 1], [], []>} : vector<2x16xf32>, vector<16x120xf32>, vector<2x120xf32> -> vector<2x120xf32>
    %136 = arith.addf %131, %135 : vector<2x120xf32>
    %137 = vector.extract_strided_slice %32 {offsets = [40, 0], sizes = [2, 16], strides = [1, 1]} : vector<50x16xf32> to vector<2x16xf32>
    %c20 = arith.constant 20 : index
    %c0_86 = arith.constant 0 : index
    %c0_87 = arith.constant 0 : index
    %138 = vector.load %arg4[%c20, %c0_86, %c0_87] : memref<25x16x120xf32, #tpu.memory_space<vmem>>, vector<1x16x120xf32>
    %139 = vector.shape_cast %138 : vector<1x16x120xf32> to vector<16x120xf32>
    %cst_88 = arith.constant dense<0.000000e+00> : vector<2x120xf32>
    %140 = tpu.matmul %137, %139, %cst_88 {dimension_numbers = #tpu.dot_dimension_numbers<[1], [0], [0], [1], [0, 0, 1, 1], [], []>} : vector<2x16xf32>, vector<16x120xf32>, vector<2x120xf32> -> vector<2x120xf32>
    %141 = arith.addf %136, %140 : vector<2x120xf32>
    %142 = vector.extract_strided_slice %32 {offsets = [42, 0], sizes = [2, 16], strides = [1, 1]} : vector<50x16xf32> to vector<2x16xf32>
    %c21 = arith.constant 21 : index
    %c0_89 = arith.constant 0 : index
    %c0_90 = arith.constant 0 : index
    %143 = vector.load %arg4[%c21, %c0_89, %c0_90] : memref<25x16x120xf32, #tpu.memory_space<vmem>>, vector<1x16x120xf32>
    %144 = vector.shape_cast %143 : vector<1x16x120xf32> to vector<16x120xf32>
    %cst_91 = arith.constant dense<0.000000e+00> : vector<2x120xf32>
    %145 = tpu.matmul %142, %144, %cst_91 {dimension_numbers = #tpu.dot_dimension_numbers<[1], [0], [0], [1], [0, 0, 1, 1], [], []>} : vector<2x16xf32>, vector<16x120xf32>, vector<2x120xf32> -> vector<2x120xf32>
    %146 = arith.addf %141, %145 : vector<2x120xf32>
    %147 = vector.extract_strided_slice %32 {offsets = [44, 0], sizes = [2, 16], strides = [1, 1]} : vector<50x16xf32> to vector<2x16xf32>
    %c22 = arith.constant 22 : index
    %c0_92 = arith.constant 0 : index
    %c0_93 = arith.constant 0 : index
    %148 = vector.load %arg4[%c22, %c0_92, %c0_93] : memref<25x16x120xf32, #tpu.memory_space<vmem>>, vector<1x16x120xf32>
    %149 = vector.shape_cast %148 : vector<1x16x120xf32> to vector<16x120xf32>
    %cst_94 = arith.constant dense<0.000000e+00> : vector<2x120xf32>
    %150 = tpu.matmul %147, %149, %cst_94 {dimension_numbers = #tpu.dot_dimension_numbers<[1], [0], [0], [1], [0, 0, 1, 1], [], []>} : vector<2x16xf32>, vector<16x120xf32>, vector<2x120xf32> -> vector<2x120xf32>
    %151 = arith.addf %146, %150 : vector<2x120xf32>
    %152 = vector.extract_strided_slice %32 {offsets = [46, 0], sizes = [2, 16], strides = [1, 1]} : vector<50x16xf32> to vector<2x16xf32>
    %c23 = arith.constant 23 : index
    %c0_95 = arith.constant 0 : index
    %c0_96 = arith.constant 0 : index
    %153 = vector.load %arg4[%c23, %c0_95, %c0_96] : memref<25x16x120xf32, #tpu.memory_space<vmem>>, vector<1x16x120xf32>
    %154 = vector.shape_cast %153 : vector<1x16x120xf32> to vector<16x120xf32>
    %cst_97 = arith.constant dense<0.000000e+00> : vector<2x120xf32>
    %155 = tpu.matmul %152, %154, %cst_97 {dimension_numbers = #tpu.dot_dimension_numbers<[1], [0], [0], [1], [0, 0, 1, 1], [], []>} : vector<2x16xf32>, vector<16x120xf32>, vector<2x120xf32> -> vector<2x120xf32>
    %156 = arith.addf %151, %155 : vector<2x120xf32>
    %157 = vector.extract_strided_slice %32 {offsets = [48, 0], sizes = [2, 16], strides = [1, 1]} : vector<50x16xf32> to vector<2x16xf32>
    %c24 = arith.constant 24 : index
    %c0_98 = arith.constant 0 : index
    %c0_99 = arith.constant 0 : index
    %158 = vector.load %arg4[%c24, %c0_98, %c0_99] : memref<25x16x120xf32, #tpu.memory_space<vmem>>, vector<1x16x120xf32>
    %159 = vector.shape_cast %158 : vector<1x16x120xf32> to vector<16x120xf32>
    %cst_100 = arith.constant dense<0.000000e+00> : vector<2x120xf32>
    %160 = tpu.matmul %157, %159, %cst_100 {dimension_numbers = #tpu.dot_dimension_numbers<[1], [0], [0], [1], [0, 0, 1, 1], [], []>} : vector<2x16xf32>, vector<16x120xf32>, vector<2x120xf32> -> vector<2x120xf32>
    %161 = arith.addf %156, %160 : vector<2x120xf32>
    %cst_101 = arith.constant 0.000000e+00 : f32
    %162 = vector.broadcast %cst_101 : f32 to vector<2x120xf32>
    %163 = arith.maximumf %161, %162 : vector<2x120xf32>
    %c0_102 = arith.constant 0 : index
    %c0_103 = arith.constant 0 : index
    %164 = vector.load %arg6[%c0_102, %c0_103] : memref<120x84xf32, #tpu.memory_space<vmem>>, vector<120x84xf32>
    %cst_104 = arith.constant dense<0.000000e+00> : vector<2x84xf32>
    %165 = tpu.matmul %163, %164, %cst_104 {dimension_numbers = #tpu.dot_dimension_numbers<[1], [0], [0], [1], [0, 0, 1, 1], [], []>} : vector<2x120xf32>, vector<120x84xf32>, vector<2x84xf32> -> vector<2x84xf32>
    %c0_105 = arith.constant 0 : index
    %c0_106 = arith.constant 0 : index
    %166 = vector.load %arg7[%c0_105, %c0_106] : memref<1x84xf32, #tpu.memory_space<vmem>>, vector<1x84xf32>
    %167 = vector.broadcast %166 : vector<1x84xf32> to vector<2x84xf32>
    %168 = arith.addf %165, %167 : vector<2x84xf32>
    %cst_107 = arith.constant 0.000000e+00 : f32
    %169 = vector.broadcast %cst_107 : f32 to vector<2x84xf32>
    %170 = arith.maximumf %168, %169 : vector<2x84xf32>
    %c0_108 = arith.constant 0 : index
    %c0_109 = arith.constant 0 : index
    %171 = vector.load %arg8[%c0_108, %c0_109] : memref<84x10xf32, #tpu.memory_space<vmem>>, vector<84x10xf32>
    %cst_110 = arith.constant dense<0.000000e+00> : vector<2x10xf32>
    %172 = tpu.matmul %170, %171, %cst_110 {dimension_numbers = #tpu.dot_dimension_numbers<[1], [0], [0], [1], [0, 0, 1, 1], [], []>} : vector<2x84xf32>, vector<84x10xf32>, vector<2x10xf32> -> vector<2x10xf32>
    %c0_111 = arith.constant 0 : index
    %c0_112 = arith.constant 0 : index
    %173 = vector.load %arg9[%c0_111, %c0_112] : memref<1x10xf32, #tpu.memory_space<vmem>>, vector<1x10xf32>
    %174 = vector.broadcast %173 : vector<1x10xf32> to vector<2x10xf32>
    %175 = arith.addf %172, %174 : vector<2x10xf32>
    %c0_113 = arith.constant 0 : index
    %c0_114 = arith.constant 0 : index
    %176 = vector.load %arg10[%c0_113, %c0_114] : memref<2x10xf32, #tpu.memory_space<vmem>>, vector<2x10xf32>
    tpu.vector_store %arg10[%c0_113, %c0_114], %175 {strides = array<i32>} : memref<2x10xf32, #tpu.memory_space<vmem>>, vector<2x10xf32>,
    return
  }
  func.func @transform_0(%arg0: i32) -> (i32, i32, i32) {
    %c0_i32 = arith.constant 0 : i32
    %c0_i32_0 = arith.constant 0 : i32
    %c0_i32_1 = arith.constant 0 : i32
    %c0_i32_2 = arith.constant 0 : i32
    return %c0_i32, %c0_i32_0, %c0_i32_1 : i32, i32, i32
  }
  func.func @transform_1(%arg0: i32) -> (i32, i32) {
    %c0_i32 = arith.constant 0 : i32
    %c0_i32_0 = arith.constant 0 : i32
    %c0_i32_1 = arith.constant 0 : i32
    return %c0_i32, %c0_i32_0 : i32, i32
  }
  func.func @transform_2(%arg0: i32) -> (i32, i32) {
    %c0_i32 = arith.constant 0 : i32
    %c0_i32_0 = arith.constant 0 : i32
    %c0_i32_1 = arith.constant 0 : i32
    return %c0_i32, %c0_i32_0 : i32, i32
  }
  func.func @transform_3(%arg0: i32) -> (i32, i32, i32) {
    %c0_i32 = arith.constant 0 : i32
    %c0_i32_0 = arith.constant 0 : i32
    %c0_i32_1 = arith.constant 0 : i32
    %c0_i32_2 = arith.constant 0 : i32
    return %c0_i32, %c0_i32_0, %c0_i32_1 : i32, i32, i32
  }
  func.func @transform_4(%arg0: i32) -> (i32, i32) {
    %c0_i32 = arith.constant 0 : i32
    %c0_i32_0 = arith.constant 0 : i32
    %c0_i32_1 = arith.constant 0 : i32
    return %c0_i32, %c0_i32_0 : i32, i32
  }
  func.func @transform_5(%arg0: i32) -> (i32, i32) {
    %c0_i32 = arith.constant 0 : i32
    %c0_i32_0 = arith.constant 0 : i32
    %c0_i32_1 = arith.constant 0 : i32
    return %c0_i32, %c0_i32_0 : i32, i32
  }
  func.func @transform_6(%arg0: i32) -> (i32, i32) {
    %c0_i32 = arith.constant 0 : i32
    %c0_i32_0 = arith.constant 0 : i32
    %c0_i32_1 = arith.constant 0 : i32
    return %c0_i32, %c0_i32_0 : i32, i32
  }
  func.func @transform_7(%arg0: i32) -> (i32, i32) {
    %c0_i32 = arith.constant 0 : i32
    %c0_i32_0 = arith.constant 0 : i32
    %c0_i32_1 = arith.constant 0 : i32
    return %c0_i32, %c0_i32_0 : i32, i32
  }
  func.func @transform_8(%arg0: i32) -> (i32, i32) {
    %c0_i32 = arith.constant 0 : i32
    %c0_i32_0 = arith.constant 0 : i32
    %c0_i32_1 = arith.constant 0 : i32
    return %c0_i32, %c0_i32_0 : i32, i32
  }
  func.func @transform_9(%arg0: i32) -> (i32, i32) {
    %c0_i32 = arith.constant 0 : i32
    %c0_i32_0 = arith.constant 0 : i32
    %c0_i32_1 = arith.constant 0 : i32
    return %c0_i32, %c0_i32_0 : i32, i32
  }
}

</mosaic_0001>

<bundles_post_ra>
// kernel: net_forward.2
= control target key start
LH: loop header
LB: loop body
LE: loop exit
PB: predicated region body
PF: predicated region fallthrough
CT: control target
= control target key end

     0   :  { %vm228_vm0 = vcmask 1042432   ;;  %v3716_v0 = vmov 0.0   ;;  %vm80_vm1 = vcmask 613376   ;;  %vm3717_vm2 = vmmov 0   ;;  %s5596_s1 = inlined_call_operand.vmem [shape: f32[75,6], index: 1, kind: input, shape index: {}]   ;;  %s5597_s0 = inlined_call_operand.vmem [shape: f32[4,392,75], index: 0, kind: input, shape index: {}]   ;;  %s5598_s2 = inlined_call_operand.vmem [shape: f32[1,6], index: 2, kind: input, shape index: {}]   ;;  %s5599_s3 = inlined_call_operand.vmem [shape: f32[392,6], index: 3, kind: output, shape index: {}]  }
   0x1   :  { %3044 = vmatprep.subr.mxu0 %v3716_v0  ;;  %3211 = vmatprep.subr.mxu1 %v3716_v0  ;;  %v23_v1 = vld [vmem:[%s5596_s1 + $0x48] sm:$0x7]  ;;  %v3746_v2 = vld [vmem:[%s5596_s1 + $0x40] sm:$0xff]  ;;  %v3755_v3 = vld [vmem:[%s5596_s1 + $0x38] sm:$0xff]  ;;  %vm2406_vm3 = vcmask 48128  }
   0x2   :  { %3045 = vmatpush3.msk.msra.mxu0 %vm228_vm0, %v23_v1  ;;  %3212 = vmatpush3.msk.msra.mxu1 %vm228_vm0, %v23_v1  ;;  %v3764_v4 = vld [vmem:[%s5596_s1 + $0x30] sm:$0xff]  ;;  %v3773_v5 = vld [vmem:[%s5596_s1 + $0x28] sm:$0xff]  ;;  %v3782_v6 = vld [vmem:[%s5596_s1 + $0x20] sm:$0xff] }
   0x3   :  { %3046 = vmatprep.subr.mxu0 %v3716_v0  ;;  %3213 = vmatprep.subr.mxu1 %v3716_v0  ;;  %v3791_v7 = vld [vmem:[%s5596_s1 + $0x18] sm:$0xff]  ;;  %v3800_v8 = vld [vmem:[%s5596_s1 + $0x10] sm:$0xff]  ;;  %v3809_v9 = vld [vmem:[%s5596_s1 + $0x8] sm:$0xff] }
   0x4   :  { %3047 = vmatpush3.msra.mxu0 %v3746_v2  ;;  %3214 = vmatpush3.msra.mxu1 %v3746_v2  ;;  %v3818_v10 = vld [vmem:[%s5596_s1] sm:$0xff]  ;;  %v2511_v12 = vld [vmem:[%s5597_s0 + $0x188] sm:$0xff]  ;;  %v2512_v14 = vld [vmem:[%s5597_s0 + $0x190] sm:$0xff] }
   0x5   :  { %3048 = vmatprep.subr.mxu0 %v3716_v0  ;;  %3215 = vmatprep.subr.mxu1 %v3716_v0  ;;  %v25_v11 = vld [vmem:[%s5597_s0] sm:$0xff]  ;;  %v26_v13 = vld [vmem:[%s5597_s0 + $0x8] sm:$0xff]  ;;  %v27_v15 = vld [vmem:[%s5597_s0 + $0x10] sm:$0xff] }
   0x6   :  { %3049 = vmatpush3.msra.mxu0 %v3755_v3  ;;  %3216 = vmatpush3.msra.mxu1 %v3755_v3  ;;  %v2513_v16 = vld [vmem:[%s5597_s0 + $0x198] sm:$0xff]  ;;  %v2514_v18 = vld [vmem:[%s5597_s0 + $0x1a0] sm:$0xff]  ;;  %v2515_v20 = vld [vmem:[%s5597_s0 + $0x1a8] sm:$0xff] }
   0x7   :  { %3050 = vmatprep.subr.mxu0 %v3716_v0  ;;  %3217 = vmatprep.subr.mxu1 %v3716_v0  ;;  %v28_v17 = vld [vmem:[%s5597_s0 + $0x18] sm:$0xff]  ;;  %v29_v19 = vld [vmem:[%s5597_s0 + $0x20] sm:$0xff]  ;;  %v30_v21 = vld [vmem:[%s5597_s0 + $0x28] sm:$0xff] }
   0x8   :  { %3051 = vmatpush3.msra.mxu0 %v3764_v4  ;;  %3218 = vmatpush3.msra.mxu1 %v3764_v4  ;;  %v2516_v22 = vld [vmem:[%s5597_s0 + $0x1b0] sm:$0xff]  ;;  %v2517_v24 = vld [vmem:[%s5597_s0 + $0x1b8] sm:$0xff]  ;;  %v2518_v26 = vld [vmem:[%s5597_s0 + $0x1c0] sm:$0xff] }
   0x9   :  { %3052 = vmatprep.subr.mxu0 %v3716_v0  ;;  %3219 = vmatprep.subr.mxu1 %v3716_v0  ;;  %v31_v23 = vld [vmem:[%s5597_s0 + $0x30] sm:$0xff]  ;;  %v32_v25 = vld [vmem:[%s5597_s0 + $0x38] sm:$0xff]  ;;  %v33_v27 = vld [vmem:[%s5597_s0 + $0x40] sm:$0xff] }
   0xa   :  { %3053 = vmatpush3.msra.mxu0 %v3773_v5  ;;  %3220 = vmatpush3.msra.mxu1 %v3773_v5  ;;  %v2519_v28 = vld [vmem:[%s5597_s0 + $0x1c8] sm:$0xff]  ;;  %v2520_v30 = vld [vmem:[%s5597_s0 + $0x1d0] sm:$0xff]  ;;  %v2521_v32 = vld [vmem:[%s5597_s0 + $0x1d8] sm:$0xff] }
   0xb   :  { %3054 = vmatprep.subr.mxu0 %v3716_v0  ;;  %3221 = vmatprep.subr.mxu1 %v3716_v0  ;;  %v34_v29 = vld [vmem:[%s5597_s0 + $0x48] sm:$0xff]  ;;  %v35_v31 = vld [vmem:[%s5597_s0 + $0x50] sm:$0xff]  ;;  %v36_v33 = vld [vmem:[%s5597_s0 + $0x58] sm:$0xff] }
   0xc   :  { %3055 = vmatpush3.msra.mxu0 %v3782_v6  ;;  %3222 = vmatpush3.msra.mxu1 %v3782_v6  ;;  %v2522_v34 = vld [vmem:[%s5597_s0 + $0x1e0] sm:$0xff]  ;;  %v2523_v36 = vld [vmem:[%s5597_s0 + $0x1e8] sm:$0xff]  ;;  %v2524_v38 = vld [vmem:[%s5597_s0 + $0x1f0] sm:$0xff] }
   0xd   :  { %3056 = vmatprep.subr.mxu0 %v3716_v0  ;;  %3223 = vmatprep.subr.mxu1 %v3716_v0  ;;  %v37_v35 = vld [vmem:[%s5597_s0 + $0x60] sm:$0xff]  ;;  %v38_v37 = vld [vmem:[%s5597_s0 + $0x68] sm:$0xff]  ;;  %v39_v39 = vld [vmem:[%s5597_s0 + $0x70] sm:$0xff] }
   0xe   :  { %3057 = vmatpush3.msra.mxu0 %v3791_v7  ;;  %3224 = vmatpush3.msra.mxu1 %v3791_v7  ;;  %v2525_v40 = vld [vmem:[%s5597_s0 + $0x1f8] sm:$0xff]  ;;  %v2526_v42 = vld [vmem:[%s5597_s0 + $0x200] sm:$0xff]  ;;  %v2527_v44 = vld [vmem:[%s5597_s0 + $0x208] sm:$0xff] }
   0xf   :  { %3058 = vmatprep.subr.mxu0 %v3716_v0  ;;  %3225 = vmatprep.subr.mxu1 %v3716_v0  ;;  %v40_v41 = vld [vmem:[%s5597_s0 + $0x78] sm:$0xff]  ;;  %v41_v43 = vld [vmem:[%s5597_s0 + $0x80] sm:$0xff]  ;;  %v42_v45 = vld [vmem:[%s5597_s0 + $0x88] sm:$0xff] }
  0x10   :  { %3059 = vmatpush3.msra.mxu0 %v3800_v8  ;;  %3226 = vmatpush3.msra.mxu1 %v3800_v8  ;;  %v2528_v46 = vld [vmem:[%s5597_s0 + $0x210] sm:$0xff]  ;;  %v2529_v48 = vld [vmem:[%s5597_s0 + $0x218] sm:$0xff]  ;;  %v2530_v50 = vld [vmem:[%s5597_s0 + $0x220] sm:$0xff] }
  0x11   :  { %3060 = vmatprep.subr.mxu0 %v3716_v0  ;;  %3227 = vmatprep.subr.mxu1 %v3716_v0  ;;  %v43_v47 = vld [vmem:[%s5597_s0 + $0x90] sm:$0xff]  ;;  %v44_v49 = vld [vmem:[%s5597_s0 + $0x98] sm:$0xff]  ;;  %v45_v51 = vld [vmem:[%s5597_s0 + $0xa0] sm:$0xff] }
  0x12   :  { %3061 = vmatpush3.msra.mxu0 %v3809_v9  ;;  %3228 = vmatpush3.msra.mxu1 %v3809_v9  ;;  %v2531_v52 = vld [vmem:[%s5597_s0 + $0x228] sm:$0xff]  ;;  %v2532_v54 = vld [vmem:[%s5597_s0 + $0x230] sm:$0xff]  ;;  %v2533_v56 = vld [vmem:[%s5597_s0 + $0x238] sm:$0xff] }
  0x13   :  { %3062 = vmatprep.subr.mxu0 %v3716_v0  ;;  %3229 = vmatprep.subr.mxu1 %v3716_v0  ;;  %v46_v53 = vld [vmem:[%s5597_s0 + $0xa8] sm:$0xff]  ;;  %v47_v55 = vld [vmem:[%s5597_s0 + $0xb0] sm:$0xff]  ;;  %v48_v57 = vld [vmem:[%s5597_s0 + $0xb8] sm:$0xff] }
  0x14   :  { %3063 = vmatpush3.msra.mxu0 %v3818_v10  ;;  %3064 = vmatprep.mubr.msk.f32.mxu0 %vm3717_vm2, %v3716_v0  ;;  %v2534_v58 = vld [vmem:[%s5597_s0 + $0x240] sm:$0xff]  ;;  %v2535_v60 = vld [vmem:[%s5597_s0 + $0x248] sm:$0xff]  ;;  %v2536_v62 = vld [vmem:[%s5597_s0 + $0x250] sm:$0xff] }
  0x15   :  { %3230 = vmatpush3.msra.mxu1 %v3818_v10  ;;  %3231 = vmatprep.mubr.msk.f32.mxu1 %vm3717_vm2, %v3716_v0  ;;  %v49_v59 = vld [vmem:[%s5597_s0 + $0xc0] sm:$0xff]  ;;  %v50_v61 = vld [vmem:[%s5597_s0 + $0xc8] sm:$0xff]  ;;  %v51_v63 = vld [vmem:[%s5597_s0 + $0xd0] sm:$0xff] }
  0x16   :  { %3065 = vmatmul.mubr.msk.f32.vlgmr.msra.gmra.mxu0 %vm80_vm1, %v25_v11  ;;  %3232 = vmatmul.mubr.msk.f32.vlgmr.msra.gmra.mxu1 %vm80_vm1, %v2511_v12  ;;  %v2542_v11 = vld [vmem:[%s5597_s0 + $0x280] sm:$0xff] }
  0x17   :  { %3378 = vmatprep.subr.mxu0 %v3716_v0  ;;  %3545 = vmatprep.subr.mxu1 %v3716_v0  ;;  %v57_v12 = vld [vmem:[%s5597_s0 + $0x100] sm:$0xff] }
  0x18   :  { %3379 = vmatpush3.msk.msra.mxu0 %vm228_vm0, %v23_v1  ;;  %3546 = vmatpush3.msk.msra.mxu1 %vm228_vm0, %v23_v1  ;;  %v2537_v1 = vld [vmem:[%s5597_s0 + $0x258] sm:$0xff] }
  0x19   :  { %3067 = vmatprep.mubr.msk.f32.mxu0 %vm3717_vm2, %v3716_v0  ;;  %3234 = vmatprep.mubr.msk.f32.mxu1 %vm3717_vm2, %v3716_v0 }
  0x1a   :  { %3068 = vmatmul.mubr.msk.f32.gmra.mxu0 %vm80_vm1, %v26_v13  ;;  %3235 = vmatmul.mubr.msk.f32.gmra.mxu1 %vm80_vm1, %v2512_v14  ;;  %v2543_v13 = vld [vmem:[%s5597_s0 + $0x288] sm:$0xff] }
  0x1b   :  { %3070 = vmatprep.mubr.msk.f32.mxu0 %vm3717_vm2, %v3716_v0  ;;  %3237 = vmatprep.mubr.msk.f32.mxu1 %vm3717_vm2, %v3716_v0  ;;  %v58_v14 = vld [vmem:[%s5597_s0 + $0x108] sm:$0xff] }
  0x1c   :  { %3380 = vmatprep.subr.mxu0 %v3716_v0  ;;  %3547 = vmatprep.subr.mxu1 %v3716_v0 }
  0x1d   :  { %3381 = vmatpush3.msra.mxu0 %v3746_v2  ;;  %3548 = vmatpush3.msra.mxu1 %v3746_v2  ;;  %v52_v2 = vld [vmem:[%s5597_s0 + $0xd8] sm:$0xff] }
  0x1e   :  { %3071 = vmatmul.mubr.msk.f32.gmra.mxu0 %vm80_vm1, %v27_v15  ;;  %3238 = vmatmul.mubr.msk.f32.gmra.mxu1 %vm80_vm1, %v2513_v16  ;;  %v2544_v15 = vld [vmem:[%s5597_s0 + $0x290] sm:$0xff] }
  0x1f   :  { %3073 = vmatprep.mubr.msk.f32.mxu0 %vm3717_vm2, %v3716_v0  ;;  %3240 = vmatprep.mubr.msk.f32.mxu1 %vm3717_vm2, %v3716_v0  ;;  %v59_v16 = vld [vmem:[%s5597_s0 + $0x110] sm:$0xff] }
  0x20   :  { %3382 = vmatprep.subr.mxu0 %v3716_v0  ;;  %3549 = vmatprep.subr.mxu1 %v3716_v0 }
  0x21   :  { %3383 = vmatpush3.msra.mxu0 %v3755_v3  ;;  %3550 = vmatpush3.msra.mxu1 %v3755_v3  ;;  %v2538_v3 = vld [vmem:[%s5597_s0 + $0x260] sm:$0xff] }
  0x22   :  { %3074 = vmatmul.mubr.msk.f32.gmra.mxu0 %vm80_vm1, %v28_v17  ;;  %3241 = vmatmul.mubr.msk.f32.gmra.mxu1 %vm80_vm1, %v2514_v18  ;;  %v2545_v17 = vld [vmem:[%s5597_s0 + $0x298] sm:$0xff] }
  0x23   :  { %3076 = vmatprep.mubr.msk.f32.mxu0 %vm3717_vm2, %v3716_v0  ;;  %3243 = vmatprep.mubr.msk.f32.mxu1 %vm3717_vm2, %v3716_v0  ;;  %v60_v18 = vld [vmem:[%s5597_s0 + $0x118] sm:$0xff] }
  0x24   :  { %3384 = vmatprep.subr.mxu0 %v3716_v0  ;;  %3551 = vmatprep.subr.mxu1 %v3716_v0 }
  0x25   :  { %3385 = vmatpush3.msra.mxu0 %v3764_v4  ;;  %3552 = vmatpush3.msra.mxu1 %v3764_v4  ;;  %v53_v4 = vld [vmem:[%s5597_s0 + $0xe0] sm:$0xff] }
  0x26   :  { %3077 = vmatmul.mubr.msk.f32.gmra.mxu0 %vm80_vm1, %v29_v19  ;;  %3244 = vmatmul.mubr.msk.f32.gmra.mxu1 %vm80_vm1, %v2515_v20  ;;  %v2546_v19 = vld [vmem:[%s5597_s0 + $0x2a0] sm:$0xff] }
  0x27   :  { %3079 = vmatprep.mubr.msk.f32.mxu0 %vm3717_vm2, %v3716_v0  ;;  %3246 = vmatprep.mubr.msk.f32.mxu1 %vm3717_vm2, %v3716_v0  ;;  %v61_v20 = vld [vmem:[%s5597_s0 + $0x120] sm:$0xff] }
  0x28   :  { %3386 = vmatprep.subr.mxu0 %v3716_v0  ;;  %3553 = vmatprep.subr.mxu1 %v3716_v0 }
  0x29   :  { %3387 = vmatpush3.msra.mxu0 %v3773_v5  ;;  %3554 = vmatpush3.msra.mxu1 %v3773_v5  ;;  %v2539_v5 = vld [vmem:[%s5597_s0 + $0x268] sm:$0xff] }
  0x2a   :  { %3080 = vmatmul.mubr.msk.f32.gmra.mxu0 %vm80_vm1, %v30_v21  ;;  %3247 = vmatmul.mubr.msk.f32.gmra.mxu1 %vm80_vm1, %v2516_v22  ;;  %v2547_v21 = vld [vmem:[%s5597_s0 + $0x2a8] sm:$0xff] }
  0x2b   :  { %3082 = vmatprep.mubr.msk.f32.mxu0 %vm3717_vm2, %v3716_v0  ;;  %3249 = vmatprep.mubr.msk.f32.mxu1 %vm3717_vm2, %v3716_v0  ;;  %v62_v22 = vld [vmem:[%s5597_s0 + $0x128] sm:$0xff] }
  0x2c   :  { %3388 = vmatprep.subr.mxu0 %v3716_v0  ;;  %3555 = vmatprep.subr.mxu1 %v3716_v0 }
  0x2d   :  { %3389 = vmatpush3.msra.mxu0 %v3782_v6  ;;  %3556 = vmatpush3.msra.mxu1 %v3782_v6  ;;  %v54_v6 = vld [vmem:[%s5597_s0 + $0xe8] sm:$0xff] }
  0x2e   :  { %3083 = vmatmul.mubr.msk.f32.gmra.mxu0 %vm80_vm1, %v31_v23  ;;  %3250 = vmatmul.mubr.msk.f32.gmra.mxu1 %vm80_vm1, %v2517_v24  ;;  %v2548_v23 = vld [vmem:[%s5597_s0 + $0x2b0] sm:$0xff] }
  0x2f   :  { %3085 = vmatprep.mubr.msk.f32.mxu0 %vm3717_vm2, %v3716_v0  ;;  %3252 = vmatprep.mubr.msk.f32.mxu1 %vm3717_vm2, %v3716_v0  ;;  %v63_v24 = vld [vmem:[%s5597_s0 + $0x130] sm:$0xff] }
  0x30   :  { %3390 = vmatprep.subr.mxu0 %v3716_v0  ;;  %3557 = vmatprep.subr.mxu1 %v3716_v0 }
  0x31   :  { %3391 = vmatpush3.msra.mxu0 %v3791_v7  ;;  %3558 = vmatpush3.msra.mxu1 %v3791_v7  ;;  %v2540_v7 = vld [vmem:[%s5597_s0 + $0x270] sm:$0xff] }
  0x32   :  { %3086 = vmatmul.mubr.msk.f32.gmra.mxu0 %vm80_vm1, %v32_v25  ;;  %3253 = vmatmul.mubr.msk.f32.gmra.mxu1 %vm80_vm1, %v2518_v26  ;;  %v2549_v25 = vld [vmem:[%s5597_s0 + $0x2b8] sm:$0xff] }
  0x33   :  { %3088 = vmatprep.mubr.msk.f32.mxu0 %vm3717_vm2, %v3716_v0  ;;  %3255 = vmatprep.mubr.msk.f32.mxu1 %vm3717_vm2, %v3716_v0  ;;  %v64_v26 = vld [vmem:[%s5597_s0 + $0x138] sm:$0xff] }
  0x34   :  { %3392 = vmatprep.subr.mxu0 %v3716_v0  ;;  %3559 = vmatprep.subr.mxu1 %v3716_v0 }
  0x35   :  { %3393 = vmatpush3.msra.mxu0 %v3800_v8  ;;  %3560 = vmatpush3.msra.mxu1 %v3800_v8  ;;  %v55_v8 = vld [vmem:[%s5597_s0 + $0xf0] sm:$0xff] }
  0x36   :  { %3089 = vmatmul.mubr.msk.f32.gmra.mxu0 %vm80_vm1, %v33_v27  ;;  %3256 = vmatmul.mubr.msk.f32.gmra.mxu1 %vm80_vm1, %v2519_v28  ;;  %v2550_v27 = vld [vmem:[%s5597_s0 + $0x2c0] sm:$0xff] }
  0x37   :  { %3091 = vmatprep.mubr.msk.f32.mxu0 %vm3717_vm2, %v3716_v0  ;;  %3258 = vmatprep.mubr.msk.f32.mxu1 %vm3717_vm2, %v3716_v0  ;;  %v65_v28 = vld [vmem:[%s5597_s0 + $0x140] sm:$0xff] }
  0x38   :  { %3394 = vmatprep.subr.mxu0 %v3716_v0  ;;  %3561 = vmatprep.subr.mxu1 %v3716_v0 }
  0x39   :  { %3395 = vmatpush3.msra.mxu0 %v3809_v9  ;;  %3562 = vmatpush3.msra.mxu1 %v3809_v9  ;;  %v2541_v9 = vld [vmem:[%s5597_s0 + $0x278] sm:$0xff] }
  0x3a   :  { %3092 = vmatmul.mubr.msk.f32.gmra.mxu0 %vm80_vm1, %v34_v29  ;;  %3259 = vmatmul.mubr.msk.f32.gmra.mxu1 %vm80_vm1, %v2520_v30  ;;  %v2551_v29 = vld [vmem:[%s5597_s0 + $0x2c8] sm:$0xff] }
  0x3b   :  { %3094 = vmatprep.mubr.msk.f32.mxu0 %vm3717_vm2, %v3716_v0  ;;  %3261 = vmatprep.mubr.msk.f32.mxu1 %vm3717_vm2, %v3716_v0  ;;  %v66_v30 = vld [vmem:[%s5597_s0 + $0x148] sm:$0xff] }
  0x3c   :  { %3396 = vmatprep.subr.mxu0 %v3716_v0  ;;  %3563 = vmatprep.subr.mxu1 %v3716_v0 }
  0x3d   :  { %3397 = vmatpush3.msra.mxu0 %v3818_v10  ;;  %3564 = vmatpush3.msra.mxu1 %v3818_v10  ;;  %v56_v10 = vld [vmem:[%s5597_s0 + $0xf8] sm:$0xff] }
  0x3e   :  { %3095 = vmatmul.mubr.msk.f32.gmra.mxu0 %vm80_vm1, %v35_v31  ;;  %3262 = vmatmul.mubr.msk.f32.gmra.mxu1 %vm80_vm1, %v2521_v32  ;;  %v2552_v31 = vld [vmem:[%s5597_s0 + $0x2d0] sm:$0xff] }
  0x3f   :  { %3097 = vmatprep.mubr.msk.f32.mxu0 %vm3717_vm2, %v3716_v0  ;;  %3264 = vmatprep.mubr.msk.f32.mxu1 %vm3717_vm2, %v3716_v0  ;;  %v67_v32 = vld [vmem:[%s5597_s0 + $0x150] sm:$0xff] }
  0x42   :  { %3098 = vmatmul.mubr.msk.f32.gmra.mxu0 %vm80_vm1, %v36_v33  ;;  %3265 = vmatmul.mubr.msk.f32.gmra.mxu1 %vm80_vm1, %v2522_v34  ;;  %v2553_v33 = vld [vmem:[%s5597_s0 + $0x2d8] sm:$0xff] }
  0x43   :  { %3100 = vmatprep.mubr.msk.f32.mxu0 %vm3717_vm2, %v3716_v0  ;;  %3267 = vmatprep.mubr.msk.f32.mxu1 %vm3717_vm2, %v3716_v0  ;;  %v68_v34 = vld [vmem:[%s5597_s0 + $0x158] sm:$0xff] }
  0x46   :  { %3101 = vmatmul.mubr.msk.f32.gmra.mxu0 %vm80_vm1, %v37_v35  ;;  %3268 = vmatmul.mubr.msk.f32.gmra.mxu1 %vm80_vm1, %v2523_v36  ;;  %v2554_v35 = vld [vmem:[%s5597_s0 + $0x2e0] sm:$0xff] }
  0x47   :  { %3103 = vmatprep.mubr.msk.f32.mxu0 %vm3717_vm2, %v3716_v0  ;;  %3270 = vmatprep.mubr.msk.f32.mxu1 %vm3717_vm2, %v3716_v0  ;;  %v69_v36 = vld [vmem:[%s5597_s0 + $0x160] sm:$0xff] }
  0x4a   :  { %3104 = vmatmul.mubr.msk.f32.gmra.mxu0 %vm80_vm1, %v38_v37  ;;  %3271 = vmatmul.mubr.msk.f32.gmra.mxu1 %vm80_vm1, %v2524_v38  ;;  %v2555_v37 = vld [vmem:[%s5597_s0 + $0x2e8] sm:$0xff] }
  0x4b   :  { %3106 = vmatprep.mubr.msk.f32.mxu0 %vm3717_vm2, %v3716_v0  ;;  %3273 = vmatprep.mubr.msk.f32.mxu1 %vm3717_vm2, %v3716_v0  ;;  %v70_v38 = vld [vmem:[%s5597_s0 + $0x168] sm:$0xff] }
  0x4e   :  { %3107 = vmatmul.mubr.msk.f32.gmra.mxu0 %vm80_vm1, %v39_v39  ;;  %3274 = vmatmul.mubr.msk.f32.gmra.mxu1 %vm80_vm1, %v2525_v40  ;;  %v2556_v39 = vld [vmem:[%s5597_s0 + $0x2f0] sm:$0xff] }
  0x4f   :  { %3109 = vmatprep.mubr.msk.f32.mxu0 %vm3717_vm2, %v3716_v0  ;;  %3276 = vmatprep.mubr.msk.f32.mxu1 %vm3717_vm2, %v3716_v0  ;;  %v71_v40 = vld [vmem:[%s5597_s0 + $0x170] sm:$0xff] }
  0x52   :  { %3110 = vmatmul.mubr.msk.f32.gmra.mxu0 %vm80_vm1, %v40_v41  ;;  %3277 = vmatmul.mubr.msk.f32.gmra.mxu1 %vm80_vm1, %v2526_v42  ;;  %v2557_v41 = vld [vmem:[%s5597_s0 + $0x2f8] sm:$0xff] }
  0x53   :  { %3112 = vmatprep.mubr.msk.f32.mxu0 %vm3717_vm2, %v3716_v0  ;;  %3279 = vmatprep.mubr.msk.f32.mxu1 %vm3717_vm2, %v3716_v0  ;;  %v72_v42 = vld [vmem:[%s5597_s0 + $0x178] sm:$0xff] }
  0x56   :  { %3113 = vmatmul.mubr.msk.f32.gmra.mxu0 %vm80_vm1, %v41_v43  ;;  %3280 = vmatmul.mubr.msk.f32.gmra.mxu1 %vm80_vm1, %v2527_v44  ;;  %v2558_v43 = vld [vmem:[%s5597_s0 + $0x300] sm:$0xff] }
  0x57   :  { %3115 = vmatprep.mubr.msk.f32.mxu0 %vm3717_vm2, %v3716_v0  ;;  %3282 = vmatprep.mubr.msk.f32.mxu1 %vm3717_vm2, %v3716_v0  ;;  %v73_v44 = vld [vmem:[%s5597_s0 + $0x180] sm:$0xff] }
  0x5a   :  { %3116 = vmatmul.mubr.msk.f32.gmra.mxu0 %vm80_vm1, %v42_v45  ;;  %3283 = vmatmul.mubr.msk.f32.gmra.mxu1 %vm80_vm1, %v2528_v46  ;;  %v2559_v45 = vld [vmem:[%s5597_s0 + $0x308] sm:$0xff]  ;;  %v4455_v46 = vld [vmem:[%s5598_s2] ss:$0 sm:$0xff] }
  0x5b   :  { %3118 = vmatprep.mubr.msk.f32.mxu0 %vm3717_vm2, %v3716_v0  ;;  %3285 = vmatprep.mubr.msk.f32.mxu1 %vm3717_vm2, %v3716_v0 }
  0x5e   :  { %3119 = vmatmul.mubr.msk.f32.gmra.mxu0 %vm80_vm1, %v43_v47  ;;  %3286 = vmatmul.mubr.msk.f32.gmra.mxu1 %vm80_vm1, %v2529_v48 }
  0x5f   :  { %3121 = vmatprep.mubr.msk.f32.mxu0 %vm3717_vm2, %v3716_v0  ;;  %3288 = vmatprep.mubr.msk.f32.mxu1 %vm3717_vm2, %v3716_v0 }
  0x62   :  { %3122 = vmatmul.mubr.msk.f32.gmra.mxu0 %vm80_vm1, %v44_v49  ;;  %3289 = vmatmul.mubr.msk.f32.gmra.mxu1 %vm80_vm1, %v2530_v50 }
  0x63   :  { %3124 = vmatprep.mubr.msk.f32.mxu0 %vm3717_vm2, %v3716_v0  ;;  %3291 = vmatprep.mubr.msk.f32.mxu1 %vm3717_vm2, %v3716_v0 }
  0x66   :  { %3125 = vmatmul.mubr.msk.f32.gmra.mxu0 %vm80_vm1, %v45_v51  ;;  %3292 = vmatmul.mubr.msk.f32.gmra.mxu1 %vm80_vm1, %v2531_v52  ;;  %v2610_v51 = vld [vmem:[%s5597_s0 + $0x310] sm:$0xff]  ;;  %v2709_v52 = vld [vmem:[%s5597_s0 + $0x498] sm:$0xff] }
  0x67   :  { %3127 = vmatprep.mubr.msk.f32.mxu0 %vm3717_vm2, %v3716_v0  ;;  %3294 = vmatprep.mubr.msk.f32.mxu1 %vm3717_vm2, %v3716_v0 }
  0x6a   :  { %3128 = vmatmul.mubr.msk.f32.gmra.mxu0 %vm80_vm1, %v46_v53  ;;  %3295 = vmatmul.mubr.msk.f32.gmra.mxu1 %vm80_vm1, %v2532_v54 }
  0x6b   :  { %3130 = vmatprep.mubr.msk.f32.mxu0 %vm3717_vm2, %v3716_v0  ;;  %3297 = vmatprep.mubr.msk.f32.mxu1 %vm3717_vm2, %v3716_v0 }
  0x6e   :  { %3131 = vmatmul.mubr.msk.f32.gmra.mxu0 %vm80_vm1, %v47_v55  ;;  %3298 = vmatmul.mubr.msk.f32.gmra.mxu1 %vm80_vm1, %v2533_v56 }
  0x6f   :  { %3133 = vmatprep.mubr.msk.f32.mxu0 %vm3717_vm2, %v3716_v0  ;;  %3300 = vmatprep.mubr.msk.f32.mxu1 %vm3717_vm2, %v3716_v0 }
  0x72   :  { %3134 = vmatmul.mubr.msk.f32.gmra.mxu0 %vm80_vm1, %v48_v57  ;;  %3301 = vmatmul.mubr.msk.f32.gmra.mxu1 %vm80_vm1, %v2534_v58 }
  0x73   :  { %3136 = vmatprep.mubr.msk.f32.mxu0 %vm3717_vm2, %v3716_v0  ;;  %3303 = vmatprep.mubr.msk.f32.mxu1 %vm3717_vm2, %v3716_v0 }
  0x76   :  { %3137 = vmatmul.mubr.msk.f32.gmra.mxu0 %vm80_vm1, %v49_v59  ;;  %3304 = vmatmul.mubr.msk.f32.gmra.mxu1 %vm80_vm1, %v2535_v60 }
  0x77   :  { %3139 = vmatprep.mubr.msk.f32.mxu0 %vm3717_vm2, %v3716_v0  ;;  %3306 = vmatprep.mubr.msk.f32.mxu1 %vm3717_vm2, %v3716_v0 }
  0x7a   :  { %3140 = vmatmul.mubr.msk.f32.gmra.mxu0 %vm80_vm1, %v50_v61  ;;  %3307 = vmatmul.mubr.msk.f32.gmra.mxu1 %vm80_vm1, %v2536_v62  ;;  %v2611_v62 = vld [vmem:[%s5597_s0 + $0x318] sm:$0xff] }
  0x7b   :  { %3142 = vmatprep.mubr.msk.f32.mxu0 %vm3717_vm2, %v3716_v0  ;;  %3309 = vmatprep.mubr.msk.f32.mxu1 %vm3717_vm2, %v3716_v0 }
  0x7e   :  { %3143 = vmatmul.mubr.msk.f32.gmra.mxu0 %vm80_vm1, %v51_v63  ;;  %3310 = vmatmul.mubr.msk.f32.gmra.mxu1 %vm80_vm1, %v2537_v1  ;;  %v2710_v63 = vld [vmem:[%s5597_s0 + $0x4a0] sm:$0xff] }
  0x7f   :  { %3145 = vmatprep.mubr.msk.f32.mxu0 %vm3717_vm2, %v3716_v0  ;;  %3312 = vmatprep.mubr.msk.f32.mxu1 %vm3717_vm2, %v3716_v0 }
  0x82   :  { %3146 = vmatmul.mubr.msk.f32.gmra.mxu0 %vm80_vm1, %v52_v2  ;;  %3313 = vmatmul.mubr.msk.f32.gmra.mxu1 %vm80_vm1, %v2538_v3 }
  0x83   :  { %3148 = vmatprep.mubr.msk.f32.mxu0 %vm3717_vm2, %v3716_v0  ;;  %3315 = vmatprep.mubr.msk.f32.mxu1 %vm3717_vm2, %v3716_v0 }
  0x86   :  { %3149 = vmatmul.mubr.msk.f32.gmra.mxu0 %vm80_vm1, %v53_v4  ;;  %3316 = vmatmul.mubr.msk.f32.gmra.mxu1 %vm80_vm1, %v2539_v5 }
  0x87   :  { %3151 = vmatprep.mubr.msk.f32.mxu0 %vm3717_vm2, %v3716_v0  ;;  %3318 = vmatprep.mubr.msk.f32.mxu1 %vm3717_vm2, %v3716_v0 }
  0x8a   :  { %3152 = vmatmul.mubr.msk.f32.gmra.mxu0 %vm80_vm1, %v54_v6  ;;  %3319 = vmatmul.mubr.msk.f32.gmra.mxu1 %vm80_vm1, %v2540_v7 }
  0x8b   :  { %3154 = vmatprep.mubr.msk.f32.mxu0 %vm3717_vm2, %v3716_v0  ;;  %3321 = vmatprep.mubr.msk.f32.mxu1 %vm3717_vm2, %v3716_v0 }
  0x8e   :  { %3155 = vmatmul.mubr.msk.f32.gmra.mxu0 %vm80_vm1, %v55_v8  ;;  %3322 = vmatmul.mubr.msk.f32.gmra.mxu1 %vm80_vm1, %v2541_v9 }
  0x8f   :  { %3157 = vmatprep.mubr.msk.f32.mxu0 %vm3717_vm2, %v3716_v0  ;;  %3324 = vmatprep.mubr.msk.f32.mxu1 %vm3717_vm2, %v3716_v0 }
  0x92   :  { %3158 = vmatmul.mubr.msk.f32.gmra.mxu0 %vm80_vm1, %v56_v10  ;;  %3325 = vmatmul.mubr.msk.f32.gmra.mxu1 %vm80_vm1, %v2542_v11  ;;  %v2612_v10 = vld [vmem:[%s5597_s0 + $0x320] sm:$0xff]  ;;  %v2711_v11 = vld [vmem:[%s5597_s0 + $0x4a8] sm:$0xff] }
  0x93   :  { %3160 = vmatprep.mubr.msk.f32.mxu0 %vm3717_vm2, %v3716_v0  ;;  %3327 = vmatprep.mubr.msk.f32.mxu1 %vm3717_vm2, %v3716_v0 }
  0x96   :  { %3161 = vmatmul.mubr.msk.f32.gmra.mxu0 %vm80_vm1, %v57_v12  ;;  %3328 = vmatmul.mubr.msk.f32.gmra.mxu1 %vm80_vm1, %v2543_v13 }
  0x97   :  { %3163 = vmatprep.mubr.msk.f32.mxu0 %vm3717_vm2, %v3716_v0  ;;  %3330 = vmatprep.mubr.msk.f32.mxu1 %vm3717_vm2, %v3716_v0 }
  0x9a   :  { %3164 = vmatmul.mubr.msk.f32.gmra.mxu0 %vm80_vm1, %v58_v14  ;;  %3331 = vmatmul.mubr.msk.f32.gmra.mxu1 %vm80_vm1, %v2544_v15 }
  0x9b   :  { %3166 = vmatprep.mubr.msk.f32.mxu0 %vm3717_vm2, %v3716_v0  ;;  %3333 = vmatprep.mubr.msk.f32.mxu1 %vm3717_vm2, %v3716_v0 }
  0x9e   :  { %3167 = vmatmul.mubr.msk.f32.gmra.mxu0 %vm80_vm1, %v59_v16  ;;  %3334 = vmatmul.mubr.msk.f32.gmra.mxu1 %vm80_vm1, %v2545_v17 }
  0x9f   :  { %3169 = vmatprep.mubr.msk.f32.mxu0 %vm3717_vm2, %v3716_v0  ;;  %3336 = vmatprep.mubr.msk.f32.mxu1 %vm3717_vm2, %v3716_v0 }
  0xa2   :  { %3170 = vmatmul.mubr.msk.f32.gmra.mxu0 %vm80_vm1, %v60_v18  ;;  %3337 = vmatmul.mubr.msk.f32.gmra.mxu1 %vm80_vm1, %v2546_v19 }
  0xa3   :  { %3172 = vmatprep.mubr.msk.f32.mxu0 %vm3717_vm2, %v3716_v0  ;;  %3339 = vmatprep.mubr.msk.f32.mxu1 %vm3717_vm2, %v3716_v0 }
  0xa6   :  { %3173 = vmatmul.mubr.msk.f32.gmra.mxu0 %vm80_vm1, %v61_v20  ;;  %3340 = vmatmul.mubr.msk.f32.gmra.mxu1 %vm80_vm1, %v2547_v21  ;;  %v2613_v21 = vld [vmem:[%s5597_s0 + $0x328] sm:$0xff] }
  0xa7   :  { %3175 = vmatprep.mubr.msk.f32.mxu0 %vm3717_vm2, %v3716_v0  ;;  %3342 = vmatprep.mubr.msk.f32.mxu1 %vm3717_vm2, %v3716_v0 }
  0xaa   :  { %3176 = vmatmul.mubr.msk.f32.gmra.mxu0 %vm80_vm1, %v62_v22  ;;  %3343 = vmatmul.mubr.msk.f32.gmra.mxu1 %vm80_vm1, %v2548_v23  ;;  %v2712_v22 = vld [vmem:[%s5597_s0 + $0x4b0] sm:$0xff] }
  0xab   :  { %3178 = vmatprep.mubr.msk.f32.mxu0 %vm3717_vm2, %v3716_v0  ;;  %3345 = vmatprep.mubr.msk.f32.mxu1 %vm3717_vm2, %v3716_v0 }
  0xae   :  { %3179 = vmatmul.mubr.msk.f32.gmra.mxu0 %vm80_vm1, %v63_v24  ;;  %3346 = vmatmul.mubr.msk.f32.gmra.mxu1 %vm80_vm1, %v2549_v25 }
  0xaf   :  { %3181 = vmatprep.mubr.msk.f32.mxu0 %vm3717_vm2, %v3716_v0  ;;  %3348 = vmatprep.mubr.msk.f32.mxu1 %vm3717_vm2, %v3716_v0 }
  0xb2   :  { %3182 = vmatmul.mubr.msk.f32.gmra.mxu0 %vm80_vm1, %v64_v26  ;;  %3349 = vmatmul.mubr.msk.f32.gmra.mxu1 %vm80_vm1, %v2550_v27 }
  0xb3   :  { %3184 = vmatprep.mubr.msk.f32.mxu0 %vm3717_vm2, %v3716_v0  ;;  %3351 = vmatprep.mubr.msk.f32.mxu1 %vm3717_vm2, %v3716_v0 }
  0xb6   :  { %3185 = vmatmul.mubr.msk.f32.gmra.mxu0 %vm80_vm1, %v65_v28  ;;  %3352 = vmatmul.mubr.msk.f32.gmra.mxu1 %vm80_vm1, %v2551_v29 }
  0xb7   :  { %3187 = vmatprep.mubr.msk.f32.mxu0 %vm3717_vm2, %v3716_v0  ;;  %3354 = vmatprep.mubr.msk.f32.mxu1 %vm3717_vm2, %v3716_v0 }
  0xba   :  { %3188 = vmatmul.mubr.msk.f32.gmra.mxu0 %vm80_vm1, %v66_v30  ;;  %3355 = vmatmul.mubr.msk.f32.gmra.mxu1 %vm80_vm1, %v2552_v31 }
  0xbb   :  { %3190 = vmatprep.mubr.msk.f32.mxu0 %vm3717_vm2, %v3716_v0  ;;  %3357 = vmatprep.mubr.msk.f32.mxu1 %vm3717_vm2, %v3716_v0 }
  0xbe   :  { %3191 = vmatmul.mubr.msk.f32.gmra.mxu0 %vm80_vm1, %v67_v32  ;;  %3358 = vmatmul.mubr.msk.f32.gmra.mxu1 %vm80_vm1, %v2553_v33  ;;  %v2614_v32 = vld [vmem:[%s5597_s0 + $0x330] sm:$0xff]  ;;  %v2713_v33 = vld [vmem:[%s5597_s0 + $0x4b8] sm:$0xff] }
  0xbf   :  { %3193 = vmatprep.mubr.msk.f32.mxu0 %vm3717_vm2, %v3716_v0  ;;  %3360 = vmatprep.mubr.msk.f32.mxu1 %vm3717_vm2, %v3716_v0 }
  0xc2   :  { %3194 = vmatmul.mubr.msk.f32.gmra.mxu0 %vm80_vm1, %v68_v34  ;;  %3361 = vmatmul.mubr.msk.f32.gmra.mxu1 %vm80_vm1, %v2554_v35 }
  0xc3   :  { %3196 = vmatprep.mubr.msk.f32.mxu0 %vm3717_vm2, %v3716_v0  ;;  %3363 = vmatprep.mubr.msk.f32.mxu1 %vm3717_vm2, %v3716_v0 }
  0xc6   :  { %3197 = vmatmul.mubr.msk.f32.gmra.mxu0 %vm80_vm1, %v69_v36  ;;  %3364 = vmatmul.mubr.msk.f32.gmra.mxu1 %vm80_vm1, %v2555_v37 }
  0xc7   :  { %3199 = vmatprep.mubr.msk.f32.mxu0 %vm3717_vm2, %v3716_v0  ;;  %3366 = vmatprep.mubr.msk.f32.mxu1 %vm3717_vm2, %v3716_v0 }
  0xca   :  { %3200 = vmatmul.mubr.msk.f32.gmra.mxu0 %vm80_vm1, %v70_v38  ;;  %3367 = vmatmul.mubr.msk.f32.gmra.mxu1 %vm80_vm1, %v2556_v39 }
  0xcb   :  { %3202 = vmatprep.mubr.msk.f32.mxu0 %vm3717_vm2, %v3716_v0  ;;  %3369 = vmatprep.mubr.msk.f32.mxu1 %vm3717_vm2, %v3716_v0 }
  0xce   :  { %3203 = vmatmul.mubr.msk.f32.gmra.mxu0 %vm80_vm1, %v71_v40  ;;  %3370 = vmatmul.mubr.msk.f32.gmra.mxu1 %vm80_vm1, %v2557_v41 }
  0xcf   :  { %3205 = vmatprep.mubr.msk.f32.mxu0 %vm3717_vm2, %v3716_v0  ;;  %3372 = vmatprep.mubr.msk.f32.mxu1 %vm3717_vm2, %v3716_v0 }
  0xd2   :  { %3206 = vmatmul.mubr.msk.f32.gmra.mxu0 %vm80_vm1, %v72_v42  ;;  %3373 = vmatmul.mubr.msk.f32.gmra.mxu1 %vm80_vm1, %v2558_v43  ;;  %v2615_v43 = vld [vmem:[%s5597_s0 + $0x338] sm:$0xff] }
  0xd3   :  { %3208 = vmatprep.mubr.msk.f32.mxu0 %vm3717_vm2, %v3716_v0  ;;  %3375 = vmatprep.mubr.msk.f32.mxu1 %vm3717_vm2, %v3716_v0 }
  0xd6   :  { %v298_v47 = vpop.f32.mrf.mxu0  ;;  %3209 = vmatmul.mubr.msk.f32.gmra.mxu0 %vm80_vm1, %v73_v44  ;;  %v854_v48 = vpop.f32.mrf.mxu1  ;;  %3376 = vmatmul.mubr.msk.f32.gmra.mxu1 %vm80_vm1, %v2559_v45  ;;  %v2714_v44 = vld [vmem:[%s5597_s0 + $0x4c0] sm:$0xff] }
  0xd7   :  { %v299_v49 = vadd.f32 %v4455_v46, %v298_v47  ;;  %v855_v50 = vadd.f32 %v4455_v46, %v854_v48  ;;  %3398 = vmatprep.mubr.msk.f32.mxu0 %vm3717_vm2, %v3716_v0  ;;  %3565 = vmatprep.mubr.msk.f32.mxu1 %vm3717_vm2, %v3716_v0 }
  0xd8   :  { %v3066_v53 = vpop.f32.mrf.mxu0  ;;  %v3233_v54 = vpop.f32.mrf.mxu1 }
  0xd9   :  { %v542_v55 = vmax.f32 %v299_v49, 0.0  ;;  %v1098_v56 = vmax.f32 %v855_v50, 0.0 }
  0xda   :  { %v303_v57 = vpop.f32.mrf.mxu0  ;;  %v859_v58 = vpop.f32.mrf.mxu1  ;;  %3399 = vmatmul.mubr.msk.f32.vlgmr.msra.gmra.mxu0 %vm80_vm1, %v2610_v51  ;;  %3566 = vmatmul.mubr.msk.f32.vlgmr.msra.gmra.mxu1 %vm80_vm1, %v2709_v52 }
  0xdb   :  { %v4473_v59 = vmax.f32 %v542_v55, %v1098_v56  ;;  %v304_v60 = vadd.f32 %v4455_v46, %v303_v57  ;;  %v860_v61 = vadd.f32 %v4455_v46, %v859_v58  ;;  %3401 = vmatprep.mubr.msk.f32.mxu0 %vm3717_vm2, %v3716_v0  ;;  %3568 = vmatprep.mubr.msk.f32.mxu1 %vm3717_vm2, %v3716_v0  ;;  %v2616_v55 = vld [vmem:[%s5597_s0 + $0x340] sm:$0xff]  ;;  %v2715_v56 = vld [vmem:[%s5597_s0 + $0x4c8] sm:$0xff] }
  0xdc   :  { %v3069_v1 = vpop.f32.mrf.mxu0  ;;  %v3236_v2 = vpop.f32.mrf.mxu1 }
  0xdd   :  { %v543_v3 = vmax.f32 %v304_v60, 0.0  ;;  %v1099_v4 = vmax.f32 %v860_v61, 0.0 }
  0xde   :  { %v308_v5 = vpop.f32.mrf.mxu0  ;;  %v864_v6 = vpop.f32.mrf.mxu1  ;;  %3402 = vmatmul.mubr.msk.f32.gmra.mxu0 %vm80_vm1, %v2611_v62  ;;  %3569 = vmatmul.mubr.msk.f32.gmra.mxu1 %vm80_vm1, %v2710_v63 }
  0xdf   :  { %v4489_v7 = vmax.f32 %v543_v3, %v1099_v4  ;;  %v309_v8 = vadd.f32 %v4455_v46, %v308_v5  ;;  %v865_v9 = vadd.f32 %v4455_v46, %v864_v6  ;;  %3404 = vmatprep.mubr.msk.f32.mxu0 %vm3717_vm2, %v3716_v0  ;;  %3571 = vmatprep.mubr.msk.f32.mxu1 %vm3717_vm2, %v3716_v0  ;;  %v2617_v4 = vld [vmem:[%s5597_s0 + $0x348] sm:$0xff]  ;;  %v2716_v5 = vld [vmem:[%s5597_s0 + $0x4d0] sm:$0xff] }
  0xe0   :  { %v3072_v12 = vpop.f32.mrf.mxu0  ;;  %v3239_v13 = vpop.f32.mrf.mxu1 }
  0xe1   :  { %v544_v14 = vmax.f32 %v309_v8, 0.0  ;;  %v1100_v15 = vmax.f32 %v865_v9, 0.0 }
  0xe2   :  { %v313_v16 = vpop.f32.mrf.mxu0  ;;  %v869_v17 = vpop.f32.mrf.mxu1  ;;  %3405 = vmatmul.mubr.msk.f32.gmra.mxu0 %vm80_vm1, %v2612_v10  ;;  %3572 = vmatmul.mubr.msk.f32.gmra.mxu1 %vm80_vm1, %v2711_v11 }
  0xe3   :  { %v4505_v18 = vmax.f32 %v544_v14, %v1100_v15  ;;  %v314_v19 = vadd.f32 %v4455_v46, %v313_v16  ;;  %v870_v20 = vadd.f32 %v4455_v46, %v869_v17  ;;  %3407 = vmatprep.mubr.msk.f32.mxu0 %vm3717_vm2, %v3716_v0  ;;  %3574 = vmatprep.mubr.msk.f32.mxu1 %vm3717_vm2, %v3716_v0  ;;  %v2618_v16 = vld [vmem:[%s5597_s0 + $0x350] sm:$0xff]  ;;  %v2717_v17 = vld [vmem:[%s5597_s0 + $0x4d8] sm:$0xff] }
  0xe4   :  { %v3075_v23 = vpop.f32.mrf.mxu0  ;;  %v3242_v24 = vpop.f32.mrf.mxu1 }
  0xe5   :  { %v545_v25 = vmax.f32 %v314_v19, 0.0  ;;  %v1101_v26 = vmax.f32 %v870_v20, 0.0 }
  0xe6   :  { %v318_v27 = vpop.f32.mrf.mxu0  ;;  %v874_v28 = vpop.f32.mrf.mxu1  ;;  %3408 = vmatmul.mubr.msk.f32.gmra.mxu0 %vm80_vm1, %v2613_v21  ;;  %3575 = vmatmul.mubr.msk.f32.gmra.mxu1 %vm80_vm1, %v2712_v22 }
  0xe7   :  { %v4521_v29 = vmax.f32 %v545_v25, %v1101_v26  ;;  %v319_v30 = vadd.f32 %v4455_v46, %v318_v27  ;;  %v875_v31 = vadd.f32 %v4455_v46, %v874_v28  ;;  %3410 = vmatprep.mubr.msk.f32.mxu0 %vm3717_vm2, %v3716_v0  ;;  %3577 = vmatprep.mubr.msk.f32.mxu1 %vm3717_vm2, %v3716_v0  ;;  %v2619_v28 = vld [vmem:[%s5597_s0 + $0x358] sm:$0xff] }
  0xe8   :  { %v3078_v34 = vpop.f32.mrf.mxu0  ;;  %v3245_v35 = vpop.f32.mrf.mxu1 }
  0xe9   :  { %v546_v36 = vmax.f32 %v319_v30, 0.0  ;;  %v1102_v37 = vmax.f32 %v875_v31, 0.0  ;;  %v2718_v30 = vld [vmem:[%s5597_s0 + $0x4e0] sm:$0xff] }
  0xea   :  { %v323_v38 = vpop.f32.mrf.mxu0  ;;  %v879_v39 = vpop.f32.mrf.mxu1  ;;  %3411 = vmatmul.mubr.msk.f32.gmra.mxu0 %vm80_vm1, %v2614_v32  ;;  %3578 = vmatmul.mubr.msk.f32.gmra.mxu1 %vm80_vm1, %v2713_v33 }
  0xeb   :  { %v4537_v40 = vmax.f32 %v546_v36, %v1102_v37  ;;  %v324_v41 = vadd.f32 %v4455_v46, %v323_v38  ;;  %v880_v42 = vadd.f32 %v4455_v46, %v879_v39  ;;  %3413 = vmatprep.mubr.msk.f32.mxu0 %vm3717_vm2, %v3716_v0  ;;  %3580 = vmatprep.mubr.msk.f32.mxu1 %vm3717_vm2, %v3716_v0 }
  0xec   :  { %v3081_v45 = vpop.f32.mrf.mxu0  ;;  %v3248_v47 = vpop.f32.mrf.mxu1 }
  0xed   :  { %v547_v48 = vmax.f32 %v324_v41, 0.0  ;;  %v1103_v49 = vmax.f32 %v880_v42, 0.0  ;;  %v2620_v41 = vld [vmem:[%s5597_s0 + $0x360] sm:$0xff]  ;;  %v2719_v42 = vld [vmem:[%s5597_s0 + $0x4e8] sm:$0xff] }
  0xee   :  { %v328_v50 = vpop.f32.mrf.mxu0  ;;  %v884_v51 = vpop.f32.mrf.mxu1  ;;  %3414 = vmatmul.mubr.msk.f32.gmra.mxu0 %vm80_vm1, %v2615_v43  ;;  %3581 = vmatmul.mubr.msk.f32.gmra.mxu1 %vm80_vm1, %v2714_v44 }
  0xef   :  { %v4553_v52 = vmax.f32 %v547_v48, %v1103_v49  ;;  %v329_v53 = vadd.f32 %v4455_v46, %v328_v50  ;;  %v885_v54 = vadd.f32 %v4455_v46, %v884_v51  ;;  %3416 = vmatprep.mubr.msk.f32.mxu0 %vm3717_vm2, %v3716_v0  ;;  %3583 = vmatprep.mubr.msk.f32.mxu1 %vm3717_vm2, %v3716_v0 }
  0xf0   :  { %v3084_v57 = vpop.f32.mrf.mxu0  ;;  %v3251_v58 = vpop.f32.mrf.mxu1 }
  0xf1   :  { %v548_v60 = vmax.f32 %v329_v53, 0.0  ;;  %v1104_v61 = vmax.f32 %v885_v54, 0.0  ;;  %v2621_v54 = vld [vmem:[%s5597_s0 + $0x368] sm:$0xff] }
  0xf2   :  { %v333_v62 = vpop.f32.mrf.mxu0  ;;  %v889_v63 = vpop.f32.mrf.mxu1  ;;  %3417 = vmatmul.mubr.msk.f32.gmra.mxu0 %vm80_vm1, %v2616_v55  ;;  %3584 = vmatmul.mubr.msk.f32.gmra.mxu1 %vm80_vm1, %v2715_v56  ;;  %v2720_v55 = vld [vmem:[%s5597_s0 + $0x4f0] sm:$0xff] }
  0xf3   :  { %v4569_v1 = vmax.f32 %v548_v60, %v1104_v61  ;;  %v334_v2 = vadd.f32 %v4455_v46, %v333_v62  ;;  %v890_v3 = vadd.f32 %v4455_v46, %v889_v63  ;;  %3419 = vmatprep.mubr.msk.f32.mxu0 %vm3717_vm2, %v3716_v0  ;;  %3586 = vmatprep.mubr.msk.f32.mxu1 %vm3717_vm2, %v3716_v0 }
  0xf4   :  { %v3087_v6 = vpop.f32.mrf.mxu0  ;;  %v3254_v8 = vpop.f32.mrf.mxu1 }
  0xf5   :  { %v549_v9 = vmax.f32 %v334_v2, 0.0  ;;  %v1105_v10 = vmax.f32 %v890_v3, 0.0 }
  0xf6   :  { %v338_v11 = vpop.f32.mrf.mxu0  ;;  %v894_v12 = vpop.f32.mrf.mxu1  ;;  %3420 = vmatmul.mubr.msk.f32.gmra.mxu0 %vm80_vm1, %v2617_v4  ;;  %3587 = vmatmul.mubr.msk.f32.gmra.mxu1 %vm80_vm1, %v2716_v5  ;;  %v2622_v4 = vld [vmem:[%s5597_s0 + $0x370] sm:$0xff]  ;;  %v2721_v5 = vld [vmem:[%s5597_s0 + $0x4f8] sm:$0xff] }
  0xf7   :  { %v4585_v13 = vmax.f32 %v549_v9, %v1105_v10  ;;  %v339_v14 = vadd.f32 %v4455_v46, %v338_v11  ;;  %v895_v15 = vadd.f32 %v4455_v46, %v894_v12  ;;  %3422 = vmatprep.mubr.msk.f32.mxu0 %vm3717_vm2, %v3716_v0  ;;  %3589 = vmatprep.mubr.msk.f32.mxu1 %vm3717_vm2, %v3716_v0 }
  0xf8   :  { %v3090_v19 = vpop.f32.mrf.mxu0  ;;  %v3257_v20 = vpop.f32.mrf.mxu1 }
  0xf9   :  { %v550_v21 = vmax.f32 %v339_v14, 0.0  ;;  %v1106_v22 = vmax.f32 %v895_v15, 0.0  ;;  %v2722_v19 = vld [vmem:[%s5597_s0 + $0x500] sm:$0xff] }
  0xfa   :  { %v343_v23 = vpop.f32.mrf.mxu0  ;;  %v899_v24 = vpop.f32.mrf.mxu1  ;;  %3423 = vmatmul.mubr.msk.f32.gmra.mxu0 %vm80_vm1, %v2618_v16  ;;  %3590 = vmatmul.mubr.msk.f32.gmra.mxu1 %vm80_vm1, %v2717_v17  ;;  %v2623_v17 = vld [vmem:[%s5597_s0 + $0x378] sm:$0xff] }
  0xfb   :  { %v4601_v25 = vmax.f32 %v550_v21, %v1106_v22  ;;  %v344_v26 = vadd.f32 %v4455_v46, %v343_v23  ;;  %v900_v27 = vadd.f32 %v4455_v46, %v899_v24  ;;  %3425 = vmatprep.mubr.msk.f32.mxu0 %vm3717_vm2, %v3716_v0  ;;  %3592 = vmatprep.mubr.msk.f32.mxu1 %vm3717_vm2, %v3716_v0 }
  0xfc   :  { %v3093_v31 = vpop.f32.mrf.mxu0  ;;  %v3260_v32 = vpop.f32.mrf.mxu1 }
  0xfd   :  { %v551_v33 = vmax.f32 %v344_v26, 0.0  ;;  %v1107_v34 = vmax.f32 %v900_v27, 0.0  ;;  %v2624_v31 = vld [vmem:[%s5597_s0 + $0x380] sm:$0xff]  ;;  %v2723_v32 = vld [vmem:[%s5597_s0 + $0x508] sm:$0xff] }
  0xfe   :  { %v348_v35 = vpop.f32.mrf.mxu0  ;;  %v904_v36 = vpop.f32.mrf.mxu1  ;;  %3426 = vmatmul.mubr.msk.f32.gmra.mxu0 %vm80_vm1, %v2619_v28  ;;  %3593 = vmatmul.mubr.msk.f32.gmra.mxu1 %vm80_vm1, %v2718_v30 }
  0xff   :  { %v4617_v37 = vmax.f32 %v551_v33, %v1107_v34  ;;  %v349_v38 = vadd.f32 %v4455_v46, %v348_v35  ;;  %v905_v39 = vadd.f32 %v4455_v46, %v904_v36  ;;  %3428 = vmatprep.mubr.msk.f32.mxu0 %vm3717_vm2, %v3716_v0  ;;  %3595 = vmatprep.mubr.msk.f32.mxu1 %vm3717_vm2, %v3716_v0 }
 0x100   :  { %v3096_v43 = vpop.f32.mrf.mxu0  ;;  %v3263_v44 = vpop.f32.mrf.mxu1 }
 0x101   :  { %v552_v45 = vmax.f32 %v349_v38, 0.0  ;;  %v1108_v47 = vmax.f32 %v905_v39, 0.0  ;;  %v2625_v44 = vld [vmem:[%s5597_s0 + $0x388] sm:$0xff] }
 0x102   :  { %v353_v48 = vpop.f32.mrf.mxu0  ;;  %v909_v49 = vpop.f32.mrf.mxu1  ;;  %3429 = vmatmul.mubr.msk.f32.gmra.mxu0 %vm80_vm1, %v2620_v41  ;;  %3596 = vmatmul.mubr.msk.f32.gmra.mxu1 %vm80_vm1, %v2719_v42 }
 0x103   :  { %v4633_v50 = vmax.f32 %v552_v45, %v1108_v47  ;;  %v354_v51 = vadd.f32 %v4455_v46, %v353_v48  ;;  %v910_v53 = vadd.f32 %v4455_v46, %v909_v49  ;;  %3431 = vmatprep.mubr.msk.f32.mxu0 %vm3717_vm2, %v3716_v0  ;;  %3598 = vmatprep.mubr.msk.f32.mxu1 %vm3717_vm2, %v3716_v0  ;;  %v2724_v45 = vld [vmem:[%s5597_s0 + $0x510] sm:$0xff] }
 0x104   :  { %v3099_v56 = vpop.f32.mrf.mxu0  ;;  %v3266_v57 = vpop.f32.mrf.mxu1 }
 0x105   :  { %v553_v58 = vmax.f32 %v354_v51, 0.0  ;;  %v1109_v60 = vmax.f32 %v910_v53, 0.0 }
 0x106   :  { %v358_v61 = vpop.f32.mrf.mxu0  ;;  %v914_v62 = vpop.f32.mrf.mxu1  ;;  %3432 = vmatmul.mubr.msk.f32.gmra.mxu0 %vm80_vm1, %v2621_v54  ;;  %3599 = vmatmul.mubr.msk.f32.gmra.mxu1 %vm80_vm1, %v2720_v55 }
 0x107   :  { %v4649_v63 = vmax.f32 %v553_v58, %v1109_v60  ;;  %v359_v2 = vadd.f32 %v4455_v46, %v358_v61  ;;  %v915_v3 = vadd.f32 %v4455_v46, %v914_v62  ;;  %3434 = vmatprep.mubr.msk.f32.mxu0 %vm3717_vm2, %v3716_v0  ;;  %3601 = vmatprep.mubr.msk.f32.mxu1 %vm3717_vm2, %v3716_v0  ;;  %v2626_v58 = vld [vmem:[%s5597_s0 + $0x390] sm:$0xff]  ;;  %v2725_v60 = vld [vmem:[%s5597_s0 + $0x518] sm:$0xff] }
 0x108   :  { %v3102_v6 = vpop.f32.mrf.mxu0  ;;  %v3269_v8 = vpop.f32.mrf.mxu1 }
 0x109   :  { %v554_v9 = vmax.f32 %v359_v2, 0.0  ;;  %v1110_v10 = vmax.f32 %v915_v3, 0.0 }
 0x10a   :  { %v363_v11 = vpop.f32.mrf.mxu0  ;;  %v919_v12 = vpop.f32.mrf.mxu1  ;;  %3435 = vmatmul.mubr.msk.f32.gmra.mxu0 %vm80_vm1, %v2622_v4  ;;  %3602 = vmatmul.mubr.msk.f32.gmra.mxu1 %vm80_vm1, %v2721_v5 }
 0x10b   :  { %v4665_v14 = vmax.f32 %v554_v9, %v1110_v10  ;;  %v364_v15 = vadd.f32 %v4455_v46, %v363_v11  ;;  %v920_v16 = vadd.f32 %v4455_v46, %v919_v12  ;;  %3437 = vmatprep.mubr.msk.f32.mxu0 %vm3717_vm2, %v3716_v0  ;;  %3604 = vmatprep.mubr.msk.f32.mxu1 %vm3717_vm2, %v3716_v0  ;;  %v2627_v10 = vld [vmem:[%s5597_s0 + $0x398] sm:$0xff]  ;;  %v2726_v11 = vld [vmem:[%s5597_s0 + $0x520] sm:$0xff] }
 0x10c   :  { %v3105_v20 = vpop.f32.mrf.mxu0  ;;  %v3272_v21 = vpop.f32.mrf.mxu1 }
 0x10d   :  { %v555_v22 = vmax.f32 %v364_v15, 0.0  ;;  %v1111_v23 = vmax.f32 %v920_v16, 0.0 }
 0x10e   :  { %v368_v24 = vpop.f32.mrf.mxu0  ;;  %v924_v26 = vpop.f32.mrf.mxu1  ;;  %3438 = vmatmul.mubr.msk.f32.gmra.mxu0 %vm80_vm1, %v2623_v17  ;;  %3605 = vmatmul.mubr.msk.f32.gmra.mxu1 %vm80_vm1, %v2722_v19 }
 0x10f   :  { %v4681_v27 = vmax.f32 %v555_v22, %v1111_v23  ;;  %v369_v28 = vadd.f32 %v4455_v46, %v368_v24  ;;  %v925_v30 = vadd.f32 %v4455_v46, %v924_v26  ;;  %3440 = vmatprep.mubr.msk.f32.mxu0 %vm3717_vm2, %v3716_v0  ;;  %3607 = vmatprep.mubr.msk.f32.mxu1 %vm3717_vm2, %v3716_v0  ;;  %v2628_v24 = vld [vmem:[%s5597_s0 + $0x3a0] sm:$0xff]  ;;  %v2727_v26 = vld [vmem:[%s5597_s0 + $0x528] sm:$0xff] }
 0x110   :  { %v3108_v33 = vpop.f32.mrf.mxu0  ;;  %v3275_v34 = vpop.f32.mrf.mxu1 }
 0x111   :  { %v556_v35 = vmax.f32 %v369_v28, 0.0  ;;  %v1112_v36 = vmax.f32 %v925_v30, 0.0 }
 0x112   :  { %v373_v38 = vpop.f32.mrf.mxu0  ;;  %v929_v39 = vpop.f32.mrf.mxu1  ;;  %3441 = vmatmul.mubr.msk.f32.gmra.mxu0 %vm80_vm1, %v2624_v31  ;;  %3608 = vmatmul.mubr.msk.f32.gmra.mxu1 %vm80_vm1, %v2723_v32 }
 0x113   :  { %v4697_v41 = vmax.f32 %v556_v35, %v1112_v36  ;;  %v374_v42 = vadd.f32 %v4455_v46, %v373_v38  ;;  %v930_v43 = vadd.f32 %v4455_v46, %v929_v39  ;;  %3443 = vmatprep.mubr.msk.f32.mxu0 %vm3717_vm2, %v3716_v0  ;;  %3610 = vmatprep.mubr.msk.f32.mxu1 %vm3717_vm2, %v3716_v0  ;;  %v2629_v39 = vld [vmem:[%s5597_s0 + $0x3a8] sm:$0xff] }
 0x114   :  { %v3111_v47 = vpop.f32.mrf.mxu0  ;;  %v3278_v48 = vpop.f32.mrf.mxu1 }
 0x115   :  { %v557_v49 = vmax.f32 %v374_v42, 0.0  ;;  %v1113_v51 = vmax.f32 %v930_v43, 0.0  ;;  %v2728_v42 = vld [vmem:[%s5597_s0 + $0x530] sm:$0xff] }
 0x116   :  { %v378_v53 = vpop.f32.mrf.mxu0  ;;  %v934_v54 = vpop.f32.mrf.mxu1  ;;  %3444 = vmatmul.mubr.msk.f32.gmra.mxu0 %vm80_vm1, %v2625_v44  ;;  %3611 = vmatmul.mubr.msk.f32.gmra.mxu1 %vm80_vm1, %v2724_v45 }
 0x117   :  { %v4713_v55 = vmax.f32 %v557_v49, %v1113_v51  ;;  %v379_v56 = vadd.f32 %v4455_v46, %v378_v53  ;;  %v935_v57 = vadd.f32 %v4455_v46, %v934_v54  ;;  %3446 = vmatprep.mubr.msk.f32.mxu0 %vm3717_vm2, %v3716_v0  ;;  %3613 = vmatprep.mubr.msk.f32.mxu1 %vm3717_vm2, %v3716_v0 }
 0x118   :  { %v3114_v61 = vpop.f32.mrf.mxu0  ;;  %v3281_v62 = vpop.f32.mrf.mxu1 }
 0x119   :  { %v558_v2 = vmax.f32 %v379_v56, 0.0  ;;  %v1114_v3 = vmax.f32 %v935_v57, 0.0  ;;  %v2630_v56 = vld [vmem:[%s5597_s0 + $0x3b0] sm:$0xff]  ;;  %v2729_v57 = vld [vmem:[%s5597_s0 + $0x538] sm:$0xff] }
 0x11a   :  { %v383_v4 = vpop.f32.mrf.mxu0  ;;  %v939_v5 = vpop.f32.mrf.mxu1  ;;  %3447 = vmatmul.mubr.msk.f32.gmra.mxu0 %vm80_vm1, %v2626_v58  ;;  %3614 = vmatmul.mubr.msk.f32.gmra.mxu1 %vm80_vm1, %v2725_v60 }
 0x11b   :  { %v4729_v6 = vmax.f32 %v558_v2, %v1114_v3  ;;  %v384_v8 = vadd.f32 %v4455_v46, %v383_v4  ;;  %v940_v9 = vadd.f32 %v4455_v46, %v939_v5  ;;  %3449 = vmatprep.mubr.msk.f32.mxu0 %vm3717_vm2, %v3716_v0  ;;  %3616 = vmatprep.mubr.msk.f32.mxu1 %vm3717_vm2, %v3716_v0 }
 0x11c   :  { %v3117_v12 = vpop.f32.mrf.mxu0  ;;  %v3284_v15 = vpop.f32.mrf.mxu1 }
 0x11d   :  { %v559_v16 = vmax.f32 %v384_v8, 0.0  ;;  %v1115_v17 = vmax.f32 %v940_v9, 0.0  ;;  %v2631_v9 = vld [vmem:[%s5597_s0 + $0x3b8] sm:$0xff] }
 0x11e   :  { %v388_v19 = vpop.f32.mrf.mxu0  ;;  %v944_v20 = vpop.f32.mrf.mxu1  ;;  %3450 = vmatmul.mubr.msk.f32.gmra.mxu0 %vm80_vm1, %v2627_v10  ;;  %3617 = vmatmul.mubr.msk.f32.gmra.mxu1 %vm80_vm1, %v2726_v11  ;;  %v2730_v10 = vld [vmem:[%s5597_s0 + $0x540] sm:$0xff] }
 0x11f   :  { %v4745_v21 = vmax.f32 %v559_v16, %v1115_v17  ;;  %v389_v22 = vadd.f32 %v4455_v46, %v388_v19  ;;  %v945_v23 = vadd.f32 %v4455_v46, %v944_v20  ;;  %3452 = vmatprep.mubr.msk.f32.mxu0 %vm3717_vm2, %v3716_v0  ;;  %3619 = vmatprep.mubr.msk.f32.mxu1 %vm3717_vm2, %v3716_v0 }
 0x120   :  { %v3120_v28 = vpop.f32.mrf.mxu0  ;;  %v3287_v30 = vpop.f32.mrf.mxu1 }
 0x121   :  { %v560_v31 = vmax.f32 %v389_v22, 0.0  ;;  %v1116_v32 = vmax.f32 %v945_v23, 0.0 }
 0x122   :  { %v393_v33 = vpop.f32.mrf.mxu0  ;;  %v949_v34 = vpop.f32.mrf.mxu1  ;;  %3453 = vmatmul.mubr.msk.f32.gmra.mxu0 %vm80_vm1, %v2628_v24  ;;  %3620 = vmatmul.mubr.msk.f32.gmra.mxu1 %vm80_vm1, %v2727_v26  ;;  %v2632_v24 = vld [vmem:[%s5597_s0 + $0x3c0] sm:$0xff]  ;;  %v2731_v26 = vld [vmem:[%s5597_s0 + $0x548] sm:$0xff] }
 0x123   :  { %v4761_v35 = vmax.f32 %v560_v31, %v1116_v32  ;;  %v394_v36 = vadd.f32 %v4455_v46, %v393_v33  ;;  %v950_v38 = vadd.f32 %v4455_v46, %v949_v34  ;;  %3455 = vmatprep.mubr.msk.f32.mxu0 %vm3717_vm2, %v3716_v0  ;;  %3622 = vmatprep.mubr.msk.f32.mxu1 %vm3717_vm2, %v3716_v0 }
 0x124   :  { %v3123_v43 = vpop.f32.mrf.mxu0  ;;  %v3290_v44 = vpop.f32.mrf.mxu1 }
 0x125   :  { %v561_v45 = vmax.f32 %v394_v36, 0.0  ;;  %v1117_v47 = vmax.f32 %v950_v38, 0.0  ;;  %v2732_v43 = vld [vmem:[%s5597_s0 + $0x550] sm:$0xff] }
 0x126   :  { %v398_v48 = vpop.f32.mrf.mxu0  ;;  %v954_v49 = vpop.f32.mrf.mxu1  ;;  %3456 = vmatmul.mubr.msk.f32.gmra.mxu0 %vm80_vm1, %v2629_v39  ;;  %3623 = vmatmul.mubr.msk.f32.gmra.mxu1 %vm80_vm1, %v2728_v42  ;;  %v2633_v42 = vld [vmem:[%s5597_s0 + $0x3c8] sm:$0xff] }
 0x127   :  { %v4777_v51 = vmax.f32 %v561_v45, %v1117_v47  ;;  %v399_v53 = vadd.f32 %v4455_v46, %v398_v48  ;;  %v955_v54 = vadd.f32 %v4455_v46, %v954_v49  ;;  %3458 = vmatprep.mubr.msk.f32.mxu0 %vm3717_vm2, %v3716_v0  ;;  %3625 = vmatprep.mubr.msk.f32.mxu1 %vm3717_vm2, %v3716_v0 }
 0x128   :  { %v3126_v58 = vpop.f32.mrf.mxu0  ;;  %v3293_v60 = vpop.f32.mrf.mxu1 }
 0x129   :  { %v562_v61 = vmax.f32 %v399_v53, 0.0  ;;  %v1118_v62 = vmax.f32 %v955_v54, 0.0  ;;  %v2634_v58 = vld [vmem:[%s5597_s0 + $0x3d0] sm:$0xff]  ;;  %v2733_v60 = vld [vmem:[%s5597_s0 + $0x558] sm:$0xff] }
 0x12a   :  { %v403_v2 = vpop.f32.mrf.mxu0  ;;  %v959_v3 = vpop.f32.mrf.mxu1  ;;  %3459 = vmatmul.mubr.msk.f32.gmra.mxu0 %vm80_vm1, %v2630_v56  ;;  %3626 = vmatmul.mubr.msk.f32.gmra.mxu1 %vm80_vm1, %v2729_v57 }
 0x12b   :  { %v4793_v4 = vmax.f32 %v562_v61, %v1118_v62  ;;  %v404_v5 = vadd.f32 %v4455_v46, %v403_v2  ;;  %v960_v8 = vadd.f32 %v4455_v46, %v959_v3  ;;  %3461 = vmatprep.mubr.msk.f32.mxu0 %vm3717_vm2, %v3716_v0  ;;  %3628 = vmatprep.mubr.msk.f32.mxu1 %vm3717_vm2, %v3716_v0 }
 0x12c   :  { %v3129_v11 = vpop.f32.mrf.mxu0  ;;  %v3296_v12 = vpop.f32.mrf.mxu1 }
 0x12d   :  { %v563_v15 = vmax.f32 %v404_v5, 0.0  ;;  %v1119_v16 = vmax.f32 %v960_v8, 0.0  ;;  %v2635_v12 = vld [vmem:[%s5597_s0 + $0x3d8] sm:$0xff] }
 0x12e   :  { %v408_v17 = vpop.f32.mrf.mxu0  ;;  %v964_v19 = vpop.f32.mrf.mxu1  ;;  %3462 = vmatmul.mubr.msk.f32.gmra.mxu0 %vm80_vm1, %v2631_v9  ;;  %3629 = vmatmul.mubr.msk.f32.gmra.mxu1 %vm80_vm1, %v2730_v10 }
 0x12f   :  { %v4809_v20 = vmax.f32 %v563_v15, %v1119_v16  ;;  %v409_v22 = vadd.f32 %v4455_v46, %v408_v17  ;;  %v965_v23 = vadd.f32 %v4455_v46, %v964_v19  ;;  %3464 = vmatprep.mubr.msk.f32.mxu0 %vm3717_vm2, %v3716_v0  ;;  %3631 = vmatprep.mubr.msk.f32.mxu1 %vm3717_vm2, %v3716_v0  ;;  %v2734_v15 = vld [vmem:[%s5597_s0 + $0x560] sm:$0xff] }
 0x130   :  { %v3132_v28 = vpop.f32.mrf.mxu0  ;;  %v3299_v30 = vpop.f32.mrf.mxu1 }
 0x131   :  { %v564_v31 = vmax.f32 %v409_v22, 0.0  ;;  %v1120_v32 = vmax.f32 %v965_v23, 0.0 }
 0x132   :  { %v413_v33 = vpop.f32.mrf.mxu0  ;;  %v969_v34 = vpop.f32.mrf.mxu1  ;;  %3465 = vmatmul.mubr.msk.f32.gmra.mxu0 %vm80_vm1, %v2632_v24  ;;  %3632 = vmatmul.mubr.msk.f32.gmra.mxu1 %vm80_vm1, %v2731_v26 }
 0x133   :  { %v4825_v36 = vmax.f32 %v564_v31, %v1120_v32  ;;  %v414_v38 = vadd.f32 %v4455_v46, %v413_v33  ;;  %v970_v39 = vadd.f32 %v4455_v46, %v969_v34  ;;  %3467 = vmatprep.mubr.msk.f32.mxu0 %vm3717_vm2, %v3716_v0  ;;  %3634 = vmatprep.mubr.msk.f32.mxu1 %vm3717_vm2, %v3716_v0  ;;  %v2636_v31 = vld [vmem:[%s5597_s0 + $0x3e0] sm:$0xff]  ;;  %v2735_v32 = vld [vmem:[%s5597_s0 + $0x568] sm:$0xff] }
 0x134   :  { %v3135_v44 = vpop.f32.mrf.mxu0  ;;  %v3302_v45 = vpop.f32.mrf.mxu1 }
 0x135   :  { %v565_v47 = vmax.f32 %v414_v38, 0.0  ;;  %v1121_v48 = vmax.f32 %v970_v39, 0.0 }
 0x136   :  { %v418_v49 = vpop.f32.mrf.mxu0  ;;  %v974_v53 = vpop.f32.mrf.mxu1  ;;  %3468 = vmatmul.mubr.msk.f32.gmra.mxu0 %vm80_vm1, %v2633_v42  ;;  %3635 = vmatmul.mubr.msk.f32.gmra.mxu1 %vm80_vm1, %v2732_v43 }
 0x137   :  { %v4841_v54 = vmax.f32 %v565_v47, %v1121_v48  ;;  %v419_v56 = vadd.f32 %v4455_v46, %v418_v49  ;;  %v975_v57 = vadd.f32 %v4455_v46, %v974_v53  ;;  %3470 = vmatprep.mubr.msk.f32.mxu0 %vm3717_vm2, %v3716_v0  ;;  %3637 = vmatprep.mubr.msk.f32.mxu1 %vm3717_vm2, %v3716_v0  ;;  %v2637_v48 = vld [vmem:[%s5597_s0 + $0x3e8] sm:$0xff]  ;;  %v2736_v49 = vld [vmem:[%s5597_s0 + $0x570] sm:$0xff] }
 0x138   :  { %v3138_v61 = vpop.f32.mrf.mxu0  ;;  %v3305_v62 = vpop.f32.mrf.mxu1 }
 0x139   :  { %v566_v2 = vmax.f32 %v419_v56, 0.0  ;;  %v1122_v3 = vmax.f32 %v975_v57, 0.0 }
 0x13a   :  { %v423_v5 = vpop.f32.mrf.mxu0  ;;  %v979_v8 = vpop.f32.mrf.mxu1  ;;  %3471 = vmatmul.mubr.msk.f32.gmra.mxu0 %vm80_vm1, %v2634_v58  ;;  %3638 = vmatmul.mubr.msk.f32.gmra.mxu1 %vm80_vm1, %v2733_v60 }
 0x13b   :  { %v4857_v9 = vmax.f32 %v566_v2, %v1122_v3  ;;  %v424_v10 = vadd.f32 %v4455_v46, %v423_v5  ;;  %v980_v11 = vadd.f32 %v4455_v46, %v979_v8  ;;  %3473 = vmatprep.mubr.msk.f32.mxu0 %vm3717_vm2, %v3716_v0  ;;  %3640 = vmatprep.mubr.msk.f32.mxu1 %vm3717_vm2, %v3716_v0  ;;  %v2638_v5 = vld [vmem:[%s5597_s0 + $0x3f0] sm:$0xff]  ;;  %v2737_v8 = vld [vmem:[%s5597_s0 + $0x578] sm:$0xff] }
 0x13c   :  { %v3141_v16 = vpop.f32.mrf.mxu0  ;;  %v3308_v17 = vpop.f32.mrf.mxu1 }
 0x13d   :  { %v567_v19 = vmax.f32 %v424_v10, 0.0  ;;  %v1123_v22 = vmax.f32 %v980_v11, 0.0 }
 0x13e   :  { %v428_v23 = vpop.f32.mrf.mxu0  ;;  %v984_v24 = vpop.f32.mrf.mxu1  ;;  %3474 = vmatmul.mubr.msk.f32.gmra.mxu0 %vm80_vm1, %v2635_v12  ;;  %3641 = vmatmul.mubr.msk.f32.gmra.mxu1 %vm80_vm1, %v2734_v15 }
 0x13f   :  { %v4873_v26 = vmax.f32 %v567_v19, %v1123_v22  ;;  %v429_v28 = vadd.f32 %v4455_v46, %v428_v23  ;;  %v985_v30 = vadd.f32 %v4455_v46, %v984_v24  ;;  %3476 = vmatprep.mubr.msk.f32.mxu0 %vm3717_vm2, %v3716_v0  ;;  %3643 = vmatprep.mubr.msk.f32.mxu1 %vm3717_vm2, %v3716_v0  ;;  %v2639_v24 = vld [vmem:[%s5597_s0 + $0x3f8] sm:$0xff] }
 0x140   :  { %v3144_v33 = vpop.f32.mrf.mxu0  ;;  %v3311_v34 = vpop.f32.mrf.mxu1 }
 0x141   :  { %v568_v38 = vmax.f32 %v429_v28, 0.0  ;;  %v1124_v39 = vmax.f32 %v985_v30, 0.0  ;;  %v2738_v28 = vld [vmem:[%s5597_s0 + $0x580] sm:$0xff] }
 0x142   :  { %v433_v42 = vpop.f32.mrf.mxu0  ;;  %v989_v43 = vpop.f32.mrf.mxu1  ;;  %3477 = vmatmul.mubr.msk.f32.gmra.mxu0 %vm80_vm1, %v2636_v31  ;;  %3644 = vmatmul.mubr.msk.f32.gmra.mxu1 %vm80_vm1, %v2735_v32 }
 0x143   :  { %v4889_v44 = vmax.f32 %v568_v38, %v1124_v39  ;;  %v434_v45 = vadd.f32 %v4455_v46, %v433_v42  ;;  %v990_v47 = vadd.f32 %v4455_v46, %v989_v43  ;;  %3479 = vmatprep.mubr.msk.f32.mxu0 %vm3717_vm2, %v3716_v0  ;;  %3646 = vmatprep.mubr.msk.f32.mxu1 %vm3717_vm2, %v3716_v0 }
 0x144   :  { %v3147_v53 = vpop.f32.mrf.mxu0  ;;  %v3314_v56 = vpop.f32.mrf.mxu1 }
 0x145   :  { %v569_v57 = vmax.f32 %v434_v45, 0.0  ;;  %v1125_v58 = vmax.f32 %v990_v47, 0.0  ;;  %v2640_v45 = vld [vmem:[%s5597_s0 + $0x400] sm:$0xff]  ;;  %v2739_v47 = vld [vmem:[%s5597_s0 + $0x588] sm:$0xff] }
 0x146   :  { %v438_v60 = vpop.f32.mrf.mxu0  ;;  %v994_v61 = vpop.f32.mrf.mxu1  ;;  %3480 = vmatmul.mubr.msk.f32.gmra.mxu0 %vm80_vm1, %v2637_v48  ;;  %3647 = vmatmul.mubr.msk.f32.gmra.mxu1 %vm80_vm1, %v2736_v49 }
 0x147   :  { %v4905_v62 = vmax.f32 %v569_v57, %v1125_v58  ;;  %v439_v2 = vadd.f32 %v4455_v46, %v438_v60  ;;  %v995_v3 = vadd.f32 %v4455_v46, %v994_v61  ;;  %3482 = vmatprep.mubr.msk.f32.mxu0 %vm3717_vm2, %v3716_v0  ;;  %3649 = vmatprep.mubr.msk.f32.mxu1 %vm3717_vm2, %v3716_v0 }
 0x148   :  { %v3150_v10 = vpop.f32.mrf.mxu0  ;;  %v3317_v11 = vpop.f32.mrf.mxu1 }
 0x149   :  { %v570_v12 = vmax.f32 %v439_v2, 0.0  ;;  %v1126_v15 = vmax.f32 %v995_v3, 0.0  ;;  %v2641_v3 = vld [vmem:[%s5597_s0 + $0x408] sm:$0xff] }
 0x14a   :  { %v443_v16 = vpop.f32.mrf.mxu0  ;;  %v999_v17 = vpop.f32.mrf.mxu1  ;;  %3483 = vmatmul.mubr.msk.f32.gmra.mxu0 %vm80_vm1, %v2638_v5  ;;  %3650 = vmatmul.mubr.msk.f32.gmra.mxu1 %vm80_vm1, %v2737_v8  ;;  %v2740_v5 = vld [vmem:[%s5597_s0 + $0x590] sm:$0xff] }
 0x14b   :  { %v4921_v19 = vmax.f32 %v570_v12, %v1126_v15  ;;  %v444_v22 = vadd.f32 %v4455_v46, %v443_v16  ;;  %v1000_v23 = vadd.f32 %v4455_v46, %v999_v17  ;;  %3485 = vmatprep.mubr.msk.f32.mxu0 %vm3717_vm2, %v3716_v0  ;;  %3652 = vmatprep.mubr.msk.f32.mxu1 %vm3717_vm2, %v3716_v0 }
 0x14c   :  { %v3153_v30 = vpop.f32.mrf.mxu0  ;;  %v3320_v31 = vpop.f32.mrf.mxu1 }
 0x14d   :  { %v571_v32 = vmax.f32 %v444_v22, 0.0  ;;  %v1127_v33 = vmax.f32 %v1000_v23, 0.0 }
 0x14e   :  { %v448_v34 = vpop.f32.mrf.mxu0  ;;  %v1004_v38 = vpop.f32.mrf.mxu1  ;;  %3486 = vmatmul.mubr.msk.f32.gmra.mxu0 %vm80_vm1, %v2639_v24  ;;  %3653 = vmatmul.mubr.msk.f32.gmra.mxu1 %vm80_vm1, %v2738_v28  ;;  %v2642_v24 = vld [vmem:[%s5597_s0 + $0x410] sm:$0xff]  ;;  %v2741_v28 = vld [vmem:[%s5597_s0 + $0x598] sm:$0xff] }
 0x14f   :  { %v4937_v39 = vmax.f32 %v571_v32, %v1127_v33  ;;  %v449_v42 = vadd.f32 %v4455_v46, %v448_v34  ;;  %v1005_v43 = vadd.f32 %v4455_v46, %v1004_v38  ;;  %3488 = vmatprep.mubr.msk.f32.mxu0 %vm3717_vm2, %v3716_v0  ;;  %3655 = vmatprep.mubr.msk.f32.mxu1 %vm3717_vm2, %v3716_v0 }
 0x150   :  { %v3156_v48 = vpop.f32.mrf.mxu0  ;;  %v3323_v49 = vpop.f32.mrf.mxu1 }
 0x151   :  { %v572_v53 = vmax.f32 %v449_v42, 0.0  ;;  %v1128_v56 = vmax.f32 %v1005_v43, 0.0  ;;  %v2742_v48 = vld [vmem:[%s5597_s0 + $0x5a0] sm:$0xff] }
 0x152   :  { %v453_v57 = vpop.f32.mrf.mxu0  ;;  %v1009_v58 = vpop.f32.mrf.mxu1  ;;  %3489 = vmatmul.mubr.msk.f32.gmra.mxu0 %vm80_vm1, %v2640_v45  ;;  %3656 = vmatmul.mubr.msk.f32.gmra.mxu1 %vm80_vm1, %v2739_v47  ;;  %v2643_v47 = vld [vmem:[%s5597_s0 + $0x418] sm:$0xff] }
 0x153   :  { %v4953_v60 = vmax.f32 %v572_v53, %v1128_v56  ;;  %v454_v61 = vadd.f32 %v4455_v46, %v453_v57  ;;  %v1010_v2 = vadd.f32 %v4455_v46, %v1009_v58  ;;  %3491 = vmatprep.mubr.msk.f32.mxu0 %vm3717_vm2, %v3716_v0  ;;  %3658 = vmatprep.mubr.msk.f32.mxu1 %vm3717_vm2, %v3716_v0 }
 0x154   :  { %v3159_v8 = vpop.f32.mrf.mxu0  ;;  %v3326_v10 = vpop.f32.mrf.mxu1 }
 0x155   :  { %v573_v11 = vmax.f32 %v454_v61, 0.0  ;;  %v1129_v12 = vmax.f32 %v1010_v2, 0.0  ;;  %v5006_v2 = vld [vmem:[%s5598_s2] ss:$0 sm:$0xff]  ;;  %v2743_v10 = vld [vmem:[%s5597_s0 + $0x5a8] sm:$0xff] }
 0x156   :  { %v458_v15 = vpop.f32.mrf.mxu0  ;;  %v1014_v16 = vpop.f32.mrf.mxu1  ;;  %3492 = vmatmul.mubr.msk.f32.gmra.mxu0 %vm80_vm1, %v2641_v3  ;;  %3659 = vmatmul.mubr.msk.f32.gmra.mxu1 %vm80_vm1, %v2740_v5  ;;  %v2644_v8 = vld [vmem:[%s5597_s0 + $0x420] sm:$0xff] }
 0x157   :  { %v4969_v17 = vmax.f32 %v573_v11, %v1129_v12  ;;  %v459_v22 = vadd.f32 %v4455_v46, %v458_v15  ;;  %v1015_v23 = vadd.f32 %v4455_v46, %v1014_v16  ;;  %3494 = vmatprep.mubr.msk.f32.mxu0 %vm3717_vm2, %v3716_v0  ;;  %3661 = vmatprep.mubr.msk.f32.mxu1 %vm3717_vm2, %v3716_v0 }
 0x158   :  { %v3162_v30 = vpop.f32.mrf.mxu0  ;;  %v3329_v31 = vpop.f32.mrf.mxu1 }
 0x159   :  { %v574_v32 = vmax.f32 %v459_v22, 0.0  ;;  %v1130_v33 = vmax.f32 %v1015_v23, 0.0  ;;  %v2645_v31 = vld [vmem:[%s5597_s0 + $0x428] sm:$0xff] }
 0x15a   :  { %v463_v34 = vpop.f32.mrf.mxu0  ;;  %v1019_v38 = vpop.f32.mrf.mxu1  ;;  %3495 = vmatmul.mubr.msk.f32.gmra.mxu0 %vm80_vm1, %v2642_v24  ;;  %3662 = vmatmul.mubr.msk.f32.gmra.mxu1 %vm80_vm1, %v2741_v28 }
 0x15b   :  { %v4985_v42 = vmax.f32 %v574_v32, %v1130_v33  ;;  %v464_v43 = vadd.f32 %v4455_v46, %v463_v34  ;;  %v1020_v45 = vadd.f32 %v4455_v46, %v1019_v38  ;;  %3497 = vmatprep.mubr.msk.f32.mxu0 %vm3717_vm2, %v3716_v0  ;;  %3664 = vmatprep.mubr.msk.f32.mxu1 %vm3717_vm2, %v3716_v0  ;;  %v2744_v32 = vld [vmem:[%s5597_s0 + $0x5b0] sm:$0xff] }
 0x15c   :  { %v3165_v49 = vpop.f32.mrf.mxu0  ;;  %v3332_v53 = vpop.f32.mrf.mxu1 }
 0x15d   :  { %v575_v56 = vmax.f32 %v464_v43, 0.0  ;;  %v1131_v57 = vmax.f32 %v1020_v45, 0.0 }
 0x15e   :  { %v468_v58 = vpop.f32.mrf.mxu0  ;;  %v1024_v46 = vpop.f32.mrf.mxu1  ;;  %3498 = vmatmul.mubr.msk.f32.gmra.mxu0 %vm80_vm1, %v2643_v47  ;;  %3665 = vmatmul.mubr.msk.f32.gmra.mxu1 %vm80_vm1, %v2742_v48 }
 0x15f   :  { %v5001_v61 = vmax.f32 %v575_v56, %v1131_v57  ;;  %v469_v3 = vadd.f32 %v5006_v2, %v468_v58  ;;  %v1025_v5 = vadd.f32 %v5006_v2, %v1024_v46  ;;  %3500 = vmatprep.mubr.msk.f32.mxu0 %vm3717_vm2, %v3716_v0  ;;  %3667 = vmatprep.mubr.msk.f32.mxu1 %vm3717_vm2, %v3716_v0  ;;  %v2646_v56 = vld [vmem:[%s5597_s0 + $0x430] sm:$0xff]  ;;  %v2745_v57 = vld [vmem:[%s5597_s0 + $0x5b8] sm:$0xff] }
 0x160   :  { %v3168_v11 = vpop.f32.mrf.mxu0  ;;  %v3335_v12 = vpop.f32.mrf.mxu1 }
 0x161   :  { %v576_v15 = vmax.f32 %v469_v3, 0.0  ;;  %v1132_v16 = vmax.f32 %v1025_v5, 0.0 }
 0x162   :  { %v473_v22 = vpop.f32.mrf.mxu0  ;;  %v1029_v23 = vpop.f32.mrf.mxu1  ;;  %3501 = vmatmul.mubr.msk.f32.gmra.mxu0 %vm80_vm1, %v2644_v8  ;;  %3668 = vmatmul.mubr.msk.f32.gmra.mxu1 %vm80_vm1, %v2743_v10 }
 0x163   :  { %v5022_v24 = vmax.f32 %v576_v15, %v1132_v16  ;;  %v474_v28 = vadd.f32 %v5006_v2, %v473_v22  ;;  %v1030_v30 = vadd.f32 %v5006_v2, %v1029_v23  ;;  %3503 = vmatprep.mubr.msk.f32.mxu0 %vm3717_vm2, %v3716_v0  ;;  %3670 = vmatprep.mubr.msk.f32.mxu1 %vm3717_vm2, %v3716_v0  ;;  %v2647_v16 = vld [vmem:[%s5597_s0 + $0x438] sm:$0xff]  ;;  %v2746_v22 = vld [vmem:[%s5597_s0 + $0x5c0] sm:$0xff] }
 0x164   :  { %v3171_v33 = vpop.f32.mrf.mxu0  ;;  %v3338_v34 = vpop.f32.mrf.mxu1 }
 0x165   :  { %v577_v38 = vmax.f32 %v474_v28, 0.0  ;;  %v1133_v43 = vmax.f32 %v1030_v30, 0.0 }
 0x166   :  { %v478_v45 = vpop.f32.mrf.mxu0  ;;  %v1034_v47 = vpop.f32.mrf.mxu1  ;;  %3504 = vmatmul.mubr.msk.f32.gmra.mxu0 %vm80_vm1, %v2645_v31  ;;  %3671 = vmatmul.mubr.msk.f32.gmra.mxu1 %vm80_vm1, %v2744_v32 }
 0x167   :  { %v5038_v48 = vmax.f32 %v577_v38, %v1133_v43  ;;  %v479_v49 = vadd.f32 %v5006_v2, %v478_v45  ;;  %v1035_v53 = vadd.f32 %v5006_v2, %v1034_v47  ;;  %3506 = vmatprep.mubr.msk.f32.mxu0 %vm3717_vm2, %v3716_v0  ;;  %3673 = vmatprep.mubr.msk.f32.mxu1 %vm3717_vm2, %v3716_v0  ;;  %v2648_v45 = vld [vmem:[%s5597_s0 + $0x440] sm:$0xff]  ;;  %v2747_v47 = vld [vmem:[%s5597_s0 + $0x5c8] sm:$0xff] }
 0x168   :  { %v3174_v58 = vpop.f32.mrf.mxu0  ;;  %v3341_v46 = vpop.f32.mrf.mxu1 }
 0x169   :  { %v578_v3 = vmax.f32 %v479_v49, 0.0  ;;  %v1134_v5 = vmax.f32 %v1035_v53, 0.0 }
 0x16a   :  { %v483_v8 = vpop.f32.mrf.mxu0  ;;  %v1039_v10 = vpop.f32.mrf.mxu1  ;;  %3507 = vmatmul.mubr.msk.f32.gmra.mxu0 %vm80_vm1, %v2646_v56  ;;  %3674 = vmatmul.mubr.msk.f32.gmra.mxu1 %vm80_vm1, %v2745_v57 }
 0x16b   :  { %v5054_v11 = vmax.f32 %v578_v3, %v1134_v5  ;;  %v484_v12 = vadd.f32 %v5006_v2, %v483_v8  ;;  %v1040_v15 = vadd.f32 %v5006_v2, %v1039_v10  ;;  %3509 = vmatprep.mubr.msk.f32.mxu0 %vm3717_vm2, %v3716_v0  ;;  %3676 = vmatprep.mubr.msk.f32.mxu1 %vm3717_vm2, %v3716_v0  ;;  %v2649_v10 = vld [vmem:[%s5597_s0 + $0x448] sm:$0xff] }
 0x16c   :  { %v3177_v23 = vpop.f32.mrf.mxu0  ;;  %v3344_v28 = vpop.f32.mrf.mxu1 }
 0x16d   :  { %v579_v30 = vmax.f32 %v484_v12, 0.0  ;;  %v1135_v31 = vmax.f32 %v1040_v15, 0.0  ;;  %v2748_v12 = vld [vmem:[%s5597_s0 + $0x5d0] sm:$0xff] }
 0x16e   :  { %v488_v32 = vpop.f32.mrf.mxu0  ;;  %v1044_v33 = vpop.f32.mrf.mxu1  ;;  %3510 = vmatmul.mubr.msk.f32.gmra.mxu0 %vm80_vm1, %v2647_v16  ;;  %3677 = vmatmul.mubr.msk.f32.gmra.mxu1 %vm80_vm1, %v2746_v22 }
 0x16f   :  { %v5070_v34 = vmax.f32 %v579_v30, %v1135_v31  ;;  %v489_v38 = vadd.f32 %v5006_v2, %v488_v32  ;;  %v1045_v43 = vadd.f32 %v5006_v2, %v1044_v33  ;;  %3512 = vmatprep.mubr.msk.f32.mxu0 %vm3717_vm2, %v3716_v0  ;;  %3679 = vmatprep.mubr.msk.f32.mxu1 %vm3717_vm2, %v3716_v0 }
 0x170   :  { %v3180_v49 = vpop.f32.mrf.mxu0  ;;  %v3347_v53 = vpop.f32.mrf.mxu1 }
 0x171   :  { %v580_v56 = vmax.f32 %v489_v38, 0.0  ;;  %v1136_v57 = vmax.f32 %v1045_v43, 0.0  ;;  %v2650_v38 = vld [vmem:[%s5597_s0 + $0x450] sm:$0xff]  ;;  %v2749_v43 = vld [vmem:[%s5597_s0 + $0x5d8] sm:$0xff] }
 0x172   :  { %v493_v58 = vpop.f32.mrf.mxu0  ;;  %v1049_v46 = vpop.f32.mrf.mxu1  ;;  %3513 = vmatmul.mubr.msk.f32.gmra.mxu0 %vm80_vm1, %v2648_v45  ;;  %3680 = vmatmul.mubr.msk.f32.gmra.mxu1 %vm80_vm1, %v2747_v47 }
 0x173   :  { %v5086_v3 = vmax.f32 %v580_v56, %v1136_v57  ;;  %v494_v5 = vadd.f32 %v5006_v2, %v493_v58  ;;  %v1050_v8 = vadd.f32 %v5006_v2, %v1049_v46  ;;  %3515 = vmatprep.mubr.msk.f32.mxu0 %vm3717_vm2, %v3716_v0  ;;  %3682 = vmatprep.mubr.msk.f32.mxu1 %vm3717_vm2, %v3716_v0 }
 0x174   :  { %v3183_v15 = vpop.f32.mrf.mxu0  ;;  %v3350_v16 = vpop.f32.mrf.mxu1 }
 0x175   :  { %v581_v22 = vmax.f32 %v494_v5, 0.0  ;;  %v1137_v23 = vmax.f32 %v1050_v8, 0.0  ;;  %v2651_v8 = vld [vmem:[%s5597_s0 + $0x458] sm:$0xff] }
 0x176   :  { %v498_v28 = vpop.f32.mrf.mxu0  ;;  %v1054_v30 = vpop.f32.mrf.mxu1  ;;  %3516 = vmatmul.mubr.msk.f32.gmra.mxu0 %vm80_vm1, %v2649_v10  ;;  %3683 = vmatmul.mubr.msk.f32.gmra.mxu1 %vm80_vm1, %v2748_v12  ;;  %v2750_v10 = vld [vmem:[%s5597_s0 + $0x5e0] sm:$0xff] }
 0x177   :  { %v5102_v31 = vmax.f32 %v581_v22, %v1137_v23  ;;  %v499_v32 = vadd.f32 %v5006_v2, %v498_v28  ;;  %v1055_v33 = vadd.f32 %v5006_v2, %v1054_v30  ;;  %3518 = vmatprep.mubr.msk.f32.mxu0 %vm3717_vm2, %v3716_v0  ;;  %3685 = vmatprep.mubr.msk.f32.mxu1 %vm3717_vm2, %v3716_v0 }
 0x178   :  { %v3186_v45 = vpop.f32.mrf.mxu0  ;;  %v3353_v47 = vpop.f32.mrf.mxu1 }
 0x179   :  { %v582_v49 = vmax.f32 %v499_v32, 0.0  ;;  %v1138_v53 = vmax.f32 %v1055_v33, 0.0 }
 0x17a   :  { %v503_v56 = vpop.f32.mrf.mxu0  ;;  %v1059_v57 = vpop.f32.mrf.mxu1  ;;  %3519 = vmatmul.mubr.msk.f32.gmra.mxu0 %vm80_vm1, %v2650_v38  ;;  %3686 = vmatmul.mubr.msk.f32.gmra.mxu1 %vm80_vm1, %v2749_v43  ;;  %v2652_v38 = vld [vmem:[%s5597_s0 + $0x460] sm:$0xff]  ;;  %v2751_v43 = vld [vmem:[%s5597_s0 + $0x5e8] sm:$0xff] }
 0x17b   :  { %v5118_v58 = vmax.f32 %v582_v49, %v1138_v53  ;;  %v504_v46 = vadd.f32 %v5006_v2, %v503_v56  ;;  %v1060_v5 = vadd.f32 %v5006_v2, %v1059_v57  ;;  %3521 = vmatprep.mubr.msk.f32.mxu0 %vm3717_vm2, %v3716_v0  ;;  %3688 = vmatprep.mubr.msk.f32.mxu1 %vm3717_vm2, %v3716_v0 }
 0x17c   :  { %v3189_v12 = vpop.f32.mrf.mxu0  ;;  %v3356_v15 = vpop.f32.mrf.mxu1 }
 0x17d   :  { %v583_v16 = vmax.f32 %v504_v46, 0.0  ;;  %v1139_v22 = vmax.f32 %v1060_v5, 0.0  ;;  %v2752_v12 = vld [vmem:[%s5597_s0 + $0x5f0] sm:$0xff] }
 0x17e   :  { %v508_v23 = vpop.f32.mrf.mxu0  ;;  %v1064_v28 = vpop.f32.mrf.mxu1  ;;  %3522 = vmatmul.mubr.msk.f32.gmra.mxu0 %vm80_vm1, %v2651_v8  ;;  %3689 = vmatmul.mubr.msk.f32.gmra.mxu1 %vm80_vm1, %v2750_v10  ;;  %v2653_v10 = vld [vmem:[%s5597_s0 + $0x468] sm:$0xff] }
 0x17f   :  { %v5134_v30 = vmax.f32 %v583_v16, %v1139_v22  ;;  %v509_v32 = vadd.f32 %v5006_v2, %v508_v23  ;;  %v1065_v33 = vadd.f32 %v5006_v2, %v1064_v28  ;;  %3524 = vmatprep.mubr.msk.f32.mxu0 %vm3717_vm2, %v3716_v0  ;;  %3691 = vmatprep.mubr.msk.f32.mxu1 %vm3717_vm2, %v3716_v0 }
 0x180   :  { %v3192_v45 = vpop.f32.mrf.mxu0  ;;  %v3359_v47 = vpop.f32.mrf.mxu1 }
 0x181   :  { %v584_v49 = vmax.f32 %v509_v32, 0.0  ;;  %v1140_v53 = vmax.f32 %v1065_v33, 0.0  ;;  %v2654_v45 = vld [vmem:[%s5597_s0 + $0x470] sm:$0xff]  ;;  %v2753_v47 = vld [vmem:[%s5597_s0 + $0x5f8] sm:$0xff] }
 0x182   :  { %v513_v56 = vpop.f32.mrf.mxu0  ;;  %v1069_v57 = vpop.f32.mrf.mxu1  ;;  %3525 = vmatmul.mubr.msk.f32.gmra.mxu0 %vm80_vm1, %v2652_v38  ;;  %3692 = vmatmul.mubr.msk.f32.gmra.mxu1 %vm80_vm1, %v2751_v43 }
 0x183   :  { %v5150_v46 = vmax.f32 %v584_v49, %v1140_v53  ;;  %v514_v5 = vadd.f32 %v5006_v2, %v513_v56  ;;  %v1070_v8 = vadd.f32 %v5006_v2, %v1069_v57  ;;  %3527 = vmatprep.mubr.msk.f32.mxu0 %vm3717_vm2, %v3716_v0  ;;  %3694 = vmatprep.mubr.msk.f32.mxu1 %vm3717_vm2, %v3716_v0 }
 0x184   :  { %v3195_v15 = vpop.f32.mrf.mxu0  ;;  %v3362_v16 = vpop.f32.mrf.mxu1 }
 0x185   :  { %v585_v22 = vmax.f32 %v514_v5, 0.0  ;;  %v1141_v23 = vmax.f32 %v1070_v8, 0.0  ;;  %v2655_v16 = vld [vmem:[%s5597_s0 + $0x478] sm:$0xff] }
 0x186   :  { %v518_v28 = vpop.f32.mrf.mxu0  ;;  %v1074_v32 = vpop.f32.mrf.mxu1  ;;  %3528 = vmatmul.mubr.msk.f32.gmra.mxu0 %vm80_vm1, %v2653_v10  ;;  %3695 = vmatmul.mubr.msk.f32.gmra.mxu1 %vm80_vm1, %v2752_v12 }
 0x187   :  { %v5166_v33 = vmax.f32 %v585_v22, %v1141_v23  ;;  %v519_v38 = vadd.f32 %v5006_v2, %v518_v28  ;;  %v1075_v43 = vadd.f32 %v5006_v2, %v1074_v32  ;;  %3530 = vmatprep.mubr.msk.f32.mxu0 %vm3717_vm2, %v3716_v0  ;;  %3697 = vmatprep.mubr.msk.f32.mxu1 %vm3717_vm2, %v3716_v0  ;;  %v2754_v22 = vld [vmem:[%s5597_s0 + $0x600] sm:$0xff] }
 0x188   :  { %v3198_v49 = vpop.f32.mrf.mxu0  ;;  %v3365_v53 = vpop.f32.mrf.mxu1 }
 0x189   :  { %v586_v56 = vmax.f32 %v519_v38, 0.0  ;;  %v1142_v57 = vmax.f32 %v1075_v43, 0.0 }
 0x18a   :  { %v523_v5 = vpop.f32.mrf.mxu0  ;;  %v1079_v8 = vpop.f32.mrf.mxu1  ;;  %3531 = vmatmul.mubr.msk.f32.gmra.mxu0 %vm80_vm1, %v2654_v45  ;;  %3698 = vmatmul.mubr.msk.f32.gmra.mxu1 %vm80_vm1, %v2753_v47 }
 0x18b   :  { %v5182_v10 = vmax.f32 %v586_v56, %v1142_v57  ;;  %v524_v12 = vadd.f32 %v5006_v2, %v523_v5  ;;  %v1080_v15 = vadd.f32 %v5006_v2, %v1079_v8  ;;  %3533 = vmatprep.mubr.msk.f32.mxu0 %vm3717_vm2, %v3716_v0  ;;  %3700 = vmatprep.mubr.msk.f32.mxu1 %vm3717_vm2, %v3716_v0  ;;  %v2656_v56 = vld [vmem:[%s5597_s0 + $0x480] sm:$0xff]  ;;  %v2755_v57 = vld [vmem:[%s5597_s0 + $0x608] sm:$0xff] }
 0x18c   :  { %v3201_v23 = vpop.f32.mrf.mxu0  ;;  %v3368_v28 = vpop.f32.mrf.mxu1 }
 0x18d   :  { %v587_v32 = vmax.f32 %v524_v12, 0.0  ;;  %v1143_v38 = vmax.f32 %v1080_v15, 0.0 }
 0x18e   :  { %v528_v43 = vpop.f32.mrf.mxu0  ;;  %v1084_v45 = vpop.f32.mrf.mxu1  ;;  %3534 = vmatmul.mubr.msk.f32.gmra.mxu0 %vm80_vm1, %v2655_v16  ;;  %3701 = vmatmul.mubr.msk.f32.gmra.mxu1 %vm80_vm1, %v2754_v22 }
 0x18f   :  { %v5198_v47 = vmax.f32 %v587_v32, %v1143_v38  ;;  %v529_v49 = vadd.f32 %v5006_v2, %v528_v43  ;;  %v1085_v53 = vadd.f32 %v5006_v2, %v1084_v45  ;;  %3536 = vmatprep.mubr.msk.f32.mxu0 %vm3717_vm2, %v3716_v0  ;;  %3703 = vmatprep.mubr.msk.f32.mxu1 %vm3717_vm2, %v3716_v0  ;;  %v2657_v38 = vld [vmem:[%s5597_s0 + $0x488] sm:$0xff]  ;;  %v2756_v43 = vld [vmem:[%s5597_s0 + $0x610] sm:$0xff] }
 0x190   :  { %v3204_v5 = vpop.f32.mrf.mxu0  ;;  %v3371_v8 = vpop.f32.mrf.mxu1 }
 0x191   :  { %5600 = vst [vmem:[#allocation2_spill] sm:$0xff] %v5198_v47  ;;  %v588_v12 = vmax.f32 %v529_v49, 0.0  ;;  %v1144_v15 = vmax.f32 %v1085_v53, 0.0 }
 0x192   :  { %v533_v16 = vpop.f32.mrf.mxu0  ;;  %v1089_v22 = vpop.f32.mrf.mxu1  ;;  %3537 = vmatmul.mubr.msk.f32.gmra.mxu0 %vm80_vm1, %v2656_v56  ;;  %3704 = vmatmul.mubr.msk.f32.gmra.mxu1 %vm80_vm1, %v2755_v57 }
 0x193   :  { %v5214_v23 = vmax.f32 %v588_v12, %v1144_v15  ;;  %v534_v28 = vadd.f32 %v5006_v2, %v533_v16  ;;  %v1090_v32 = vadd.f32 %v5006_v2, %v1089_v22  ;;  %3539 = vmatprep.mubr.msk.f32.mxu0 %vm3717_vm2, %v3716_v0  ;;  %3706 = vmatprep.mubr.msk.f32.mxu1 %vm3717_vm2, %v3716_v0  ;;  %v2658_v16 = vld [vmem:[%s5597_s0 + $0x490] sm:$0xff]  ;;  %v2757_v22 = vld [vmem:[%s5597_s0 + $0x618] sm:$0xff] }
 0x194   :  { %v3207_v45 = vpop.f32.mrf.mxu0  ;;  %v3374_v49 = vpop.f32.mrf.mxu1 }
 0x195   :  { %5601 = vst [vmem:[#allocation3_spill] sm:$0xff] %v5214_v23  ;;  %v589_v53 = vmax.f32 %v534_v28, 0.0  ;;  %v1145_v56 = vmax.f32 %v1090_v32, 0.0 }
 0x196   :  { %v538_v57 = vpop.f32.mrf.mxu0  ;;  %v1094_v5 = vpop.f32.mrf.mxu1  ;;  %3540 = vmatmul.mubr.msk.f32.gmra.mxu0 %vm80_vm1, %v2657_v38  ;;  %3707 = vmatmul.mubr.msk.f32.gmra.mxu1 %vm80_vm1, %v2756_v43 }
 0x197   :  { %v5230_v8 = vmax.f32 %v589_v53, %v1145_v56  ;;  %v539_v12 = vadd.f32 %v5006_v2, %v538_v57  ;;  %v1095_v15 = vadd.f32 %v5006_v2, %v1094_v5  ;;  %3542 = vmatprep.mubr.msk.f32.mxu0 %vm3717_vm2, %v3716_v0  ;;  %3709 = vmatprep.mubr.msk.f32.mxu1 %vm3717_vm2, %v3716_v0 }
 0x198   :  { %v3210_v28 = vpop.f32.mrf.mxu0  ;;  %v3377_v32 = vpop.f32.mrf.mxu1 }
 0x199   :  { %5602 = vst [vmem:[#allocation4_spill] sm:$0xff] %v5230_v8  ;;  %v590_v38 = vmax.f32 %v539_v12, 0.0  ;;  %v1146_v43 = vmax.f32 %v1095_v15, 0.0 }
 0x19a   :  { %v1459_v45 = vpop.f32.mrf.mxu0  ;;  %3543 = vmatmul.mubr.msk.f32.gmra.mxu0 %vm80_vm1, %v2658_v16  ;;  %v2015_v49 = vpop.f32.mrf.mxu1  ;;  %3710 = vmatmul.mubr.msk.f32.gmra.mxu1 %vm80_vm1, %v2757_v22 }
 0x19b   :  { %v5246_v53 = vmax.f32 %v590_v38, %v1146_v43  ;;  %v1460_v0 = vadd.f32 %v5006_v2, %v1459_v45  ;;  %v2016_v56 = vadd.f32 %v5006_v2, %v2015_v49 }
 0x19c   :  { %v3400_v57 = vpop.f32.mrf.mxu0  ;;  %v3567_v5 = vpop.f32.mrf.mxu1 }
 0x19d   :  { %5603 = vst [vmem:[#allocation5_spill] sm:$0xff] %v5246_v53  ;;  %v1703_v8 = vmax.f32 %v1460_v0, 0.0  ;;  %v2259_v23 = vmax.f32 %v2016_v56, 0.0 }
 0x19e   :  { %v1464_v28 = vpop.f32.mrf.mxu0  ;;  %v2020_v32 = vpop.f32.mrf.mxu1 }
 0x19f   :  { %v2308_v12 = vmax.f32 %v1703_v8, %v2259_v23  ;;  %v1465_v15 = vadd.f32 %v5006_v2, %v1464_v28  ;;  %v2021_v16 = vadd.f32 %v5006_v2, %v2020_v32 }
 0x1a0   :  { %v3403_v47 = vpop.f32.mrf.mxu0  ;;  %v3570_v22 = vpop.f32.mrf.mxu1 }
 0x1a1   :  { %v2357_v38 = vmax.f32 %v4473_v59, %v2308_v12  ;;  %v1704_v43 = vmax.f32 %v1465_v15, 0.0  ;;  %v2260_v45 = vmax.f32 %v2021_v16, 0.0 }
 0x1a2   :  { %v1469_v53 = vpop.f32.mrf.mxu0  ;;  %v2025_v49 = vpop.f32.mrf.mxu1 }
 0x1a3   :  { %2407 = vst.msk [vmem:[%s5599_s3] sm:$0xff] %vm2406_vm3, %v2357_v38  ;;  %v2309_v0 = vmax.f32 %v1704_v43, %v2260_v45  ;;  %v1470_v23 = vadd.f32 %v5006_v2, %v1469_v53  ;;  %v2026_v8 = vadd.f32 %v5006_v2, %v2025_v49 }
 0x1a4   :  { %v3406_v56 = vpop.f32.mrf.mxu0  ;;  %v3573_v57 = vpop.f32.mrf.mxu1 }
 0x1a5   :  { %v2358_v47 = vmax.f32 %v4489_v7, %v2309_v0  ;;  %v1705_v5 = vmax.f32 %v1470_v23, 0.0  ;;  %v2261_v59 = vmax.f32 %v2026_v8, 0.0 }
 0x1a6   :  { %v1474_v28 = vpop.f32.mrf.mxu0  ;;  %v2030_v32 = vpop.f32.mrf.mxu1 }
 0x1a7   :  { %2408 = vst.msk [vmem:[%s5599_s3 + $0x8] sm:$0xff] %vm2406_vm3, %v2358_v47  ;;  %v2310_v12 = vmax.f32 %v1705_v5, %v2261_v59  ;;  %v1475_v15 = vadd.f32 %v5006_v2, %v1474_v28  ;;  %v2031_v53 = vadd.f32 %v5006_v2, %v2030_v32 }
 0x1a8   :  { %v3409_v16 = vpop.f32.mrf.mxu0  ;;  %v3576_v22 = vpop.f32.mrf.mxu1 }
 0x1a9   :  { %v2359_v38 = vmax.f32 %v4505_v18, %v2310_v12  ;;  %v1706_v43 = vmax.f32 %v1475_v15, 0.0  ;;  %v2262_v7 = vmax.f32 %v2031_v53, 0.0 }
 0x1aa   :  { %v1479_v45 = vpop.f32.mrf.mxu0  ;;  %v2035_v49 = vpop.f32.mrf.mxu1 }
 0x1ab   :  { %2409 = vst.msk [vmem:[%s5599_s3 + $0x10] sm:$0xff] %vm2406_vm3, %v2359_v38  ;;  %v2311_v0 = vmax.f32 %v1706_v43, %v2262_v7  ;;  %v1480_v23 = vadd.f32 %v5006_v2, %v1479_v45  ;;  %v2036_v8 = vadd.f32 %v5006_v2, %v2035_v49 }
 0x1ac   :  { %v3412_v56 = vpop.f32.mrf.mxu0  ;;  %v3579_v57 = vpop.f32.mrf.mxu1 }
 0x1ad   :  { %v2360_v47 = vmax.f32 %v4521_v29, %v2311_v0  ;;  %v1707_v5 = vmax.f32 %v1480_v23, 0.0  ;;  %v2263_v18 = vmax.f32 %v2036_v8, 0.0 }
 0x1ae   :  { %v1484_v59 = vpop.f32.mrf.mxu0  ;;  %v2040_v28 = vpop.f32.mrf.mxu1 }
 0x1af   :  { %2410 = vst.msk [vmem:[%s5599_s3 + $0x18] sm:$0xff] %vm2406_vm3, %v2360_v47  ;;  %v2312_v32 = vmax.f32 %v1707_v5, %v2263_v18  ;;  %v1485_v12 = vadd.f32 %v5006_v2, %v1484_v59  ;;  %v2041_v15 = vadd.f32 %v5006_v2, %v2040_v28 }
 0x1b0   :  { %v3415_v53 = vpop.f32.mrf.mxu0  ;;  %v3582_v16 = vpop.f32.mrf.mxu1 }
 0x1b1   :  { %v2361_v22 = vmax.f32 %v4537_v40, %v2312_v32  ;;  %v1708_v38 = vmax.f32 %v1485_v12, 0.0  ;;  %v2264_v29 = vmax.f32 %v2041_v15, 0.0 }
 0x1b2   :  { %v1489_v43 = vpop.f32.mrf.mxu0  ;;  %v2045_v7 = vpop.f32.mrf.mxu1 }
 0x1b3   :  { %2411 = vst.msk [vmem:[%s5599_s3 + $0x20] sm:$0xff] %vm2406_vm3, %v2361_v22  ;;  %v2313_v45 = vmax.f32 %v1708_v38, %v2264_v29  ;;  %v1490_v49 = vadd.f32 %v5006_v2, %v1489_v43  ;;  %v2046_v0 = vadd.f32 %v5006_v2, %v2045_v7 }
 0x1b4   :  { %v3418_v23 = vpop.f32.mrf.mxu0  ;;  %v3585_v8 = vpop.f32.mrf.mxu1 }
 0x1b5   :  { %v2362_v56 = vmax.f32 %v4553_v52, %v2313_v45  ;;  %v1709_v57 = vmax.f32 %v1490_v49, 0.0  ;;  %v2265_v40 = vmax.f32 %v2046_v0, 0.0 }
 0x1b6   :  { %v1494_v47 = vpop.f32.mrf.mxu0  ;;  %v2050_v5 = vpop.f32.mrf.mxu1 }
 0x1b7   :  { %2412 = vst.msk [vmem:[%s5599_s3 + $0x28] sm:$0xff] %vm2406_vm3, %v2362_v56  ;;  %v2314_v18 = vmax.f32 %v1709_v57, %v2265_v40  ;;  %v1495_v59 = vadd.f32 %v5006_v2, %v1494_v47  ;;  %v2051_v28 = vadd.f32 %v5006_v2, %v2050_v5 }
 0x1b8   :  { %v3421_v32 = vpop.f32.mrf.mxu0  ;;  %v3588_v12 = vpop.f32.mrf.mxu1 }
 0x1b9   :  { %v2363_v15 = vmax.f32 %v4569_v1, %v2314_v18  ;;  %v1710_v53 = vmax.f32 %v1495_v59, 0.0  ;;  %v2266_v52 = vmax.f32 %v2051_v28, 0.0 }
 0x1ba   :  { %v1499_v16 = vpop.f32.mrf.mxu0  ;;  %v2055_v22 = vpop.f32.mrf.mxu1 }
 0x1bb   :  { %2413 = vst.msk [vmem:[%s5599_s3 + $0x30] sm:$0xff] %vm2406_vm3, %v2363_v15  ;;  %v2315_v38 = vmax.f32 %v1710_v53, %v2266_v52  ;;  %v1500_v29 = vadd.f32 %v5006_v2, %v1499_v16  ;;  %v2056_v43 = vadd.f32 %v5006_v2, %v2055_v22 }
 0x1bc   :  { %v3424_v7 = vpop.f32.mrf.mxu0  ;;  %v3591_v45 = vpop.f32.mrf.mxu1 }
 0x1bd   :  { %v2364_v49 = vmax.f32 %v4585_v13, %v2315_v38  ;;  %v1711_v0 = vmax.f32 %v1500_v29, 0.0  ;;  %v2267_v1 = vmax.f32 %v2056_v43, 0.0 }
 0x1be   :  { %v1504_v23 = vpop.f32.mrf.mxu0  ;;  %v2060_v8 = vpop.f32.mrf.mxu1 }
 0x1bf   :  { %2414 = vst.msk [vmem:[%s5599_s3 + $0x38] sm:$0xff] %vm2406_vm3, %v2364_v49  ;;  %v2316_v56 = vmax.f32 %v1711_v0, %v2267_v1  ;;  %v1505_v57 = vadd.f32 %v5006_v2, %v1504_v23  ;;  %v2061_v40 = vadd.f32 %v5006_v2, %v2060_v8 }
 0x1c0   :  { %v3427_v47 = vpop.f32.mrf.mxu0  ;;  %v3594_v5 = vpop.f32.mrf.mxu1 }
 0x1c1   :  { %v2365_v18 = vmax.f32 %v4601_v25, %v2316_v56  ;;  %v1712_v59 = vmax.f32 %v1505_v57, 0.0  ;;  %v2268_v13 = vmax.f32 %v2061_v40, 0.0 }
 0x1c2   :  { %v1509_v28 = vpop.f32.mrf.mxu0  ;;  %v2065_v32 = vpop.f32.mrf.mxu1 }
 0x1c3   :  { %2415 = vst.msk [vmem:[%s5599_s3 + $0x40] sm:$0xff] %vm2406_vm3, %v2365_v18  ;;  %v2317_v12 = vmax.f32 %v1712_v59, %v2268_v13  ;;  %v1510_v15 = vadd.f32 %v5006_v2, %v1509_v28  ;;  %v2066_v53 = vadd.f32 %v5006_v2, %v2065_v32 }
 0x1c4   :  { %v3430_v52 = vpop.f32.mrf.mxu0  ;;  %v3597_v16 = vpop.f32.mrf.mxu1 }
 0x1c5   :  { %v2366_v22 = vmax.f32 %v4617_v37, %v2317_v12  ;;  %v1713_v38 = vmax.f32 %v1510_v15, 0.0  ;;  %v2269_v25 = vmax.f32 %v2066_v53, 0.0 }
 0x1c6   :  { %v1514_v29 = vpop.f32.mrf.mxu0  ;;  %v2070_v43 = vpop.f32.mrf.mxu1 }
 0x1c7   :  { %2416 = vst.msk [vmem:[%s5599_s3 + $0x48] sm:$0xff] %vm2406_vm3, %v2366_v22  ;;  %v2318_v7 = vmax.f32 %v1713_v38, %v2269_v25  ;;  %v1515_v45 = vadd.f32 %v5006_v2, %v1514_v29  ;;  %v2071_v49 = vadd.f32 %v5006_v2, %v2070_v43 }
 0x1c8   :  { %v3433_v0 = vpop.f32.mrf.mxu0  ;;  %v3600_v1 = vpop.f32.mrf.mxu1 }
 0x1c9   :  { %v2367_v23 = vmax.f32 %v4633_v50, %v2318_v7  ;;  %v1714_v8 = vmax.f32 %v1515_v45, 0.0  ;;  %v2270_v37 = vmax.f32 %v2071_v49, 0.0 }
 0x1ca   :  { %v1519_v56 = vpop.f32.mrf.mxu0  ;;  %v2075_v57 = vpop.f32.mrf.mxu1 }
 0x1cb   :  { %2417 = vst.msk [vmem:[%s5599_s3 + $0x50] sm:$0xff] %vm2406_vm3, %v2367_v23  ;;  %v2319_v40 = vmax.f32 %v1714_v8, %v2270_v37  ;;  %v1520_v47 = vadd.f32 %v5006_v2, %v1519_v56  ;;  %v2076_v5 = vadd.f32 %v5006_v2, %v2075_v57 }
 0x1cc   :  { %v3436_v18 = vpop.f32.mrf.mxu0  ;;  %v3603_v59 = vpop.f32.mrf.mxu1 }
 0x1cd   :  { %v2368_v13 = vmax.f32 %v4649_v63, %v2319_v40  ;;  %v1715_v28 = vmax.f32 %v1520_v47, 0.0  ;;  %v2271_v50 = vmax.f32 %v2076_v5, 0.0 }
 0x1ce   :  { %v1524_v32 = vpop.f32.mrf.mxu0  ;;  %v2080_v12 = vpop.f32.mrf.mxu1 }
 0x1cf   :  { %2418 = vst.msk [vmem:[%s5599_s3 + $0x58] sm:$0xff] %vm2406_vm3, %v2368_v13  ;;  %v2320_v15 = vmax.f32 %v1715_v28, %v2271_v50  ;;  %v1525_v53 = vadd.f32 %v5006_v2, %v1524_v32  ;;  %v2081_v52 = vadd.f32 %v5006_v2, %v2080_v12 }
 0x1d0   :  { %v3439_v16 = vpop.f32.mrf.mxu0  ;;  %v3606_v22 = vpop.f32.mrf.mxu1 }
 0x1d1   :  { %v2369_v38 = vmax.f32 %v4665_v14, %v2320_v15  ;;  %v1716_v25 = vmax.f32 %v1525_v53, 0.0  ;;  %v2272_v63 = vmax.f32 %v2081_v52, 0.0 }
 0x1d2   :  { %v1529_v29 = vpop.f32.mrf.mxu0  ;;  %v2085_v43 = vpop.f32.mrf.mxu1 }
 0x1d3   :  { %2419 = vst.msk [vmem:[%s5599_s3 + $0x60] sm:$0xff] %vm2406_vm3, %v2369_v38  ;;  %v2321_v7 = vmax.f32 %v1716_v25, %v2272_v63  ;;  %v1530_v45 = vadd.f32 %v5006_v2, %v1529_v29  ;;  %v2086_v49 = vadd.f32 %v5006_v2, %v2085_v43 }
 0x1d4   :  { %v3442_v0 = vpop.f32.mrf.mxu0  ;;  %v3609_v1 = vpop.f32.mrf.mxu1 }
 0x1d5   :  { %v2370_v23 = vmax.f32 %v4681_v27, %v2321_v7  ;;  %v1717_v8 = vmax.f32 %v1530_v45, 0.0  ;;  %v2273_v14 = vmax.f32 %v2086_v49, 0.0 }
 0x1d6   :  { %v1534_v37 = vpop.f32.mrf.mxu0  ;;  %v2090_v56 = vpop.f32.mrf.mxu1 }
 0x1d7   :  { %2420 = vst.msk [vmem:[%s5599_s3 + $0x68] sm:$0xff] %vm2406_vm3, %v2370_v23  ;;  %v2322_v57 = vmax.f32 %v1717_v8, %v2273_v14  ;;  %v1535_v40 = vadd.f32 %v5006_v2, %v1534_v37  ;;  %v2091_v47 = vadd.f32 %v5006_v2, %v2090_v56 }
 0x1d8   :  { %v3445_v5 = vpop.f32.mrf.mxu0  ;;  %v3612_v18 = vpop.f32.mrf.mxu1 }
 0x1d9   :  { %v2371_v59 = vmax.f32 %v4697_v41, %v2322_v57  ;;  %v1718_v13 = vmax.f32 %v1535_v40, 0.0  ;;  %v2274_v27 = vmax.f32 %v2091_v47, 0.0 }
 0x1da   :  { %v1539_v28 = vpop.f32.mrf.mxu0  ;;  %v2095_v50 = vpop.f32.mrf.mxu1 }
 0x1db   :  { %2421 = vst.msk [vmem:[%s5599_s3 + $0x70] sm:$0xff] %vm2406_vm3, %v2371_v59  ;;  %v2323_v32 = vmax.f32 %v1718_v13, %v2274_v27  ;;  %v1540_v12 = vadd.f32 %v5006_v2, %v1539_v28  ;;  %v2096_v15 = vadd.f32 %v5006_v2, %v2095_v50 }
 0x1dc   :  { %v3448_v53 = vpop.f32.mrf.mxu0  ;;  %v3615_v52 = vpop.f32.mrf.mxu1 }
 0x1dd   :  { %v2372_v16 = vmax.f32 %v4713_v55, %v2323_v32  ;;  %v1719_v22 = vmax.f32 %v1540_v12, 0.0  ;;  %v2275_v41 = vmax.f32 %v2096_v15, 0.0 }
 0x1de   :  { %v1544_v38 = vpop.f32.mrf.mxu0  ;;  %v2100_v25 = vpop.f32.mrf.mxu1 }
 0x1df   :  { %2422 = vst.msk [vmem:[%s5599_s3 + $0x78] sm:$0xff] %vm2406_vm3, %v2372_v16  ;;  %v2324_v63 = vmax.f32 %v1719_v22, %v2275_v41  ;;  %v1545_v29 = vadd.f32 %v5006_v2, %v1544_v38  ;;  %v2101_v43 = vadd.f32 %v5006_v2, %v2100_v25 }
 0x1e0   :  { %v3451_v7 = vpop.f32.mrf.mxu0  ;;  %v3618_v45 = vpop.f32.mrf.mxu1 }
 0x1e1   :  { %v2373_v49 = vmax.f32 %v4729_v6, %v2324_v63  ;;  %v1720_v0 = vmax.f32 %v1545_v29, 0.0  ;;  %v2276_v55 = vmax.f32 %v2101_v43, 0.0 }
 0x1e2   :  { %v1549_v1 = vpop.f32.mrf.mxu0  ;;  %v2105_v23 = vpop.f32.mrf.mxu1 }
 0x1e3   :  { %2423 = vst.msk [vmem:[%s5599_s3 + $0x80] sm:$0xff] %vm2406_vm3, %v2373_v49  ;;  %v2325_v8 = vmax.f32 %v1720_v0, %v2276_v55  ;;  %v1550_v14 = vadd.f32 %v5006_v2, %v1549_v1  ;;  %v2106_v37 = vadd.f32 %v5006_v2, %v2105_v23 }
 0x1e4   :  { %v3454_v56 = vpop.f32.mrf.mxu0  ;;  %v3621_v57 = vpop.f32.mrf.mxu1 }
 0x1e5   :  { %v2374_v40 = vmax.f32 %v4745_v21, %v2325_v8  ;;  %v1721_v47 = vmax.f32 %v1550_v14, 0.0  ;;  %v2277_v6 = vmax.f32 %v2106_v37, 0.0 }
 0x1e6   :  { %v1554_v5 = vpop.f32.mrf.mxu0  ;;  %v2110_v18 = vpop.f32.mrf.mxu1 }
 0x1e7   :  { %2424 = vst.msk [vmem:[%s5599_s3 + $0x88] sm:$0xff] %vm2406_vm3, %v2374_v40  ;;  %v2326_v59 = vmax.f32 %v1721_v47, %v2277_v6  ;;  %v1555_v13 = vadd.f32 %v5006_v2, %v1554_v5  ;;  %v2111_v27 = vadd.f32 %v5006_v2, %v2110_v18 }
 0x1e8   :  { %v3457_v28 = vpop.f32.mrf.mxu0  ;;  %v3624_v50 = vpop.f32.mrf.mxu1 }
 0x1e9   :  { %v2375_v32 = vmax.f32 %v4761_v35, %v2326_v59  ;;  %v1722_v12 = vmax.f32 %v1555_v13, 0.0  ;;  %v2278_v21 = vmax.f32 %v2111_v27, 0.0 }
 0x1ea   :  { %v1559_v15 = vpop.f32.mrf.mxu0  ;;  %v2115_v53 = vpop.f32.mrf.mxu1 }
 0x1eb   :  { %2425 = vst.msk [vmem:[%s5599_s3 + $0x90] sm:$0xff] %vm2406_vm3, %v2375_v32  ;;  %v2327_v52 = vmax.f32 %v1722_v12, %v2278_v21  ;;  %v1560_v16 = vadd.f32 %v5006_v2, %v1559_v15  ;;  %v2116_v22 = vadd.f32 %v5006_v2, %v2115_v53 }
 0x1ec   :  { %v3460_v41 = vpop.f32.mrf.mxu0  ;;  %v3627_v38 = vpop.f32.mrf.mxu1 }
 0x1ed   :  { %v2376_v25 = vmax.f32 %v4777_v51, %v2327_v52  ;;  %v1723_v63 = vmax.f32 %v1560_v16, 0.0  ;;  %v2279_v35 = vmax.f32 %v2116_v22, 0.0 }
 0x1ee   :  { %v1564_v29 = vpop.f32.mrf.mxu0  ;;  %v2120_v43 = vpop.f32.mrf.mxu1 }
 0x1ef   :  { %2426 = vst.msk [vmem:[%s5599_s3 + $0x98] sm:$0xff] %vm2406_vm3, %v2376_v25  ;;  %v2328_v7 = vmax.f32 %v1723_v63, %v2279_v35  ;;  %v1565_v45 = vadd.f32 %v5006_v2, %v1564_v29  ;;  %v2121_v49 = vadd.f32 %v5006_v2, %v2120_v43 }
 0x1f0   :  { %v3463_v0 = vpop.f32.mrf.mxu0  ;;  %v3630_v55 = vpop.f32.mrf.mxu1 }
 0x1f1   :  { %v2377_v1 = vmax.f32 %v4793_v4, %v2328_v7  ;;  %v1724_v23 = vmax.f32 %v1565_v45, 0.0  ;;  %v2280_v51 = vmax.f32 %v2121_v49, 0.0 }
 0x1f2   :  { %v1569_v8 = vpop.f32.mrf.mxu0  ;;  %v2125_v14 = vpop.f32.mrf.mxu1 }
 0x1f3   :  { %2427 = vst.msk [vmem:[%s5599_s3 + $0xa0] sm:$0xff] %vm2406_vm3, %v2377_v1  ;;  %v2329_v37 = vmax.f32 %v1724_v23, %v2280_v51  ;;  %v1570_v56 = vadd.f32 %v5006_v2, %v1569_v8  ;;  %v2126_v57 = vadd.f32 %v5006_v2, %v2125_v14 }
 0x1f4   :  { %v3466_v40 = vpop.f32.mrf.mxu0  ;;  %v3633_v47 = vpop.f32.mrf.mxu1 }
 0x1f5   :  { %v2378_v6 = vmax.f32 %v4809_v20, %v2329_v37  ;;  %v1725_v5 = vmax.f32 %v1570_v56, 0.0  ;;  %v2281_v4 = vmax.f32 %v2126_v57, 0.0  ;;  %v5429_v37 = vld [vmem:[%s5598_s2] ss:$0 sm:$0xff] }
 0x1f6   :  { %v1574_v18 = vpop.f32.mrf.mxu0  ;;  %v2130_v59 = vpop.f32.mrf.mxu1 }
 0x1f7   :  { %2428 = vst.msk [vmem:[%s5599_s3 + $0xa8] sm:$0xff] %vm2406_vm3, %v2378_v6  ;;  %v2330_v13 = vmax.f32 %v1725_v5, %v2281_v4  ;;  %v1575_v27 = vadd.f32 %v5006_v2, %v1574_v18  ;;  %v2131_v28 = vadd.f32 %v5006_v2, %v2130_v59 }
 0x1f8   :  { %v3469_v50 = vpop.f32.mrf.mxu0  ;;  %v3636_v32 = vpop.f32.mrf.mxu1 }
 0x1f9   :  { %v2379_v12 = vmax.f32 %v4825_v36, %v2330_v13  ;;  %v1726_v21 = vmax.f32 %v1575_v27, 0.0  ;;  %v2282_v20 = vmax.f32 %v2131_v28, 0.0 }
 0x1fa   :  { %v1579_v15 = vpop.f32.mrf.mxu0  ;;  %v2135_v53 = vpop.f32.mrf.mxu1 }
 0x1fb   :  { %2429 = vst.msk [vmem:[%s5599_s3 + $0xb0] sm:$0xff] %vm2406_vm3, %v2379_v12  ;;  %v2331_v52 = vmax.f32 %v1726_v21, %v2282_v20  ;;  %v1580_v16 = vadd.f32 %v5006_v2, %v1579_v15  ;;  %v2136_v22 = vadd.f32 %v5006_v2, %v2135_v53 }
 0x1fc   :  { %v3472_v41 = vpop.f32.mrf.mxu0  ;;  %v3639_v38 = vpop.f32.mrf.mxu1 }
 0x1fd   :  { %v2380_v25 = vmax.f32 %v4841_v54, %v2331_v52  ;;  %v1727_v63 = vmax.f32 %v1580_v16, 0.0  ;;  %v2283_v36 = vmax.f32 %v2136_v22, 0.0 }
 0x1fe   :  { %v1584_v35 = vpop.f32.mrf.mxu0  ;;  %v2140_v29 = vpop.f32.mrf.mxu1 }
 0x1ff   :  { %2430 = vst.msk [vmem:[%s5599_s3 + $0xb8] sm:$0xff] %vm2406_vm3, %v2380_v25  ;;  %v2332_v43 = vmax.f32 %v1727_v63, %v2283_v36  ;;  %v1585_v7 = vadd.f32 %v5006_v2, %v1584_v35  ;;  %v2141_v45 = vadd.f32 %v5006_v2, %v2140_v29 }
 0x200   :  { %v3475_v49 = vpop.f32.mrf.mxu0  ;;  %v3642_v0 = vpop.f32.mrf.mxu1 }
 0x201   :  { %v2381_v55 = vmax.f32 %v4857_v9, %v2332_v43  ;;  %v1728_v1 = vmax.f32 %v1585_v7, 0.0  ;;  %v2284_v54 = vmax.f32 %v2141_v45, 0.0 }
 0x202   :  { %v1589_v23 = vpop.f32.mrf.mxu0  ;;  %v2145_v51 = vpop.f32.mrf.mxu1 }
 0x203   :  { %2431 = vst.msk [vmem:[%s5599_s3 + $0xc0] sm:$0xff] %vm2406_vm3, %v2381_v55  ;;  %v2333_v8 = vmax.f32 %v1728_v1, %v2284_v54  ;;  %v1590_v14 = vadd.f32 %v5006_v2, %v1589_v23  ;;  %v2146_v56 = vadd.f32 %v5429_v37, %v2145_v51 }
 0x204   :  { %v3478_v9 = vpop.f32.mrf.mxu0  ;;  %v3645_v57 = vpop.f32.mrf.mxu1 }
 0x205   :  { %v2382_v40 = vmax.f32 %v4873_v26, %v2333_v8  ;;  %v1729_v47 = vmax.f32 %v1590_v14, 0.0  ;;  %v2285_v6 = vmax.f32 %v2146_v56, 0.0 }
 0x206   :  { %v1594_v5 = vpop.f32.mrf.mxu0  ;;  %v2150_v4 = vpop.f32.mrf.mxu1 }
 0x207   :  { %2432 = vst.msk [vmem:[%s5599_s3 + $0xc8] sm:$0xff] %vm2406_vm3, %v2382_v40  ;;  %v2334_v2 = vmax.f32 %v1729_v47, %v2285_v6  ;;  %v1595_v18 = vadd.f32 %v5429_v37, %v1594_v5  ;;  %v2151_v59 = vadd.f32 %v5429_v37, %v2150_v4 }
 0x208   :  { %v3481_v13 = vpop.f32.mrf.mxu0  ;;  %v3648_v27 = vpop.f32.mrf.mxu1 }
 0x209   :  { %v2383_v28 = vmax.f32 %v4889_v44, %v2334_v2  ;;  %v1730_v50 = vmax.f32 %v1595_v18, 0.0  ;;  %v2286_v26 = vmax.f32 %v2151_v59, 0.0 }
 0x20a   :  { %v1599_v32 = vpop.f32.mrf.mxu0  ;;  %v2155_v12 = vpop.f32.mrf.mxu1 }
 0x20b   :  { %2433 = vst.msk [vmem:[%s5599_s3 + $0xd0] sm:$0xff] %vm2406_vm3, %v2383_v28  ;;  %v2335_v21 = vmax.f32 %v1730_v50, %v2286_v26  ;;  %v1600_v20 = vadd.f32 %v5429_v37, %v1599_v32  ;;  %v2156_v15 = vadd.f32 %v5429_v37, %v2155_v12 }
 0x20c   :  { %v3484_v53 = vpop.f32.mrf.mxu0  ;;  %v3651_v52 = vpop.f32.mrf.mxu1 }
 0x20d   :  { %v2384_v16 = vmax.f32 %v4905_v62, %v2335_v21  ;;  %v1731_v22 = vmax.f32 %v1600_v20, 0.0  ;;  %v2287_v44 = vmax.f32 %v2156_v15, 0.0 }
 0x20e   :  { %v1604_v41 = vpop.f32.mrf.mxu0  ;;  %v2160_v38 = vpop.f32.mrf.mxu1 }
 0x20f   :  { %2434 = vst.msk [vmem:[%s5599_s3 + $0xd8] sm:$0xff] %vm2406_vm3, %v2384_v16  ;;  %v2336_v25 = vmax.f32 %v1731_v22, %v2287_v44  ;;  %v1605_v63 = vadd.f32 %v5429_v37, %v1604_v41  ;;  %v2161_v36 = vadd.f32 %v5429_v37, %v2160_v38 }
 0x210   :  { %v3487_v35 = vpop.f32.mrf.mxu0  ;;  %v3654_v29 = vpop.f32.mrf.mxu1 }
 0x211   :  { %v2385_v43 = vmax.f32 %v4921_v19, %v2336_v25  ;;  %v1732_v7 = vmax.f32 %v1605_v63, 0.0  ;;  %v2288_v62 = vmax.f32 %v2161_v36, 0.0 }
 0x212   :  { %v1609_v45 = vpop.f32.mrf.mxu0  ;;  %v2165_v49 = vpop.f32.mrf.mxu1 }
 0x213   :  { %2435 = vst.msk [vmem:[%s5599_s3 + $0xe0] sm:$0xff] %vm2406_vm3, %v2385_v43  ;;  %v2337_v0 = vmax.f32 %v1732_v7, %v2288_v62  ;;  %v1610_v55 = vadd.f32 %v5429_v37, %v1609_v45  ;;  %v2166_v1 = vadd.f32 %v5429_v37, %v2165_v49 }
 0x214   :  { %v3490_v54 = vpop.f32.mrf.mxu0  ;;  %v3657_v23 = vpop.f32.mrf.mxu1 }
 0x215   :  { %v2386_v51 = vmax.f32 %v4937_v39, %v2337_v0  ;;  %v1733_v8 = vmax.f32 %v1610_v55, 0.0  ;;  %v2289_v19 = vmax.f32 %v2166_v1, 0.0 }
 0x216   :  { %v1614_v14 = vpop.f32.mrf.mxu0  ;;  %v2170_v56 = vpop.f32.mrf.mxu1 }
 0x217   :  { %2436 = vst.msk [vmem:[%s5599_s3 + $0xe8] sm:$0xff] %vm2406_vm3, %v2386_v51  ;;  %v2338_v9 = vmax.f32 %v1733_v8, %v2289_v19  ;;  %v1615_v57 = vadd.f32 %v5429_v37, %v1614_v14  ;;  %v2171_v40 = vadd.f32 %v5429_v37, %v2170_v56 }
 0x218   :  { %v3493_v47 = vpop.f32.mrf.mxu0  ;;  %v3660_v6 = vpop.f32.mrf.mxu1 }
 0x219   :  { %v2387_v5 = vmax.f32 %v4953_v60, %v2338_v9  ;;  %v1734_v4 = vmax.f32 %v1615_v57, 0.0  ;;  %v2290_v39 = vmax.f32 %v2171_v40, 0.0 }
 0x21a   :  { %v1619_v2 = vpop.f32.mrf.mxu0  ;;  %v2175_v18 = vpop.f32.mrf.mxu1 }
 0x21b   :  { %2437 = vst.msk [vmem:[%s5599_s3 + $0xf0] sm:$0xff] %vm2406_vm3, %v2387_v5  ;;  %v2339_v59 = vmax.f32 %v1734_v4, %v2290_v39  ;;  %v1620_v13 = vadd.f32 %v5429_v37, %v1619_v2  ;;  %v2176_v27 = vadd.f32 %v5429_v37, %v2175_v18 }
 0x21c   :  { %v3496_v28 = vpop.f32.mrf.mxu0  ;;  %v3663_v50 = vpop.f32.mrf.mxu1 }
 0x21d   :  { %v2388_v26 = vmax.f32 %v4969_v17, %v2339_v59  ;;  %v1735_v32 = vmax.f32 %v1620_v13, 0.0  ;;  %v2291_v60 = vmax.f32 %v2176_v27, 0.0 }
 0x21e   :  { %v1624_v12 = vpop.f32.mrf.mxu0  ;;  %v2180_v21 = vpop.f32.mrf.mxu1 }
 0x21f   :  { %2438 = vst.msk [vmem:[%s5599_s3 + $0xf8] sm:$0xff] %vm2406_vm3, %v2388_v26  ;;  %v2340_v20 = vmax.f32 %v1735_v32, %v2291_v60  ;;  %v1625_v15 = vadd.f32 %v5429_v37, %v1624_v12  ;;  %v2181_v53 = vadd.f32 %v5429_v37, %v2180_v21 }
 0x220   :  { %v3499_v52 = vpop.f32.mrf.mxu0  ;;  %v3666_v16 = vpop.f32.mrf.mxu1 }
 0x221   :  { %v2389_v22 = vmax.f32 %v4985_v42, %v2340_v20  ;;  %v1736_v44 = vmax.f32 %v1625_v15, 0.0  ;;  %v2292_v17 = vmax.f32 %v2181_v53, 0.0 }
 0x222   :  { %v1629_v41 = vpop.f32.mrf.mxu0  ;;  %v2185_v38 = vpop.f32.mrf.mxu1 }
 0x223   :  { %2439 = vst.msk [vmem:[%s5599_s3 + $0x100] sm:$0xff] %vm2406_vm3, %v2389_v22  ;;  %v2341_v25 = vmax.f32 %v1736_v44, %v2292_v17  ;;  %v1630_v63 = vadd.f32 %v5429_v37, %v1629_v41  ;;  %v2186_v36 = vadd.f32 %v5429_v37, %v2185_v38 }
 0x224   :  { %v3502_v35 = vpop.f32.mrf.mxu0  ;;  %v3669_v29 = vpop.f32.mrf.mxu1 }
 0x225   :  { %v2390_v43 = vmax.f32 %v5001_v61, %v2341_v25  ;;  %v1737_v7 = vmax.f32 %v1630_v63, 0.0  ;;  %v2293_v42 = vmax.f32 %v2186_v36, 0.0 }
 0x226   :  { %v1634_v62 = vpop.f32.mrf.mxu0  ;;  %v2190_v45 = vpop.f32.mrf.mxu1 }
 0x227   :  { %2440 = vst.msk [vmem:[%s5599_s3 + $0x108] sm:$0xff] %vm2406_vm3, %v2390_v43  ;;  %v2342_v49 = vmax.f32 %v1737_v7, %v2293_v42  ;;  %v1635_v0 = vadd.f32 %v5429_v37, %v1634_v62  ;;  %v2191_v55 = vadd.f32 %v5429_v37, %v2190_v45 }
 0x228   :  { %v3505_v1 = vpop.f32.mrf.mxu0  ;;  %v3672_v54 = vpop.f32.mrf.mxu1 }
 0x229   :  { %v2391_v23 = vmax.f32 %v5022_v24, %v2342_v49  ;;  %v1738_v51 = vmax.f32 %v1635_v0, 0.0  ;;  %v2294_v61 = vmax.f32 %v2191_v55, 0.0 }
 0x22a   :  { %v1639_v8 = vpop.f32.mrf.mxu0  ;;  %v2195_v19 = vpop.f32.mrf.mxu1 }
 0x22b   :  { %2441 = vst.msk [vmem:[%s5599_s3 + $0x110] sm:$0xff] %vm2406_vm3, %v2391_v23  ;;  %v2343_v14 = vmax.f32 %v1738_v51, %v2294_v61  ;;  %v1640_v56 = vadd.f32 %v5429_v37, %v1639_v8  ;;  %v2196_v9 = vadd.f32 %v5429_v37, %v2195_v19 }
 0x22c   :  { %v3508_v57 = vpop.f32.mrf.mxu0  ;;  %v3675_v40 = vpop.f32.mrf.mxu1 }
 0x22d   :  { %v2392_v47 = vmax.f32 %v5038_v48, %v2343_v14  ;;  %v1739_v6 = vmax.f32 %v1640_v56, 0.0  ;;  %v2295_v24 = vmax.f32 %v2196_v9, 0.0 }
 0x22e   :  { %v1644_v5 = vpop.f32.mrf.mxu0  ;;  %v2200_v4 = vpop.f32.mrf.mxu1 }
 0x22f   :  { %2442 = vst.msk [vmem:[%s5599_s3 + $0x118] sm:$0xff] %vm2406_vm3, %v2392_v47  ;;  %v2344_v39 = vmax.f32 %v1739_v6, %v2295_v24  ;;  %v1645_v2 = vadd.f32 %v5429_v37, %v1644_v5  ;;  %v2201_v18 = vadd.f32 %v5429_v37, %v2200_v4 }
 0x230   :  { %v3511_v59 = vpop.f32.mrf.mxu0  ;;  %v3678_v13 = vpop.f32.mrf.mxu1 }
 0x231   :  { %v2393_v27 = vmax.f32 %v5054_v11, %v2344_v39  ;;  %v1740_v28 = vmax.f32 %v1645_v2, 0.0  ;;  %v2296_v48 = vmax.f32 %v2201_v18, 0.0 }
 0x232   :  { %v1649_v50 = vpop.f32.mrf.mxu0  ;;  %v2205_v26 = vpop.f32.mrf.mxu1 }
 0x233   :  { %2443 = vst.msk [vmem:[%s5599_s3 + $0x120] sm:$0xff] %vm2406_vm3, %v2393_v27  ;;  %v2345_v32 = vmax.f32 %v1740_v28, %v2296_v48  ;;  %v1650_v60 = vadd.f32 %v5429_v37, %v1649_v50  ;;  %v2206_v12 = vadd.f32 %v5429_v37, %v2205_v26 }
 0x234   :  { %v3514_v21 = vpop.f32.mrf.mxu0  ;;  %v3681_v20 = vpop.f32.mrf.mxu1 }
 0x235   :  { %v2394_v15 = vmax.f32 %v5070_v34, %v2345_v32  ;;  %v1741_v53 = vmax.f32 %v1650_v60, 0.0  ;;  %v2297_v11 = vmax.f32 %v2206_v12, 0.0 }
 0x236   :  { %v1654_v52 = vpop.f32.mrf.mxu0  ;;  %v2210_v16 = vpop.f32.mrf.mxu1 }
 0x237   :  { %2444 = vst.msk [vmem:[%s5599_s3 + $0x128] sm:$0xff] %vm2406_vm3, %v2394_v15  ;;  %v2346_v22 = vmax.f32 %v1741_v53, %v2297_v11  ;;  %v1655_v44 = vadd.f32 %v5429_v37, %v1654_v52  ;;  %v2211_v17 = vadd.f32 %v5429_v37, %v2210_v16 }
 0x238   :  { %v3517_v41 = vpop.f32.mrf.mxu0  ;;  %v3684_v38 = vpop.f32.mrf.mxu1 }
 0x239   :  { %v2395_v25 = vmax.f32 %v5086_v3, %v2346_v22  ;;  %v1742_v63 = vmax.f32 %v1655_v44, 0.0  ;;  %v2298_v34 = vmax.f32 %v2211_v17, 0.0 }
 0x23a   :  { %v1659_v36 = vpop.f32.mrf.mxu0  ;;  %v2215_v35 = vpop.f32.mrf.mxu1 }
 0x23b   :  { %2445 = vst.msk [vmem:[%s5599_s3 + $0x130] sm:$0xff] %vm2406_vm3, %v2395_v25  ;;  %v2347_v29 = vmax.f32 %v1742_v63, %v2298_v34  ;;  %v1660_v43 = vadd.f32 %v5429_v37, %v1659_v36  ;;  %v2216_v7 = vadd.f32 %v5429_v37, %v2215_v35 }
 0x23c   :  { %v3520_v42 = vpop.f32.mrf.mxu0  ;;  %v3687_v62 = vpop.f32.mrf.mxu1 }
 0x23d   :  { %v2396_v45 = vmax.f32 %v5102_v31, %v2347_v29  ;;  %v1743_v49 = vmax.f32 %v1660_v43, 0.0  ;;  %v2299_v3 = vmax.f32 %v2216_v7, 0.0  ;;  %v5604_v42 = vld [vmem:[#allocation2_spill] sm:$0xff] }
 0x23e   :  { %v1664_v0 = vpop.f32.mrf.mxu0  ;;  %v2220_v55 = vpop.f32.mrf.mxu1 }
 0x23f   :  { %2446 = vst.msk [vmem:[%s5599_s3 + $0x138] sm:$0xff] %vm2406_vm3, %v2396_v45  ;;  %v2348_v1 = vmax.f32 %v1743_v49, %v2299_v3  ;;  %v1665_v54 = vadd.f32 %v5429_v37, %v1664_v0  ;;  %v2221_v23 = vadd.f32 %v5429_v37, %v2220_v55 }
 0x240   :  { %v3523_v51 = vpop.f32.mrf.mxu0  ;;  %v3690_v61 = vpop.f32.mrf.mxu1 }
 0x241   :  { %v2397_v8 = vmax.f32 %v5118_v58, %v2348_v1  ;;  %v1744_v19 = vmax.f32 %v1665_v54, 0.0  ;;  %v2300_v31 = vmax.f32 %v2221_v23, 0.0  ;;  %v5605_v51 = vld [vmem:[#allocation3_spill] sm:$0xff] }
 0x242   :  { %v1669_v14 = vpop.f32.mrf.mxu0  ;;  %v2225_v56 = vpop.f32.mrf.mxu1 }
 0x243   :  { %2447 = vst.msk [vmem:[%s5599_s3 + $0x140] sm:$0xff] %vm2406_vm3, %v2397_v8  ;;  %v2349_v9 = vmax.f32 %v1744_v19, %v2300_v31  ;;  %v1670_v57 = vadd.f32 %v5429_v37, %v1669_v14  ;;  %v2226_v40 = vadd.f32 %v5429_v37, %v2225_v56 }
 0x244   :  { %v3526_v47 = vpop.f32.mrf.mxu0  ;;  %v3693_v6 = vpop.f32.mrf.mxu1 }
 0x245   :  { %v2398_v24 = vmax.f32 %v5134_v30, %v2349_v9  ;;  %v1745_v5 = vmax.f32 %v1670_v57, 0.0  ;;  %v2301_v58 = vmax.f32 %v2226_v40, 0.0  ;;  %v5606_v6 = vld [vmem:[#allocation4_spill] sm:$0xff] }
 0x246   :  { %v1674_v4 = vpop.f32.mrf.mxu0  ;;  %v2230_v39 = vpop.f32.mrf.mxu1 }
 0x247   :  { %2448 = vst.msk [vmem:[%s5599_s3 + $0x148] sm:$0xff] %vm2406_vm3, %v2398_v24  ;;  %v2350_v2 = vmax.f32 %v1745_v5, %v2301_v58  ;;  %v1675_v18 = vadd.f32 %v5429_v37, %v1674_v4  ;;  %v2231_v59 = vadd.f32 %v5429_v37, %v2230_v39  ;;  %v5607_v39 = vld [vmem:[#allocation5_spill] sm:$0xff] }
 0x248   :  { %v3529_v13 = vpop.f32.mrf.mxu0  ;;  %v3696_v27 = vpop.f32.mrf.mxu1 }
 0x249   :  { %v2399_v28 = vmax.f32 %v5150_v46, %v2350_v2  ;;  %v1746_v48 = vmax.f32 %v1675_v18, 0.0  ;;  %v2302_v30 = vmax.f32 %v2231_v59, 0.0 }
 0x24a   :  { %v1679_v50 = vpop.f32.mrf.mxu0  ;;  %v2235_v26 = vpop.f32.mrf.mxu1 }
 0x24b   :  { %2449 = vst.msk [vmem:[%s5599_s3 + $0x150] sm:$0xff] %vm2406_vm3, %v2399_v28  ;;  %v2351_v32 = vmax.f32 %v1746_v48, %v2302_v30  ;;  %v1680_v60 = vadd.f32 %v5429_v37, %v1679_v50  ;;  %v2236_v12 = vadd.f32 %v5429_v37, %v2235_v26 }
 0x24c   :  { %v3532_v21 = vpop.f32.mrf.mxu0  ;;  %v3699_v20 = vpop.f32.mrf.mxu1 }
 0x24d   :  { %v2400_v15 = vmax.f32 %v5166_v33, %v2351_v32  ;;  %v1747_v53 = vmax.f32 %v1680_v60, 0.0  ;;  %v2303_v46 = vmax.f32 %v2236_v12, 0.0 }
 0x24e   :  { %v1684_v11 = vpop.f32.mrf.mxu0  ;;  %v2240_v52 = vpop.f32.mrf.mxu1 }
 0x24f   :  { %2450 = vst.msk [vmem:[%s5599_s3 + $0x158] sm:$0xff] %vm2406_vm3, %v2400_v15  ;;  %v2352_v16 = vmax.f32 %v1747_v53, %v2303_v46  ;;  %v1685_v22 = vadd.f32 %v5429_v37, %v1684_v11  ;;  %v2241_v44 = vadd.f32 %v5429_v37, %v2240_v52 }
 0x250   :  { %v3535_v17 = vpop.f32.mrf.mxu0  ;;  %v3702_v41 = vpop.f32.mrf.mxu1 }
 0x251   :  { %v2401_v38 = vmax.f32 %v5182_v10, %v2352_v16  ;;  %v1748_v25 = vmax.f32 %v1685_v22, 0.0  ;;  %v2304_v33 = vmax.f32 %v2241_v44, 0.0 }
 0x252   :  { %v1689_v63 = vpop.f32.mrf.mxu0  ;;  %v2245_v34 = vpop.f32.mrf.mxu1 }
 0x253   :  { %2451 = vst.msk [vmem:[%s5599_s3 + $0x160] sm:$0xff] %vm2406_vm3, %v2401_v38  ;;  %v2353_v36 = vmax.f32 %v1748_v25, %v2304_v33  ;;  %v1690_v35 = vadd.f32 %v5429_v37, %v1689_v63  ;;  %v2246_v29 = vadd.f32 %v5429_v37, %v2245_v34 }
 0x254   :  { %v3538_v43 = vpop.f32.mrf.mxu0  ;;  %v3705_v7 = vpop.f32.mrf.mxu1 }
 0x255   :  { %v2402_v62 = vmax.f32 %v5604_v42, %v2353_v36  ;;  %v1749_v45 = vmax.f32 %v1690_v35, 0.0  ;;  %v2305_v10 = vmax.f32 %v2246_v29, 0.0 }
 0x256   :  { %v1694_v49 = vpop.f32.mrf.mxu0  ;;  %v2250_v3 = vpop.f32.mrf.mxu1 }
 0x257   :  { %2452 = vst.msk [vmem:[%s5599_s3 + $0x168] sm:$0xff] %vm2406_vm3, %v2402_v62  ;;  %v2354_v0 = vmax.f32 %v1749_v45, %v2305_v10  ;;  %v1695_v55 = vadd.f32 %v5429_v37, %v1694_v49  ;;  %v2251_v1 = vadd.f32 %v5429_v37, %v2250_v3 }
 0x258   :  { %v3541_v54 = vpop.f32.mrf.mxu0  ;;  %v3708_v23 = vpop.f32.mrf.mxu1 }
 0x259   :  { %v2403_v61 = vmax.f32 %v5605_v51, %v2354_v0  ;;  %v1750_v8 = vmax.f32 %v1695_v55, 0.0  ;;  %v2306_v19 = vmax.f32 %v2251_v1, 0.0 }
 0x25a   :  { %v1699_v31 = vpop.f32.mrf.mxu0  ;;  %v2255_v14 = vpop.f32.mrf.mxu1 }
 0x25b   :  { %2453 = vst.msk [vmem:[%s5599_s3 + $0x170] sm:$0xff] %vm2406_vm3, %v2403_v61  ;;  %v2355_v56 = vmax.f32 %v1750_v8, %v2306_v19  ;;  %v1700_v9 = vadd.f32 %v5429_v37, %v1699_v31  ;;  %v2256_v57 = vadd.f32 %v5429_v37, %v2255_v14 }
 0x25c   :  { %v3544_v40 = vpop.f32.mrf.mxu0  ;;  %v3711_v47 = vpop.f32.mrf.mxu1 }
 0x25d   :  { %v2404_v24 = vmax.f32 %v5606_v6, %v2355_v56  ;;  %v1751_v5 = vmax.f32 %v1700_v9, 0.0  ;;  %v2307_v58 = vmax.f32 %v2256_v57, 0.0 }
 0x25f   :  { %2454 = vst.msk [vmem:[%s5599_s3 + $0x178] sm:$0xff] %vm2406_vm3, %v2404_v24  ;;  %v2356_v4 = vmax.f32 %v1751_v5, %v2307_v58 }
 0x261   :  { %v2405_v2 = vmax.f32 %v5607_v39, %v2356_v4 }
 0x263   :  { %2455 = vst.msk [vmem:[%s5599_s3 + $0x180] sm:$0xff] %vm2406_vm3, %v2405_v2 }

// kernel: net_forward.3
= control target key start
LH: loop header
LB: loop body
LE: loop exit
PB: predicated region body
PF: predicated region fallthrough
CT: control target
= control target key end

     0   :  { %v3314_v1 = vmov 0.0   ;;  %s4287_s0 = inlined_call_operand.vmem [shape: f32[4,50,150], index: 0, kind: input, shape index: {}]   ;;  %s4288_s1 = inlined_call_operand.vmem [shape: f32[150,16], index: 1, kind: input, shape index: {}]   ;;  %s4289_s2 = inlined_call_operand.vmem [shape: f32[1,16], index: 2, kind: input, shape index: {}]   ;;  %s4290_s3 = inlined_call_operand.vmem [shape: f32[25,16,120], index: 3, kind: input, shape index: {}]   ;;  %s4291_s4 = inlined_call_operand.vmem [shape: f32[1,120], index: 4, kind: input, shape index: {}]   ;;  %s4292_s5 = inlined_call_operand.vmem [shape: f32[120,84], index: 5, kind: input, shape index: {}]   ;;  %s4293_s6 = inlined_call_operand.vmem [shape: f32[1,84], index: 6, kind: input, shape index: {}]   ;;  %s4294_s7 = inlined_call_operand.vmem [shape: f32[84,10], index: 7, kind: input, shape index: {}]   ;;  %s4295_s8 = inlined_call_operand.vmem [shape: f32[1,10], index: 8, kind: input, shape index: {}]   ;;  %s4296_s9 = inlined_call_operand.hbm [shape: f32[2,10], index: 9, kind: output, shape index: {}]  }
   0x1   :  { %v3370_v0 = vld [vmem:[%s4288_s1 + $0x78] sm:$0xff]  ;;  %99 = vmatprep.subr.mxu0 %v3314_v1  ;;  %242 = vmatprep.subr.mxu1 %v3314_v1  ;;  %v3377_v2 = vld [vmem:[%s4288_s1 + $0x70] sm:$0xff]  ;;  %v3386_v3 = vld [vmem:[%s4288_s1 + $0x68] sm:$0xff] }
   0x2   :  { %100 = vmatpush1.msra.mxu0 %v3370_v0  ;;  %243 = vmatpush1.msra.mxu1 %v3370_v0  ;;  %v3395_v4 = vld [vmem:[%s4288_s1 + $0x60] sm:$0xff]  ;;  %v3404_v5 = vld [vmem:[%s4288_s1 + $0x58] sm:$0xff]  ;;  %v3413_v6 = vld [vmem:[%s4288_s1 + $0x50] sm:$0xff] }
   0x3   :  { %101 = vmatprep.subr.mxu0 %v3314_v1  ;;  %244 = vmatprep.subr.mxu1 %v3314_v1  ;;  %v3422_v7 = vld [vmem:[%s4288_s1 + $0x48] sm:$0xff]  ;;  %v3431_v8 = vld [vmem:[%s4288_s1 + $0x40] sm:$0xff]  ;;  %v3440_v9 = vld [vmem:[%s4288_s1 + $0x38] sm:$0xff] }
   0x4   :  { %102 = vmatpush1.msra.mxu0 %v3377_v2  ;;  %245 = vmatpush1.msra.mxu1 %v3377_v2  ;;  %v3449_v10 = vld [vmem:[%s4288_s1 + $0x30] sm:$0xff]  ;;  %v3458_v11 = vld [vmem:[%s4288_s1 + $0x28] sm:$0xff]  ;;  %v3467_v12 = vld [vmem:[%s4288_s1 + $0x20] sm:$0xff] }
   0x5   :  { %103 = vmatprep.subr.mxu0 %v3314_v1  ;;  %246 = vmatprep.subr.mxu1 %v3314_v1  ;;  %v3476_v13 = vld [vmem:[%s4288_s1 + $0x18] sm:$0xff]  ;;  %v3485_v14 = vld [vmem:[%s4288_s1 + $0x10] sm:$0xff] }
   0x6   :  { %104 = vmatpush1.msra.mxu0 %v3386_v3  ;;  %247 = vmatpush1.msra.mxu1 %v3386_v3 }
   0x7   :  { %105 = vmatprep.subr.mxu0 %v3314_v1  ;;  %248 = vmatprep.subr.mxu1 %v3314_v1 }
   0x8   :  { %106 = vmatpush1.msra.mxu0 %v3395_v4  ;;  %249 = vmatpush1.msra.mxu1 %v3395_v4 }
   0x9   :  { %107 = vmatprep.subr.mxu0 %v3314_v1  ;;  %250 = vmatprep.subr.mxu1 %v3314_v1 }
   0xa   :  { %108 = vmatpush1.msra.mxu0 %v3404_v5  ;;  %251 = vmatpush1.msra.mxu1 %v3404_v5 }
   0xb   :  { %109 = vmatprep.subr.mxu0 %v3314_v1  ;;  %252 = vmatprep.subr.mxu1 %v3314_v1 }
   0xc   :  { %110 = vmatpush1.msra.mxu0 %v3413_v6  ;;  %253 = vmatpush1.msra.mxu1 %v3413_v6 }
   0xd   :  { %111 = vmatprep.subr.mxu0 %v3314_v1  ;;  %254 = vmatprep.subr.mxu1 %v3314_v1 }
   0xe   :  { %112 = vmatpush1.msra.mxu0 %v3422_v7  ;;  %255 = vmatpush1.msra.mxu1 %v3422_v7 }
   0xf   :  { %113 = vmatprep.subr.mxu0 %v3314_v1  ;;  %256 = vmatprep.subr.mxu1 %v3314_v1 }
  0x10   :  { %114 = vmatpush1.msra.mxu0 %v3431_v8  ;;  %257 = vmatpush1.msra.mxu1 %v3431_v8 }
  0x11   :  { %115 = vmatprep.subr.mxu0 %v3314_v1  ;;  %258 = vmatprep.subr.mxu1 %v3314_v1 }
  0x12   :  { %116 = vmatpush1.msra.mxu0 %v3440_v9  ;;  %259 = vmatpush1.msra.mxu1 %v3440_v9 }
  0x13   :  { %117 = vmatprep.subr.mxu0 %v3314_v1  ;;  %260 = vmatprep.subr.mxu1 %v3314_v1 }
  0x14   :  { %118 = vmatpush1.msra.mxu0 %v3449_v10  ;;  %261 = vmatpush1.msra.mxu1 %v3449_v10 }
  0x15   :  { %119 = vmatprep.subr.mxu0 %v3314_v1  ;;  %262 = vmatprep.subr.mxu1 %v3314_v1 }
  0x16   :  { %120 = vmatpush1.msra.mxu0 %v3458_v11  ;;  %263 = vmatpush1.msra.mxu1 %v3458_v11 }
  0x17   :  { %121 = vmatprep.subr.mxu0 %v3314_v1  ;;  %264 = vmatprep.subr.mxu1 %v3314_v1 }
  0x18   :  { %122 = vmatpush1.msra.mxu0 %v3467_v12  ;;  %265 = vmatpush1.msra.mxu1 %v3467_v12 }
  0x19   :  { %123 = vmatprep.subr.mxu0 %v3314_v1  ;;  %266 = vmatprep.subr.mxu1 %v3314_v1 }
  0x1a   :  { %14 = vsyncpa [#allocation3], 0  ;;  %124 = vmatpush1.msra.mxu0 %v3476_v13  ;;  %267 = vmatpush1.msra.mxu1 %v3476_v13  ;;  %v3494_v15 = vld [vmem:[%s4288_s1 + $0x8] sm:$0xff]  ;;  %v3503_v16 = vld [vmem:[%s4288_s1] sm:$0xff]  ;;  %vm95_vm0 = vcmask 1045504   ;;  %vm73_vm1 = vcmask 179200  }
  0x1b   :  { %125 = vmatprep.subr.mxu0 %v3314_v1  ;;  %268 = vmatprep.subr.mxu1 %v3314_v1  ;;  %v3512_v17 = vld [vmem:[%s4288_s1 + $0x90] sm:$0x3f]  ;;  %v3521_v18 = vld [vmem:[%s4288_s1 + $0x88] sm:$0xff]  ;;  %v3532_v19 = vld [vmem:[%s4288_s1 + $0x80] sm:$0xff]  ;;  %vm3315_vm2 = vmmov 0   ;;  %vm666_vm3 = vcmask 130048  }
  0x1c   :  { %126 = vmatpush1.msra.mxu0 %v3485_v14  ;;  %269 = vmatpush1.msra.mxu1 %v3485_v14  ;;  %v54_v20 = vld [vmem:[%s4287_s0 + $0x8] sm:$0xff]  ;;  %v2809_v21 = vld [vmem:[%s4287_s0 + $0x78] sm:$0xff]  ;;  %v53_v22 = vld [vmem:[%s4287_s0] sm:$0xff]  ;;  %vm2709_vm4 = vcmask 1043456   ;;  %vm2612_vm5 = vcmask 982016   ;;  %vm2705_vm6 = vcmask 687104  }
  0x1d   :  { %127 = vmatprep.subr.mxu0 %v3314_v1  ;;  %270 = vmatprep.subr.mxu1 %v3314_v1  ;;  %v2808_v23 = vld [vmem:[%s4287_s0 + $0x70] sm:$0xff]  ;;  %v56_v24 = vld [vmem:[%s4287_s0 + $0x18] sm:$0xff]  ;;  %v2811_v25 = vld [vmem:[%s4287_s0 + $0x88] sm:$0xff]  ;;  %s3316_s15 = smov [#allocation2]   ;;  %vm2783_vm7 = vcmask 74752  }
  0x1e   :  { %128 = vmatpush1.msra.mxu0 %v3494_v15  ;;  %271 = vmatpush1.msra.mxu1 %v3494_v15  ;;  %v55_v26 = vld [vmem:[%s4287_s0 + $0x10] sm:$0xff]  ;;  %v2810_v27 = vld [vmem:[%s4287_s0 + $0x80] sm:$0xff]  ;;  %v58_v28 = vld [vmem:[%s4287_s0 + $0x28] sm:$0xff]  ;;  %s2791_s16 = sshll.u32 %s3316_s15, 4  ;;  %s2792_s16 = int_to_ptr.vmem [resolvable:$true] %s2791_s16 }
  0x1f   :  { %129 = vmatprep.subr.mxu0 %v3314_v1  ;;  %272 = vmatprep.subr.mxu1 %v3314_v1  ;;  %v2813_v29 = vld [vmem:[%s4287_s0 + $0x98] sm:$0xff]  ;;  %v57_v30 = vld [vmem:[%s4287_s0 + $0x20] sm:$0xff]  ;;  %v2812_v31 = vld [vmem:[%s4287_s0 + $0x90] sm:$0xff]  ;;  %p3297_p1 = scmp.lt.s32.totalorder %s2792_s16, %s2792_s16 }
  0x20   :  { %130 = vmatpush1.msra.mxu0 %v3503_v16  ;;  %273 = vmatpush1.msra.mxu1 %v3503_v16  ;;  %v60_v32 = vld [vmem:[%s4287_s0 + $0x38] sm:$0xff]  ;;  %v2815_v33 = vld [vmem:[%s4287_s0 + $0xa8] sm:$0xff]  ;;  %v59_v34 = vld [vmem:[%s4287_s0 + $0x30] sm:$0xff] }
  0x21   :  { %157 = vmatprep.subr.mxu0 %v3314_v1  ;;  %300 = vmatprep.subr.mxu1 %v3314_v1  ;;  %v2814_v35 = vld [vmem:[%s4287_s0 + $0xa0] sm:$0xff]  ;;  %v62_v36 = vld [vmem:[%s4287_s0 + $0x48] sm:$0xff]  ;;  %v2817_v37 = vld [vmem:[%s4287_s0 + $0xb8] sm:$0xff] }
  0x22   :  { %2800 = vmatpush2.msk.msra.mxu0 %vm95_vm0, %v3512_v17  ;;  %2822 = vmatpush2.msk.msra.mxu1 %vm95_vm0, %v3512_v17  ;;  %v61_v38 = vld [vmem:[%s4287_s0 + $0x40] sm:$0xff]  ;;  %v2816_v39 = vld [vmem:[%s4287_s0 + $0xb0] sm:$0xff]  ;;  %v64_v40 = vld [vmem:[%s4287_s0 + $0x58] sm:$0xff] }
  0x23   :  { %159 = vmatprep.subr.mxu0 %v3314_v1  ;;  %302 = vmatprep.subr.mxu1 %v3314_v1  ;;  %v2819_v41 = vld [vmem:[%s4287_s0 + $0xc8] sm:$0xff]  ;;  %v63_v42 = vld [vmem:[%s4287_s0 + $0x50] sm:$0xff]  ;;  %v2818_v43 = vld [vmem:[%s4287_s0 + $0xc0] sm:$0xff] }
  0x24   :  { %160 = vmatpush2.msra.mxu0 %v3521_v18  ;;  %303 = vmatpush2.msra.mxu1 %v3521_v18  ;;  %v66_v44 = vld [vmem:[%s4287_s0 + $0x68] sm:$0x3]  ;;  %v2821_v45 = vld [vmem:[%s4287_s0 + $0xd8] sm:$0x3]  ;;  %v65_v46 = vld [vmem:[%s4287_s0 + $0x60] sm:$0x3] }
  0x25   :  { %161 = vmatprep.subr.mxu0 %v3314_v1  ;;  %304 = vmatprep.subr.mxu1 %v3314_v1  ;;  %v2820_v47 = vld [vmem:[%s4287_s0 + $0xd0] sm:$0x3]  ;;  %v2831_v48 = vld [vmem:[%s4287_s0 + $0xe8] sm:$0xff]  ;;  %v2853_v49 = vld [vmem:[%s4287_s0 + $0x158] sm:$0xff] }
  0x26   :  { %162 = vmatpush2.msra.mxu0 %v3532_v19  ;;  %2801 = vmatprep.mubr.msk.f32.mxu0 %vm73_vm1, %v54_v20  ;;  %v2830_v50 = vld [vmem:[%s4287_s0 + $0xe0] sm:$0xff]  ;;  %v2852_v51 = vld [vmem:[%s4287_s0 + $0x150] sm:$0xff]  ;;  %v2833_v52 = vld [vmem:[%s4287_s0 + $0xf8] sm:$0xff] }
  0x27   :  { %305 = vmatpush2.msra.mxu1 %v3532_v19  ;;  %2823 = vmatprep.mubr.msk.f32.mxu1 %vm73_vm1, %v2809_v21  ;;  %v2855_v53 = vld [vmem:[%s4287_s0 + $0x168] sm:$0xff]  ;;  %v2832_v54 = vld [vmem:[%s4287_s0 + $0xf0] sm:$0xff]  ;;  %v2854_v55 = vld [vmem:[%s4287_s0 + $0x160] sm:$0xff] }
  0x28   :  { %164 = vmatmul.mubr.f32.vlgmr.msra.gmra.mxu0 %v53_v22  ;;  %307 = vmatmul.mubr.f32.vlgmr.msra.gmra.mxu1 %v2808_v23  ;;  %v2835_v56 = vld [vmem:[%s4287_s0 + $0x108] sm:$0xff]  ;;  %v2857_v57 = vld [vmem:[%s4287_s0 + $0x178] sm:$0xff]  ;;  %v2834_v58 = vld [vmem:[%s4287_s0 + $0x100] sm:$0xff] }
  0x29   :  { %392 = vmatprep.subr.mxu0 %v3314_v1  ;;  %535 = vmatprep.subr.mxu1 %v3314_v1  ;;  %v2856_v59 = vld [vmem:[%s4287_s0 + $0x170] sm:$0xff]  ;;  %v2837_v60 = vld [vmem:[%s4287_s0 + $0x118] sm:$0xff]  ;;  %v2859_v61 = vld [vmem:[%s4287_s0 + $0x188] sm:$0xff] }
  0x2a   :  { %393 = vmatpush1.msra.mxu0 %v3370_v0  ;;  %536 = vmatpush1.msra.mxu1 %v3370_v0  ;;  %v2836_v62 = vld [vmem:[%s4287_s0 + $0x110] sm:$0xff]  ;;  %v2858_v63 = vld [vmem:[%s4287_s0 + $0x180] sm:$0xff]  ;;  %v2839_v0 = vld [vmem:[%s4287_s0 + $0x128] sm:$0xff] }
  0x2b   :  { %394 = vmatprep.subr.mxu0 %v3314_v1  ;;  %537 = vmatprep.subr.mxu1 %v3314_v1 }
  0x2c   :  { %395 = vmatpush1.msra.mxu0 %v3377_v2  ;;  %538 = vmatpush1.msra.mxu1 %v3377_v2  ;;  %v2861_v2 = vld [vmem:[%s4287_s0 + $0x198] sm:$0xff] }
  0x2d   :  { %396 = vmatprep.subr.mxu0 %v3314_v1  ;;  %539 = vmatprep.subr.mxu1 %v3314_v1 }
  0x2e   :  { %397 = vmatpush1.msra.mxu0 %v3386_v3  ;;  %540 = vmatpush1.msra.mxu1 %v3386_v3  ;;  %v2838_v3 = vld [vmem:[%s4287_s0 + $0x120] sm:$0xff] }
  0x2f   :  { %398 = vmatprep.subr.mxu0 %v3314_v1  ;;  %541 = vmatprep.subr.mxu1 %v3314_v1 }
  0x30   :  { %399 = vmatpush1.msra.mxu0 %v3395_v4  ;;  %542 = vmatpush1.msra.mxu1 %v3395_v4  ;;  %v2860_v4 = vld [vmem:[%s4287_s0 + $0x190] sm:$0xff] }
  0x31   :  { %400 = vmatprep.subr.mxu0 %v3314_v1  ;;  %543 = vmatprep.subr.mxu1 %v3314_v1 }
  0x32   :  { %401 = vmatpush1.msra.mxu0 %v3404_v5  ;;  %544 = vmatpush1.msra.mxu1 %v3404_v5  ;;  %v2841_v5 = vld [vmem:[%s4287_s0 + $0x138] sm:$0xff] }
  0x33   :  { %402 = vmatprep.subr.mxu0 %v3314_v1  ;;  %545 = vmatprep.subr.mxu1 %v3314_v1 }
  0x34   :  { %2802 = vmatprep.mubr.msk.f32.mxu0 %vm73_vm1, %v56_v24  ;;  %2824 = vmatprep.mubr.msk.f32.mxu1 %vm73_vm1, %v2811_v25 }
  0x35   :  { %403 = vmatpush1.msra.mxu0 %v3413_v6  ;;  %546 = vmatpush1.msra.mxu1 %v3413_v6  ;;  %v2863_v6 = vld [vmem:[%s4287_s0 + $0x1a8] sm:$0xff] }
  0x36   :  { %169 = vmatmul.mubr.f32.gmra.mxu0 %v55_v26  ;;  %312 = vmatmul.mubr.f32.gmra.mxu1 %v2810_v27 }
  0x37   :  { %404 = vmatprep.subr.mxu0 %v3314_v1  ;;  %547 = vmatprep.subr.mxu1 %v3314_v1 }
  0x38   :  { %405 = vmatpush1.msra.mxu0 %v3422_v7  ;;  %548 = vmatpush1.msra.mxu1 %v3422_v7  ;;  %v2840_v7 = vld [vmem:[%s4287_s0 + $0x130] sm:$0xff] }
  0x39   :  { %406 = vmatprep.subr.mxu0 %v3314_v1  ;;  %549 = vmatprep.subr.mxu1 %v3314_v1 }
  0x3a   :  { %2803 = vmatprep.mubr.msk.f32.mxu0 %vm73_vm1, %v58_v28  ;;  %2825 = vmatprep.mubr.msk.f32.mxu1 %vm73_vm1, %v2813_v29 }
  0x3b   :  { %407 = vmatpush1.msra.mxu0 %v3431_v8  ;;  %550 = vmatpush1.msra.mxu1 %v3431_v8  ;;  %v2862_v8 = vld [vmem:[%s4287_s0 + $0x1a0] sm:$0xff] }
  0x3c   :  { %174 = vmatmul.mubr.f32.gmra.mxu0 %v57_v30  ;;  %317 = vmatmul.mubr.f32.gmra.mxu1 %v2812_v31 }
  0x3d   :  { %408 = vmatprep.subr.mxu0 %v3314_v1  ;;  %551 = vmatprep.subr.mxu1 %v3314_v1 }
  0x3e   :  { %409 = vmatpush1.msra.mxu0 %v3440_v9  ;;  %552 = vmatpush1.msra.mxu1 %v3440_v9  ;;  %v2843_v9 = vld [vmem:[%s4287_s0 + $0x148] sm:$0x3] }
  0x3f   :  { %410 = vmatprep.subr.mxu0 %v3314_v1  ;;  %553 = vmatprep.subr.mxu1 %v3314_v1 }
  0x40   :  { %2804 = vmatprep.mubr.msk.f32.mxu0 %vm73_vm1, %v60_v32  ;;  %2826 = vmatprep.mubr.msk.f32.mxu1 %vm73_vm1, %v2815_v33  ;;  %v3847_v33 = vld [vmem:[%s4289_s2] ss:$0 sm:$0xff] }
  0x41   :  { %411 = vmatpush1.msra.mxu0 %v3449_v10  ;;  %554 = vmatpush1.msra.mxu1 %v3449_v10  ;;  %v2865_v10 = vld [vmem:[%s4287_s0 + $0x1b8] sm:$0x3] }
  0x42   :  { %179 = vmatmul.mubr.f32.gmra.mxu0 %v59_v34  ;;  %322 = vmatmul.mubr.f32.gmra.mxu1 %v2814_v35 }
  0x43   :  { %412 = vmatprep.subr.mxu0 %v3314_v1  ;;  %555 = vmatprep.subr.mxu1 %v3314_v1 }
  0x44   :  { %413 = vmatpush1.msra.mxu0 %v3458_v11  ;;  %556 = vmatpush1.msra.mxu1 %v3458_v11  ;;  %v2842_v11 = vld [vmem:[%s4287_s0 + $0x140] sm:$0x3] }
  0x45   :  { %414 = vmatprep.subr.mxu0 %v3314_v1  ;;  %557 = vmatprep.subr.mxu1 %v3314_v1 }
  0x46   :  { %2805 = vmatprep.mubr.msk.f32.mxu0 %vm73_vm1, %v62_v36  ;;  %2827 = vmatprep.mubr.msk.f32.mxu1 %vm73_vm1, %v2817_v37 }
  0x47   :  { %415 = vmatpush1.msra.mxu0 %v3467_v12  ;;  %558 = vmatpush1.msra.mxu1 %v3467_v12  ;;  %v2864_v12 = vld [vmem:[%s4287_s0 + $0x1b0] sm:$0x3] }
  0x48   :  { %184 = vmatmul.mubr.f32.gmra.mxu0 %v61_v38  ;;  %327 = vmatmul.mubr.f32.gmra.mxu1 %v2816_v39 }
  0x49   :  { %416 = vmatprep.subr.mxu0 %v3314_v1  ;;  %559 = vmatprep.subr.mxu1 %v3314_v1 }
  0x4a   :  { %417 = vmatpush1.msra.mxu0 %v3476_v13  ;;  %560 = vmatpush1.msra.mxu1 %v3476_v13  ;;  %v665_v13 = vld [vmem:[%s4290_s3 + $0x8] sm:$0xff] }
  0x4b   :  { %418 = vmatprep.subr.mxu0 %v3314_v1  ;;  %561 = vmatprep.subr.mxu1 %v3314_v1 }
  0x4c   :  { %2806 = vmatprep.mubr.msk.f32.mxu0 %vm73_vm1, %v64_v40  ;;  %2828 = vmatprep.mubr.msk.f32.mxu1 %vm73_vm1, %v2819_v41 }
  0x4d   :  { %419 = vmatpush1.msra.mxu0 %v3485_v14  ;;  %562 = vmatpush1.msra.mxu1 %v3485_v14  ;;  %v2877_v14 = vld [vmem:[%s4290_s3 + $0x18] sm:$0xff] }
  0x4e   :  { %189 = vmatmul.mubr.f32.gmra.mxu0 %v63_v42  ;;  %332 = vmatmul.mubr.f32.gmra.mxu1 %v2818_v43 }
  0x4f   :  { %420 = vmatprep.subr.mxu0 %v3314_v1  ;;  %563 = vmatprep.subr.mxu1 %v3314_v1 }
  0x50   :  { %421 = vmatpush1.msra.mxu0 %v3494_v15  ;;  %564 = vmatpush1.msra.mxu1 %v3494_v15  ;;  %v664_v15 = vld [vmem:[%s4290_s3] sm:$0xff] }
  0x51   :  { %422 = vmatprep.subr.mxu0 %v3314_v1  ;;  %565 = vmatprep.subr.mxu1 %v3314_v1 }
  0x52   :  { %2807 = vmatprep.mubr.msk.f32.mxu0 %vm73_vm1, %v66_v44  ;;  %2829 = vmatprep.mubr.msk.f32.mxu1 %vm73_vm1, %v2821_v45 }
  0x53   :  { %423 = vmatpush1.msra.mxu0 %v3503_v16  ;;  %566 = vmatpush1.msra.mxu1 %v3503_v16  ;;  %v2876_v16 = vld [vmem:[%s4290_s3 + $0x10] sm:$0xff] }
  0x54   :  { %194 = vmatmul.mubr.f32.gmra.mxu0 %v65_v46  ;;  %337 = vmatmul.mubr.f32.gmra.mxu1 %v2820_v47 }
  0x55   :  { %450 = vmatprep.subr.mxu0 %v3314_v1  ;;  %593 = vmatprep.subr.mxu1 %v3314_v1 }
  0x56   :  { %2844 = vmatpush2.msk.msra.mxu0 %vm95_vm0, %v3512_v17  ;;  %2866 = vmatpush2.msk.msra.mxu1 %vm95_vm0, %v3512_v17 }
  0x57   :  { %452 = vmatprep.subr.mxu0 %v3314_v1  ;;  %595 = vmatprep.subr.mxu1 %v3314_v1 }
  0x58   :  { %453 = vmatpush2.msra.mxu0 %v3521_v18  ;;  %596 = vmatpush2.msra.mxu1 %v3521_v18 }
  0x59   :  { %454 = vmatprep.subr.mxu0 %v3314_v1  ;;  %597 = vmatprep.subr.mxu1 %v3314_v1 }
  0x5a   :  { %455 = vmatpush2.msra.mxu0 %v3532_v19  ;;  %2845 = vmatprep.mubr.msk.f32.mxu0 %vm73_vm1, %v2831_v48 }
  0x5b   :  { %598 = vmatpush2.msra.mxu1 %v3532_v19  ;;  %2867 = vmatprep.mubr.msk.f32.mxu1 %vm73_vm1, %v2853_v49 }
  0x5c   :  { %457 = vmatmul.mubr.f32.vlgmr.msra.gmra.mxu0 %v2830_v50  ;;  %600 = vmatmul.mubr.f32.vlgmr.msra.gmra.mxu1 %v2852_v51 }
  0x5d   :  { %2846 = vmatprep.mubr.msk.f32.mxu0 %vm73_vm1, %v2833_v52  ;;  %2868 = vmatprep.mubr.msk.f32.mxu1 %vm73_vm1, %v2855_v53 }
  0x5e   :  { %3056 = vmatprep.subr.mxu0 %v3314_v1  ;;  %3063 = vmatprep.subr.mxu1 %v3314_v1 }
  0x5f   :  { %3057 = vmatpush3.msra.mxu0 %v665_v13  ;;  %3064 = vmatpush3.msra.mxu1 %v2877_v14 }
  0x60   :  { %462 = vmatmul.mubr.f32.gmra.mxu0 %v2832_v54  ;;  %605 = vmatmul.mubr.f32.gmra.mxu1 %v2854_v55 }
  0x61   :  { %2847 = vmatprep.mubr.msk.f32.mxu0 %vm73_vm1, %v2835_v56  ;;  %2869 = vmatprep.mubr.msk.f32.mxu1 %vm73_vm1, %v2857_v57 }
  0x62   :  { %3058 = vmatprep.subr.mxu0 %v3314_v1  ;;  %3065 = vmatprep.subr.mxu1 %v3314_v1 }
  0x63   :  { %3059 = vmatpush3.msra.mxu0 %v664_v15  ;;  %3066 = vmatpush3.msra.mxu1 %v2876_v16 }
  0x64   :  { %467 = vmatmul.mubr.f32.gmra.mxu0 %v2834_v58  ;;  %610 = vmatmul.mubr.f32.gmra.mxu1 %v2856_v59 }
  0x65   :  { %2848 = vmatprep.mubr.msk.f32.mxu0 %vm73_vm1, %v2837_v60  ;;  %2870 = vmatprep.mubr.msk.f32.mxu1 %vm73_vm1, %v2859_v61 }
  0x66   :  { %3070 = vmatprep.subr.mxu0 %v3314_v1  ;;  %3077 = vmatprep.subr.mxu1 %v3314_v1 }
  0x68   :  { %472 = vmatmul.mubr.f32.gmra.mxu0 %v2836_v62  ;;  %615 = vmatmul.mubr.f32.gmra.mxu1 %v2858_v63 }
  0x69   :  { %2849 = vmatprep.mubr.msk.f32.mxu0 %vm73_vm1, %v2839_v0  ;;  %2871 = vmatprep.mubr.msk.f32.mxu1 %vm73_vm1, %v2861_v2 }
  0x6c   :  { %477 = vmatmul.mubr.f32.gmra.mxu0 %v2838_v3  ;;  %620 = vmatmul.mubr.f32.gmra.mxu1 %v2860_v4 }
  0x6d   :  { %2850 = vmatprep.mubr.msk.f32.mxu0 %vm73_vm1, %v2841_v5  ;;  %2872 = vmatprep.mubr.msk.f32.mxu1 %vm73_vm1, %v2863_v6 }
  0x70   :  { %482 = vmatmul.mubr.f32.gmra.mxu0 %v2840_v7  ;;  %625 = vmatmul.mubr.f32.gmra.mxu1 %v2862_v8 }
  0x71   :  { %2851 = vmatprep.mubr.msk.f32.mxu0 %vm73_vm1, %v2843_v9  ;;  %2873 = vmatprep.mubr.msk.f32.mxu1 %vm73_vm1, %v2865_v10 }
  0x74   :  { %487 = vmatmul.mubr.f32.gmra.mxu0 %v2842_v11  ;;  %630 = vmatmul.mubr.f32.gmra.mxu1 %v2864_v12 }
  0x75   :  { %3060 = vmatprep.mubr.msk.f32.mxu0 %vm3315_vm2, %v3314_v1  ;;  %3067 = vmatprep.mubr.msk.f32.mxu1 %vm3315_vm2, %v3314_v1 }
  0xe8   :  { %v165_v17 = vpop.f32.mrf.mxu0  ;;  %v308_v18 = vpop.f32.mrf.mxu1 }
  0xe9   :  { %v166_v60 = vadd.f32 %v3847_v33, %v165_v17  ;;  %v309_v61 = vadd.f32 %v3847_v33, %v308_v18 }
  0xea   :  { %v167_v19 = vpop.f32.mrf.mxu0  ;;  %v310_v20 = vpop.f32.mrf.mxu1 }
  0xeb   :  { %v199_v2 = vmax.f32 %v166_v60, 0.0  ;;  %v342_v3 = vmax.f32 %v309_v61, 0.0 }
  0xed   :  { %v349_v12 = vmax.f32 %v199_v2, %v342_v3 }
  0xf6   :  { %v170_v21 = vpop.f32.mrf.mxu0  ;;  %v313_v22 = vpop.f32.mrf.mxu1 }
  0xf7   :  { %v171_v18 = vadd.f32 %v3847_v33, %v170_v21  ;;  %v314_v19 = vadd.f32 %v3847_v33, %v313_v22  ;;  %v2883_v21 = vld [vmem:[%s4290_s3 + $0x38] sm:$0xff] }
  0xf8   :  { %v172_v23 = vpop.f32.mrf.mxu0  ;;  %v315_v24 = vpop.f32.mrf.mxu1 }
  0xf9   :  { %v2880_v23 = vld [vmem:[%s4290_s3 + $0x28] sm:$0xff] }
  0xfc   :  { %v3836_v25 = vpop.f32.mrf.mxu0  ;;  %v3838_v26 = vpop.f32.mrf.mxu1 }
  0xfd   :  { %v176_v61 = vadd.f32 %v3847_v33, %v3836_v25 }
  0xfe   :  { %v177_v27 = vpop.f32.mrf.mxu0  ;;  %v320_v28 = vpop.f32.mrf.mxu1 }
 0x102   :  { %v3840_v29 = vpop.f32.mrf.mxu0  ;;  %v3842_v30 = vpop.f32.mrf.mxu1 }
 0x104   :  { %v182_v31 = vpop.f32.mrf.mxu0  ;;  %v325_v32 = vpop.f32.mrf.mxu1 }
 0x108   :  { %v185_v34 = vpop.f32.mrf.mxu0  ;;  %v328_v35 = vpop.f32.mrf.mxu1 }
 0x109   :  { %v186_v36 = vadd.f32 %v3847_v33, %v185_v34  ;;  %v329_v37 = vadd.f32 %v3847_v33, %v328_v35  ;;  %v2879_v34 = vld [vmem:[%s4290_s3 + $0x20] sm:$0xff] }
 0x10a   :  { %v187_v38 = vpop.f32.mrf.mxu0  ;;  %v330_v39 = vpop.f32.mrf.mxu1 }
 0x10b   :  { %v203_v40 = vmax.f32 %v186_v36, 0.0  ;;  %v346_v41 = vmax.f32 %v329_v37, 0.0  ;;  %v200_v36 = vmax.f32 %v171_v18, 0.0  ;;  %v343_v37 = vmax.f32 %v314_v19, 0.0  ;;  %v2882_v38 = vld [vmem:[%s4290_s3 + $0x30] sm:$0xff] }
 0x10d   :  { %v3851_v42 = vmax.f32 %v203_v40, %v346_v41 }
 0x10e   :  { %v190_v43 = vpop.f32.mrf.mxu0  ;;  %v333_v44 = vpop.f32.mrf.mxu1 }
 0x10f   :  { %v191_v45 = vadd.f32 %v3847_v33, %v190_v43  ;;  %v334_v46 = vadd.f32 %v3847_v33, %v333_v44  ;;  %v2886_v43 = vld [vmem:[%s4290_s3 + $0x48] sm:$0xff] }
 0x110   :  { %v192_v47 = vpop.f32.mrf.mxu0  ;;  %v335_v48 = vpop.f32.mrf.mxu1 }
 0x111   :  { %v204_v49 = vmax.f32 %v191_v45, 0.0  ;;  %v347_v50 = vmax.f32 %v334_v46, 0.0  ;;  %v2885_v47 = vld [vmem:[%s4290_s3 + $0x40] sm:$0xff]  ;;  %v350_v48 = vmax.f32 %v200_v36, %v343_v37 }
 0x113   :  { %v3855_v51 = vmax.f32 %v204_v49, %v347_v50  ;;  %v2889_v50 = vld [vmem:[%s4290_s3 + $0x58] sm:$0xff] }
 0x114   :  { %v195_v52 = vpop.f32.mrf.mxu0  ;;  %v338_v53 = vpop.f32.mrf.mxu1 }
 0x115   :  { %v196_v54 = vadd.f32 %v3847_v33, %v195_v52  ;;  %v339_v55 = vadd.f32 %v3847_v33, %v338_v53 }
 0x116   :  { %v197_v56 = vpop.f32.mrf.mxu0  ;;  %v340_v57 = vpop.f32.mrf.mxu1 }
 0x117   :  { %v205_v58 = vmax.f32 %v196_v54, 0.0  ;;  %v348_v59 = vmax.f32 %v339_v55, 0.0  ;;  %v2888_v57 = vld [vmem:[%s4290_s3 + $0x50] sm:$0xff] }
 0x119   :  { %v3861_v62 = vmax.f32 %v205_v58, %v348_v59  ;;  %v2892_v58 = vld [vmem:[%s4290_s3 + $0x68] sm:$0xff] }
 0x11c   :  { %v458_v63 = vpop.f32.mrf.mxu0  ;;  %v601_v0 = vpop.f32.mrf.mxu1 }
 0x11d   :  { %v459_v4 = vadd.f32 %v3847_v33, %v458_v63  ;;  %v602_v5 = vadd.f32 %v3847_v33, %v601_v0  ;;  %v319_v63 = vadd.f32 %v3847_v33, %v3838_v26  ;;  %v2891_v0 = vld [vmem:[%s4290_s3 + $0x60] sm:$0xff] }
 0x11e   :  { %v460_v6 = vpop.f32.mrf.mxu0  ;;  %v603_v7 = vpop.f32.mrf.mxu1 }
 0x11f   :  { %v492_v8 = vmax.f32 %v459_v4, 0.0  ;;  %v635_v9 = vmax.f32 %v602_v5, 0.0  ;;  %v2895_v5 = vld [vmem:[%s4290_s3 + $0x78] sm:$0xff] }
 0x120   :  { %v463_v10 = vpop.f32.mrf.mxu0  ;;  %v606_v11 = vpop.f32.mrf.mxu1 }
 0x121   :  { %v642_v13 = vmax.f32 %v492_v8, %v635_v9  ;;  %v464_v14 = vadd.f32 %v3847_v33, %v463_v10  ;;  %v607_v15 = vadd.f32 %v3847_v33, %v606_v11  ;;  %v201_v8 = vmax.f32 %v176_v61, 0.0  ;;  %v2894_v10 = vld [vmem:[%s4290_s3 + $0x70] sm:$0xff]  ;;  %v2922_v61 = vld [vmem:[%s4290_s3 + $0x108] sm:$0xff] }
 0x122   :  { %v465_v16 = vpop.f32.mrf.mxu0  ;;  %v608_v17 = vpop.f32.mrf.mxu1  ;;  %v344_v9 = vmax.f32 %v319_v63, 0.0 }
 0x123   :  { %v649_v20 = vmax.f32 %v349_v12, %v642_v13  ;;  %v493_v31 = vmax.f32 %v464_v14, 0.0  ;;  %v636_v32 = vmax.f32 %v607_v15, 0.0  ;;  %v2898_v12 = vld [vmem:[%s4290_s3 + $0x88] sm:$0xff]  ;;  %v2897_v16 = vld [vmem:[%s4290_s3 + $0x80] sm:$0xff] }
 0x124   :  { %v468_v24 = vpop.f32.mrf.mxu0  ;;  %v611_v27 = vpop.f32.mrf.mxu1  ;;  %v351_v19 = vmax.f32 %v201_v8, %v344_v9 }
 0x125   :  { %v744_v28 = vrot.slane %v649_v20, 2  ;;  %3061 = vmatmul.mubr.msk.f32.vlgmr.msra.gmra.mxu0 %vm666_vm3, %v649_v20  ;;  %v821_v41 = vrot.slane %v649_v20, 4  ;;  %v643_v44 = vmax.f32 %v493_v31, %v636_v32  ;;  %v898_v49 = vrot.slane %v649_v20, 6  ;;  %v2900_v31 = vld [vmem:[%s4290_s3 + $0x90] sm:$0xff]  ;;  %v2904_v32 = vld [vmem:[%s4290_s3 + $0xa8] sm:$0xff] }
 0x126   :  { %3071 = vmatpush3.msra.mxu0 %v2880_v23  ;;  %v470_v22 = vpop.f32.mrf.mxu0  ;;  %v613_v35 = vpop.f32.mrf.mxu1  ;;  %3074 = vmatprep.mubr.msk.f32.mxu0 %vm3315_vm2, %v3314_v1  ;;  %v469_v55 = vadd.f32 %v3847_v33, %v468_v24  ;;  %v612_v56 = vadd.f32 %v3847_v33, %v611_v27  ;;  %v2901_v23 = vld [vmem:[%s4290_s3 + $0x98] sm:$0xff] }
 0x127   :  { %3072 = vmatprep.subr.mxu0 %v3314_v1  ;;  %3068 = vmatmul.mubr.msk.f32.vlgmr.msra.gmra.mxu1 %vm666_vm3, %v744_v28  ;;  %v650_v54 = vmax.f32 %v350_v48, %v643_v44  ;;  %v2903_v22 = vld [vmem:[%s4290_s3 + $0xa0] sm:$0xff] }
 0x128   :  { %3073 = vmatpush3.msra.mxu0 %v2879_v34  ;;  %3078 = vmatpush3.msra.mxu1 %v2883_v21  ;;  %v3886_v39 = vpop.f32.mrf.mxu0  ;;  %v3888_v40 = vpop.f32.mrf.mxu1  ;;  %v494_v4 = vmax.f32 %v469_v55, 0.0  ;;  %v637_v25 = vmax.f32 %v612_v56, 0.0  ;;  %v181_v34 = vadd.f32 %v3847_v33, %v3840_v29  ;;  %v324_v21 = vadd.f32 %v3847_v33, %v3842_v30  ;;  %v2907_v30 = vld [vmem:[%s4290_s3 + $0xb8] sm:$0xff]  ;;  %v2909_v44 = vld [vmem:[%s4290_s3 + $0xc0] sm:$0xff]  ;;  %v2916_v55 = vld [vmem:[%s4290_s3 + $0xe8] sm:$0xff] }
 0x129   :  { %3079 = vmatprep.subr.mxu1 %v3314_v1  ;;  %3084 = vmatprep.subr.mxu0 %v3314_v1  ;;  %v1052_v26 = vrot.slane %v650_v54, 2  ;;  %v1129_v11 = vrot.slane %v650_v54, 4  ;;  %v1206_v20 = vrot.slane %v650_v54, 6  ;;  %v474_v27 = vadd.f32 %v3847_v33, %v3886_v39  ;;  %v2906_v39 = vld [vmem:[%s4290_s3 + $0xb0] sm:$0xff] }
 0x12a   :  { %3075 = vmatmul.mubr.msk.f32.vlgmr.msra.gmra.mxu0 %vm666_vm3, %v821_v41  ;;  %3080 = vmatpush3.msra.mxu1 %v2882_v38  ;;  %v475_v45 = vpop.f32.mrf.mxu0  ;;  %v618_v46 = vpop.f32.mrf.mxu1  ;;  %v644_v15 = vmax.f32 %v494_v4, %v637_v25  ;;  %v617_v28 = vadd.f32 %v3847_v33, %v3888_v40  ;;  %v202_v37 = vmax.f32 %v181_v34, 0.0  ;;  %v345_v38 = vmax.f32 %v324_v21, 0.0  ;;  %v2910_v41 = vld [vmem:[%s4290_s3 + $0xc8] sm:$0xff]  ;;  %v2925_v25 = vld [vmem:[%s4290_s3 + $0x118] sm:$0xff] }
 0x12b   :  { %3085 = vmatpush3.msra.mxu0 %v2886_v43  ;;  %3081 = vmatprep.mubr.msk.f32.mxu1 %vm3315_vm2, %v3314_v1  ;;  %v495_v35 = vmax.f32 %v474_v27, 0.0  ;;  %v2936_v27 = vld [vmem:[%s4290_s3 + $0x150] sm:$0xff] }
 0x12c   :  { %3086 = vmatprep.subr.mxu0 %v3314_v1  ;;  %3091 = vmatprep.subr.mxu1 %v3314_v1  ;;  %v3906_v52 = vpop.f32.mrf.mxu0  ;;  %v3908_v53 = vpop.f32.mrf.mxu1  ;;  %v651_v24 = vmax.f32 %v351_v19, %v644_v15  ;;  %v638_v36 = vmax.f32 %v617_v28, 0.0  ;;  %v352_v45 = vmax.f32 %v202_v37, %v345_v38  ;;  %v2934_v15 = vld [vmem:[%s4290_s3 + $0x148] sm:$0xff]  ;;  %v2937_v19 = vld [vmem:[%s4290_s3 + $0x158] sm:$0xff]  ;;  %v2602_v37 = vld [vmem:[%s4292_s5 + $0x60] sm:$0xff] }
 0x12d   :  { %3082 = vmatmul.mubr.msk.f32.vlgmr.msra.gmra.mxu1 %vm666_vm3, %v898_v49  ;;  %3087 = vmatpush3.msra.mxu0 %v2885_v47  ;;  %v2913_v47 = vld [vmem:[%s4290_s3 + $0xd8] sm:$0xff]  ;;  %v479_v49 = vadd.f32 %v3847_v33, %v3906_v52  ;;  %v2915_v52 = vld [vmem:[%s4290_s3 + $0xe0] sm:$0xff] }
 0x12e   :  { %3092 = vmatpush3.msra.mxu1 %v2889_v50  ;;  %3088 = vmatprep.mubr.msk.f32.mxu0 %vm3315_vm2, %v3314_v1  ;;  %v480_v59 = vpop.f32.mrf.mxu0  ;;  %v623_v60 = vpop.f32.mrf.mxu1  ;;  %v1360_v29 = vrot.slane %v651_v24, 2  ;;  %v1437_v40 = vrot.slane %v651_v24, 4  ;;  %v645_v43 = vmax.f32 %v495_v35, %v638_v36  ;;  %v1514_v46 = vrot.slane %v651_v24, 6  ;;  %v2945_v36 = vld [vmem:[%s4290_s3 + $0x180] sm:$0xff]  ;;  %v2601_v38 = vld [vmem:[%s4292_s5 + $0x58] sm:$0xff] }
 0x12f   :  { %3093 = vmatprep.subr.mxu1 %v3314_v1  ;;  %3098 = vmatprep.subr.mxu0 %v3314_v1  ;;  %v622_v50 = vadd.f32 %v3847_v33, %v3908_v53  ;;  %v496_v53 = vmax.f32 %v479_v49, 0.0  ;;  %v2918_v59 = vld [vmem:[%s4290_s3 + $0xf0] sm:$0xff]  ;;  %v2591_v49 = vld [vmem:[%s4292_s5 + $0x8] sm:$0xff] }
 0x130   :  { %3089 = vmatmul.mubr.msk.f32.vlgmr.msra.gmra.mxu0 %vm666_vm3, %v650_v54  ;;  %3094 = vmatpush3.msra.mxu1 %v2888_v57  ;;  %v3931_v2 = vpop.f32.mrf.mxu0  ;;  %v3933_v3 = vpop.f32.mrf.mxu1  ;;  %v652_v48 = vmax.f32 %v352_v45, %v645_v43  ;;  %v2912_v54 = vld [vmem:[%s4290_s3 + $0xd0] sm:$0xff]  ;;  %v2597_v43 = vld [vmem:[%s4292_s5 + $0x38] sm:$0xff]  ;;  %v2595_v45 = vld [vmem:[%s4292_s5 + $0x28] sm:$0xff] }
 0x131   :  { %3099 = vmatpush3.msra.mxu0 %v2892_v58  ;;  %3095 = vmatprep.mubr.msk.f32.mxu1 %vm3315_vm2, %v3314_v1  ;;  %v639_v56 = vmax.f32 %v622_v50, 0.0  ;;  %v2919_v58 = vld [vmem:[%s4290_s3 + $0xf8] sm:$0xff]  ;;  %v2590_v50 = vld [vmem:[%s4292_s5] sm:$0xff] }
 0x132   :  { %3100 = vmatprep.subr.mxu0 %v3314_v1  ;;  %3105 = vmatprep.subr.mxu1 %v3314_v1  ;;  %v485_v6 = vpop.f32.mrf.mxu0  ;;  %v628_v7 = vpop.f32.mrf.mxu1  ;;  %v1668_v57 = vrot.slane %v652_v48, 2  ;;  %v1745_v60 = vrot.slane %v652_v48, 4  ;;  %v1822_v4 = vrot.slane %v652_v48, 6 }
 0x133   :  { %3096 = vmatmul.mubr.msk.f32.vlgmr.msra.gmra.mxu1 %vm666_vm3, %v1052_v26  ;;  %3101 = vmatpush3.msra.mxu0 %v2891_v0  ;;  %v646_v63 = vmax.f32 %v496_v53, %v639_v56  ;;  %v2921_v0 = vld [vmem:[%s4290_s3 + $0x100] sm:$0xff]  ;;  %v627_v6 = vadd.f32 %v3847_v33, %v3933_v3  ;;  %v2924_v7 = vld [vmem:[%s4290_s3 + $0x110] sm:$0xff]  ;;  %v2694_v53 = vld [vmem:[%s4294_s7 + $0x38] sm:$0xff] }
 0x134   :  { %3106 = vmatpush3.msra.mxu1 %v2895_v5  ;;  %3102 = vmatprep.mubr.msk.f32.mxu0 %vm3315_vm2, %v3314_v1  ;;  %v3951_v13 = vpop.f32.mrf.mxu0  ;;  %v3953_v14 = vpop.f32.mrf.mxu1  ;;  %v484_v5 = vadd.f32 %v3847_v33, %v3931_v2  ;;  %v2927_v2 = vld [vmem:[%s4290_s3 + $0x120] sm:$0xff]  ;;  %v2693_v56 = vld [vmem:[%s4294_s7 + $0x30] sm:$0xff] }
 0x135   :  { %3107 = vmatprep.subr.mxu1 %v3314_v1  ;;  %3112 = vmatprep.subr.mxu0 %v3314_v1  ;;  %v653_v26 = vmax.f32 %v3851_v42, %v646_v63  ;;  %v2928_v42 = vld [vmem:[%s4290_s3 + $0x128] sm:$0xff]  ;;  %v640_v8 = vmax.f32 %v627_v6, 0.0 }
 0x136   :  { %3103 = vmatmul.mubr.msk.f32.vlgmr.msra.gmra.mxu0 %vm666_vm3, %v1129_v11  ;;  %3108 = vmatpush3.msra.mxu1 %v2894_v10  ;;  %v490_v17 = vpop.f32.mrf.mxu0  ;;  %v633_v18 = vpop.f32.mrf.mxu1  ;;  %v497_v3 = vmax.f32 %v484_v5, 0.0  ;;  %v2931_v10 = vld [vmem:[%s4290_s3 + $0x138] sm:$0xff]  ;;  %v2930_v11 = vld [vmem:[%s4290_s3 + $0x130] sm:$0xff] }
 0x137   :  { %3113 = vmatpush3.msra.mxu0 %v2898_v12  ;;  %3109 = vmatprep.mubr.msk.f32.mxu1 %vm3315_vm2, %v3314_v1  ;;  %v1976_v9 = vrot.slane %v653_v26, 2  ;;  %v2053_v12 = vrot.slane %v653_v26, 4  ;;  %v2933_v17 = vld [vmem:[%s4290_s3 + $0x140] sm:$0xff]  ;;  %v2130_v18 = vrot.slane %v653_v26, 6 }
 0x138   :  { %3114 = vmatprep.subr.mxu0 %v3314_v1  ;;  %3119 = vmatprep.subr.mxu1 %v3314_v1 }
 0x139   :  { %3110 = vmatmul.mubr.msk.f32.vlgmr.msra.gmra.mxu1 %vm666_vm3, %v1206_v20  ;;  %3115 = vmatpush3.msra.mxu0 %v2897_v16  ;;  %v647_v16 = vmax.f32 %v497_v3, %v640_v8  ;;  %v489_v20 = vadd.f32 %v3847_v33, %v3951_v13 }
 0x13a   :  { %3120 = vmatpush3.msra.mxu1 %v2901_v23  ;;  %3116 = vmatprep.mubr.msk.f32.mxu0 %vm3315_vm2, %v3314_v1  ;;  %v632_v23 = vadd.f32 %v3847_v33, %v3953_v14  ;;  %v2940_v33 = vld [vmem:[%s4290_s3 + $0x168] sm:$0xff]  ;;  %v2939_v14 = vld [vmem:[%s4290_s3 + $0x160] sm:$0xff] }
 0x13b   :  { %3121 = vmatprep.subr.mxu1 %v3314_v1  ;;  %3126 = vmatprep.subr.mxu0 %v3314_v1 }
 0x13c   :  { %3117 = vmatmul.mubr.msk.f32.vlgmr.msra.gmra.mxu0 %vm666_vm3, %v651_v24  ;;  %3122 = vmatpush3.msra.mxu1 %v2900_v31  ;;  %v654_v24 = vmax.f32 %v3855_v51, %v647_v16  ;;  %v498_v51 = vmax.f32 %v489_v20, 0.0  ;;  %v641_v13 = vmax.f32 %v632_v23, 0.0  ;;  %v2943_v31 = vld [vmem:[%s4290_s3 + $0x178] sm:$0xff] }
 0x13d   :  { %3127 = vmatpush3.msra.mxu0 %v2904_v32  ;;  %3123 = vmatprep.mubr.msk.f32.mxu1 %vm3315_vm2, %v3314_v1  ;;  %v2942_v32 = vld [vmem:[%s4290_s3 + $0x170] sm:$0xff] }
 0x13e   :  { %3128 = vmatprep.subr.mxu0 %v3314_v1  ;;  %3133 = vmatprep.subr.mxu1 %v3314_v1  ;;  %v2284_v28 = vrot.slane %v654_v24, 2  ;;  %v648_v34 = vmax.f32 %v498_v51, %v641_v13  ;;  %v2361_v21 = vrot.slane %v654_v24, 4  ;;  %v2438_v35 = vrot.slane %v654_v24, 6 }
 0x13f   :  { %3124 = vmatmul.mubr.msk.f32.vlgmr.msra.gmra.mxu1 %vm666_vm3, %v1360_v29  ;;  %3129 = vmatpush3.msra.mxu0 %v2903_v22  ;;  %v2946_v22 = vld [vmem:[%s4290_s3 + $0x188] sm:$0xff] }
 0x140   :  { %3134 = vmatpush3.msra.mxu1 %v2907_v30  ;;  %3130 = vmatprep.mubr.msk.f32.mxu0 %vm3315_vm2, %v3314_v1  ;;  %v655_v29 = vmax.f32 %v3861_v62, %v648_v34  ;;  %v2604_v62 = vld [vmem:[%s4292_s5 + $0x70] sm:$0xff]  ;;  %v2603_v30 = vld [vmem:[%s4292_s5 + $0x68] sm:$0xff] }
 0x141   :  { %3135 = vmatprep.subr.mxu1 %v3314_v1  ;;  %3140 = vmatprep.subr.mxu0 %v3314_v1 }
 0x142   :  { %3131 = vmatmul.mubr.msk.f32.vlgmr.msra.gmra.mxu0 %vm666_vm3, %v1437_v40  ;;  %3136 = vmatpush3.msra.mxu1 %v2906_v39  ;;  %v2600_v39 = vld [vmem:[%s4292_s5 + $0x50] sm:$0xff]  ;;  %v2599_v40 = vld [vmem:[%s4292_s5 + $0x48] sm:$0xff] }
 0x143   :  { %3141 = vmatpush3.msra.mxu0 %v2910_v41  ;;  %3137 = vmatprep.mubr.msk.f32.mxu1 %vm3315_vm2, %v3314_v1  ;;  %v2598_v41 = vld [vmem:[%s4292_s5 + $0x40] sm:$0xff] }
 0x144   :  { %3142 = vmatprep.subr.mxu0 %v3314_v1  ;;  %3147 = vmatprep.subr.mxu1 %v3314_v1 }
 0x145   :  { %3138 = vmatmul.mubr.msk.f32.vlgmr.msra.gmra.mxu1 %vm666_vm3, %v1514_v46  ;;  %3143 = vmatpush3.msra.mxu0 %v2909_v44  ;;  %v2596_v44 = vld [vmem:[%s4292_s5 + $0x30] sm:$0xff]  ;;  %v2594_v46 = vld [vmem:[%s4292_s5 + $0x20] sm:$0xff] }
 0x146   :  { %3148 = vmatpush3.msra.mxu1 %v2913_v47  ;;  %3144 = vmatprep.mubr.msk.f32.mxu0 %vm3315_vm2, %v3314_v1  ;;  %v2593_v47 = vld [vmem:[%s4292_s5 + $0x18] sm:$0xff] }
 0x147   :  { %3149 = vmatprep.subr.mxu1 %v3314_v1  ;;  %3154 = vmatprep.subr.mxu0 %v3314_v1 }
 0x148   :  { %3145 = vmatmul.mubr.msk.f32.vlgmr.msra.gmra.mxu0 %vm666_vm3, %v652_v48  ;;  %3150 = vmatpush3.msra.mxu1 %v2912_v54  ;;  %v2592_v48 = vld [vmem:[%s4292_s5 + $0x10] sm:$0xff] }
 0x149   :  { %3155 = vmatpush3.msra.mxu0 %v2916_v55  ;;  %3151 = vmatprep.mubr.msk.f32.mxu1 %vm3315_vm2, %v3314_v1  ;;  %v2697_v54 = vld [vmem:[%s4294_s7 + $0x50] sm:$0xf]  ;;  %v2696_v55 = vld [vmem:[%s4294_s7 + $0x48] sm:$0xff] }
 0x14a   :  { %3156 = vmatprep.subr.mxu0 %v3314_v1  ;;  %3161 = vmatprep.subr.mxu1 %v3314_v1 }
 0x14b   :  { %3152 = vmatmul.mubr.msk.f32.vlgmr.msra.gmra.mxu1 %vm666_vm3, %v1668_v57  ;;  %3157 = vmatpush3.msra.mxu0 %v2915_v52  ;;  %v2695_v52 = vld [vmem:[%s4294_s7 + $0x40] sm:$0xff]  ;;  %v2692_v57 = vld [vmem:[%s4294_s7 + $0x28] sm:$0xff] }
 0x14c   :  { %3162 = vmatpush3.msra.mxu1 %v2919_v58  ;;  %3158 = vmatprep.mubr.msk.f32.mxu0 %vm3315_vm2, %v3314_v1  ;;  %v2691_v58 = vld [vmem:[%s4294_s7 + $0x20] sm:$0xff] }
 0x14d   :  { %3163 = vmatprep.subr.mxu1 %v3314_v1  ;;  %3168 = vmatprep.subr.mxu0 %v3314_v1 }
 0x14e   :  { %3159 = vmatmul.mubr.msk.f32.vlgmr.msra.gmra.mxu0 %vm666_vm3, %v1745_v60  ;;  %3164 = vmatpush3.msra.mxu1 %v2918_v59  ;;  %v2690_v59 = vld [vmem:[%s4294_s7 + $0x18] sm:$0xff]  ;;  %v2874_v60 = vld [vmem:[%s4291_s4] ss:$0 sm:$0xff] }
 0x14f   :  { %3169 = vmatpush3.msra.mxu0 %v2922_v61  ;;  %3165 = vmatprep.mubr.msk.f32.mxu1 %vm3315_vm2, %v3314_v1 }
 0x150   :  { %3170 = vmatprep.subr.mxu0 %v3314_v1  ;;  %3175 = vmatprep.subr.mxu1 %v3314_v1 }
 0x151   :  { %3166 = vmatmul.mubr.msk.f32.vlgmr.msra.gmra.mxu1 %vm666_vm3, %v1822_v4  ;;  %3171 = vmatpush3.msra.mxu0 %v2921_v0 }
 0x152   :  { %3176 = vmatpush3.msra.mxu1 %v2925_v25  ;;  %3172 = vmatprep.mubr.msk.f32.mxu0 %vm3315_vm2, %v3314_v1 }
 0x153   :  { %3177 = vmatprep.subr.mxu1 %v3314_v1  ;;  %3182 = vmatprep.subr.mxu0 %v3314_v1 }
 0x154   :  { %3173 = vmatmul.mubr.msk.f32.vlgmr.msra.gmra.mxu0 %vm666_vm3, %v653_v26  ;;  %3178 = vmatpush3.msra.mxu1 %v2924_v7 }
 0x155   :  { %3183 = vmatpush3.msra.mxu0 %v2928_v42  ;;  %3179 = vmatprep.mubr.msk.f32.mxu1 %vm3315_vm2, %v3314_v1 }
 0x156   :  { %3184 = vmatprep.subr.mxu0 %v3314_v1  ;;  %3189 = vmatprep.subr.mxu1 %v3314_v1 }
 0x157   :  { %3180 = vmatmul.mubr.msk.f32.vlgmr.msra.gmra.mxu1 %vm666_vm3, %v1976_v9  ;;  %3185 = vmatpush3.msra.mxu0 %v2927_v2 }
 0x158   :  { %3190 = vmatpush3.msra.mxu1 %v2931_v10  ;;  %3186 = vmatprep.mubr.msk.f32.mxu0 %vm3315_vm2, %v3314_v1 }
 0x159   :  { %3191 = vmatprep.subr.mxu1 %v3314_v1  ;;  %3196 = vmatprep.subr.mxu0 %v3314_v1 }
 0x15a   :  { %3187 = vmatmul.mubr.msk.f32.vlgmr.msra.gmra.mxu0 %vm666_vm3, %v2053_v12  ;;  %3192 = vmatpush3.msra.mxu1 %v2930_v11 }
 0x15b   :  { %3197 = vmatpush3.msra.mxu0 %v2934_v15  ;;  %3193 = vmatprep.mubr.msk.f32.mxu1 %vm3315_vm2, %v3314_v1 }
 0x15c   :  { %3198 = vmatprep.subr.mxu0 %v3314_v1  ;;  %3203 = vmatprep.subr.mxu1 %v3314_v1 }
 0x15d   :  { %3194 = vmatmul.mubr.msk.f32.vlgmr.msra.gmra.mxu1 %vm666_vm3, %v2130_v18  ;;  %3199 = vmatpush3.msra.mxu0 %v2933_v17 }
 0x15e   :  { %3204 = vmatpush3.msra.mxu1 %v2937_v19  ;;  %3200 = vmatprep.mubr.msk.f32.mxu0 %vm3315_vm2, %v3314_v1 }
 0x15f   :  { %3205 = vmatprep.subr.mxu1 %v3314_v1  ;;  %3210 = vmatprep.subr.mxu0 %v3314_v1 }
 0x160   :  { %3201 = vmatmul.mubr.msk.f32.vlgmr.msra.gmra.mxu0 %vm666_vm3, %v654_v24  ;;  %3206 = vmatpush3.msra.mxu1 %v2936_v27 }
 0x161   :  { %3211 = vmatpush3.msra.mxu0 %v2940_v33  ;;  %3207 = vmatprep.mubr.msk.f32.mxu1 %vm3315_vm2, %v3314_v1 }
 0x162   :  { %3212 = vmatprep.subr.mxu0 %v3314_v1  ;;  %3217 = vmatprep.subr.mxu1 %v3314_v1 }
 0x163   :  { %3208 = vmatmul.mubr.msk.f32.vlgmr.msra.gmra.mxu1 %vm666_vm3, %v2284_v28  ;;  %3213 = vmatpush3.msra.mxu0 %v2939_v14 }
 0x164   :  { %3218 = vmatpush3.msra.mxu1 %v2943_v31  ;;  %3214 = vmatprep.mubr.msk.f32.mxu0 %vm3315_vm2, %v3314_v1 }
 0x165   :  { %3219 = vmatprep.subr.mxu1 %v3314_v1  ;;  %3224 = vmatprep.subr.mxu0 %v3314_v1 }
 0x166   :  { %3215 = vmatmul.mubr.msk.f32.vlgmr.msra.gmra.mxu0 %vm666_vm3, %v2361_v21  ;;  %3220 = vmatpush3.msra.mxu1 %v2942_v32 }
 0x167   :  { %3225 = vmatpush3.msra.mxu0 %v2946_v22  ;;  %3221 = vmatprep.mubr.msk.f32.mxu1 %vm3315_vm2, %v3314_v1 }
 0x168   :  { %3226 = vmatprep.subr.mxu0 %v3314_v1  ;;  %3222 = vmatmul.mubr.msk.f32.vlgmr.msra.gmra.mxu1 %vm666_vm3, %v2438_v35 }
 0x169   :  { %3227 = vmatpush3.msra.mxu0 %v2945_v36  ;;  %3228 = vmatprep.mubr.msk.f32.mxu0 %vm3315_vm2, %v3314_v1 }
 0x16a   :  { %3229 = vmatmul.mubr.msk.f32.vlgmr.msra.gmra.mxu0 %vm666_vm3, %v655_v29  ;;  %3231 = vmatprep.subr.mxu1 %v3314_v1 }
 0x16b   :  { %3261 = vmatprep.mubr.msk.f32.mxu1 %vm3315_vm2, %v3314_v1  ;;  %3264 = vmatprep.subr.mxu0 %v3314_v1 }
 0x16c   :  { %3286 = vmatprep.mubr.msk.f32.mxu0 %vm3315_vm2, %v3314_v1  ;;  %3232 = vmatpush3.msra.mxu1 %v2604_v62 }
 0x16d   :  { %3233 = vmatprep.subr.mxu1 %v3314_v1  ;;  %3265 = vmatpush3.msk.msra.mxu0 %vm2709_vm4, %v2697_v54 }
 0x16e   :  { %3234 = vmatpush3.msra.mxu1 %v2603_v30  ;;  %3266 = vmatprep.subr.mxu0 %v3314_v1 }
 0x16f   :  { %3235 = vmatprep.subr.mxu1 %v3314_v1  ;;  %3267 = vmatpush3.msra.mxu0 %v2696_v55 }
 0x170   :  { %3236 = vmatpush3.msra.mxu1 %v2602_v37  ;;  %3268 = vmatprep.subr.mxu0 %v3314_v1 }
 0x171   :  { %3237 = vmatprep.subr.mxu1 %v3314_v1  ;;  %3269 = vmatpush3.msra.mxu0 %v2695_v52 }
 0x172   :  { %3238 = vmatpush3.msra.mxu1 %v2601_v38  ;;  %3270 = vmatprep.subr.mxu0 %v3314_v1 }
 0x173   :  { %3239 = vmatprep.subr.mxu1 %v3314_v1  ;;  %3271 = vmatpush3.msra.mxu0 %v2694_v53 }
 0x174   :  { %3240 = vmatpush3.msra.mxu1 %v2600_v39  ;;  %3272 = vmatprep.subr.mxu0 %v3314_v1 }
 0x175   :  { %3241 = vmatprep.subr.mxu1 %v3314_v1  ;;  %3273 = vmatpush3.msra.mxu0 %v2693_v56 }
 0x176   :  { %3242 = vmatpush3.msra.mxu1 %v2599_v40  ;;  %3274 = vmatprep.subr.mxu0 %v3314_v1 }
 0x177   :  { %3243 = vmatprep.subr.mxu1 %v3314_v1  ;;  %3275 = vmatpush3.msra.mxu0 %v2692_v57 }
 0x178   :  { %3244 = vmatpush3.msra.mxu1 %v2598_v41  ;;  %3276 = vmatprep.subr.mxu0 %v3314_v1 }
 0x179   :  { %3245 = vmatprep.subr.mxu1 %v3314_v1  ;;  %3277 = vmatpush3.msra.mxu0 %v2691_v58 }
 0x17a   :  { %3246 = vmatpush3.msra.mxu1 %v2597_v43  ;;  %3278 = vmatprep.subr.mxu0 %v3314_v1 }
 0x17b   :  { %3247 = vmatprep.subr.mxu1 %v3314_v1  ;;  %3279 = vmatpush3.msra.mxu0 %v2690_v59 }
 0x17c   :  { %3248 = vmatpush3.msra.mxu1 %v2596_v44  ;;  %3280 = vmatprep.subr.mxu0 %v3314_v1 }
 0x17d   :  { %3249 = vmatprep.subr.mxu1 %v3314_v1 }
 0x17e   :  { %3250 = vmatpush3.msra.mxu1 %v2595_v45 }
 0x17f   :  { %3251 = vmatprep.subr.mxu1 %v3314_v1 }
 0x180   :  { %3252 = vmatpush3.msra.mxu1 %v2594_v46 }
 0x181   :  { %3253 = vmatprep.subr.mxu1 %v3314_v1 }
 0x182   :  { %3254 = vmatpush3.msra.mxu1 %v2593_v47 }
 0x183   :  { %3255 = vmatprep.subr.mxu1 %v3314_v1 }
 0x184   :  { %3256 = vmatpush3.msra.mxu1 %v2592_v48 }
 0x185   :  { %3257 = vmatprep.subr.mxu1 %v3314_v1 }
 0x186   :  { %3258 = vmatpush3.msra.mxu1 %v2591_v49 }
 0x187   :  { %3259 = vmatprep.subr.mxu1 %v3314_v1 }
 0x188   :  { %3260 = vmatpush3.msra.mxu1 %v2590_v50 }
 0x1e5   :  { %v736_v61 = vpop.f32.mrf.mxu0 }
 0x1e6   :  { %v740_v63 = vadd.f32 %v2874_v60, %v736_v61 }
 0x1e7   :  { %v3062_v0 = vpop.f32.mrf.mxu0  ;;  %v813_v4 = vpop.f32.mrf.mxu1 }
 0x1e8   :  { %v817_v25 = vadd.f32 %v813_v4, %v740_v63 }
 0x1e9   :  { %v3069_v26 = vpop.f32.mrf.mxu1 }
 0x1ea   :  { %v890_v5 = vpop.f32.mrf.mxu0 }
 0x1eb   :  { %v894_v6 = vadd.f32 %v890_v5, %v817_v25 }
 0x1ec   :  { %v3076_v7 = vpop.f32.mrf.mxu0 }
 0x1ed   :  { %v967_v42 = vpop.f32.mrf.mxu1 }
 0x1ee   :  { %v971_v2 = vadd.f32 %v967_v42, %v894_v6 }
 0x1ef   :  { %v3083_v3 = vpop.f32.mrf.mxu1 }
 0x1f0   :  { %v1044_v8 = vpop.f32.mrf.mxu0 }
 0x1f1   :  { %v1048_v9 = vadd.f32 %v1044_v8, %v971_v2 }
 0x1f2   :  { %v3090_v10 = vpop.f32.mrf.mxu0 }
 0x1f3   :  { %v1121_v11 = vpop.f32.mrf.mxu1  ;;  %v2688_v10 = vld [vmem:[%s4294_s7 + $0x8] sm:$0xff] }
 0x1f4   :  { %v1125_v12 = vadd.f32 %v1121_v11, %v1048_v9  ;;  %v2689_v9 = vld [vmem:[%s4294_s7 + $0x10] sm:$0xff]  ;;  %v2687_v11 = vld [vmem:[%s4294_s7] sm:$0xff]  ;;  %s3292_s7 = scalar_lea.vmem %s2792_s16, 32 }
 0x1f5   :  { %v3097_v15 = vpop.f32.mrf.mxu1  ;;  %3281 = vmatpush3.msra.mxu0 %v2689_v9  ;;  %p3293_p0 = scmp.ne.s32.totalorder %s2792_s16, %s3292_s7  ;;  %p3298_p2 = scmp.lt.s32.totalorder %s3292_s7, %s3292_s7 }
 0x1f6   :  { %v1198_v16 = vpop.f32.mrf.mxu0  ;;  %3282 = vmatprep.subr.mxu0 %v3314_v1 }
 0x1f7   :  { %v1202_v17 = vadd.f32 %v1198_v16, %v1125_v12  ;;  %3283 = vmatpush3.msra.mxu0 %v2688_v10  ;;  %v2948_v12 = vld [vmem:[%s4293_s6] ss:$0 sm:$0xff]  ;;  %p3299_p3 = por %p3298_p2, %p3297_p1 }
 0x1f8   :  { %v3104_v18 = vpop.f32.mrf.mxu0  ;;  %3284 = vmatprep.subr.mxu0 %v3314_v1 }
 0x1f9   :  { %v1275_v19 = vpop.f32.mrf.mxu1  ;;  %3285 = vmatpush3.msra.mxu0 %v2687_v11  ;;  %p3300_p4 = pnand %p3299_p3, %p3293_p0 }
 0x1fa   :  { %v1279_v20 = vadd.f32 %v1275_v19, %v1202_v17  ;;  %v2950_v19 = vld [vmem:[%s4295_s8] ss:$0 sm:$0xff] }
 0x1fb   :  { %v3111_v23 = vpop.f32.mrf.mxu1 }
 0x1fc   :  { %v1352_v24 = vpop.f32.mrf.mxu0 }
 0x1fd   :  { %v1356_v27 = vadd.f32 %v1352_v24, %v1279_v20 }
 0x1fe   :  { %v3118_v33 = vpop.f32.mrf.mxu0 }
 0x1ff   :  { %v1429_v51 = vpop.f32.mrf.mxu1 }
 0x200   :  { %v1433_v13 = vadd.f32 %v1429_v51, %v1356_v27 }
 0x201   :  { %v3125_v14 = vpop.f32.mrf.mxu1 }
 0x202   :  { %v1506_v28 = vpop.f32.mrf.mxu0 }
 0x203   :  { %v1510_v31 = vadd.f32 %v1506_v28, %v1433_v13 }
 0x204   :  { %v3132_v32 = vpop.f32.mrf.mxu0 }
 0x205   :  { %v1583_v34 = vpop.f32.mrf.mxu1 }
 0x206   :  { %v1587_v21 = vadd.f32 %v1583_v34, %v1510_v31 }
 0x207   :  { %v3139_v22 = vpop.f32.mrf.mxu1 }
 0x208   :  { %v1660_v35 = vpop.f32.mrf.mxu0 }
 0x209   :  { %v1664_v36 = vadd.f32 %v1660_v35, %v1587_v21 }
 0x20a   :  { %v3146_v29 = vpop.f32.mrf.mxu0 }
 0x20b   :  { %v1737_v62 = vpop.f32.mrf.mxu1 }
 0x20c   :  { %v1741_v30 = vadd.f32 %v1737_v62, %v1664_v36 }
 0x20d   :  { %v3153_v37 = vpop.f32.mrf.mxu1 }
 0x20e   :  { %v1814_v38 = vpop.f32.mrf.mxu0 }
 0x20f   :  { %v1818_v39 = vadd.f32 %v1814_v38, %v1741_v30 }
 0x210   :  { %v3160_v40 = vpop.f32.mrf.mxu0 }
 0x211   :  { %v1891_v41 = vpop.f32.mrf.mxu1 }
 0x212   :  { %v1895_v43 = vadd.f32 %v1891_v41, %v1818_v39 }
 0x213   :  { %v3167_v44 = vpop.f32.mrf.mxu1 }
 0x214   :  { %v1968_v45 = vpop.f32.mrf.mxu0 }
 0x215   :  { %v1972_v46 = vadd.f32 %v1968_v45, %v1895_v43 }
 0x216   :  { %v3174_v47 = vpop.f32.mrf.mxu0 }
 0x217   :  { %v2045_v48 = vpop.f32.mrf.mxu1 }
 0x218   :  { %v2049_v49 = vadd.f32 %v2045_v48, %v1972_v46 }
 0x219   :  { %v3181_v50 = vpop.f32.mrf.mxu1 }
 0x21a   :  { %v2122_v54 = vpop.f32.mrf.mxu0 }
 0x21b   :  { %v2126_v55 = vadd.f32 %v2122_v54, %v2049_v49 }
 0x21c   :  { %v3188_v52 = vpop.f32.mrf.mxu0 }
 0x21d   :  { %v2199_v53 = vpop.f32.mrf.mxu1 }
 0x21e   :  { %v2203_v56 = vadd.f32 %v2199_v53, %v2126_v55 }
 0x21f   :  { %v3195_v57 = vpop.f32.mrf.mxu1 }
 0x220   :  { %v2276_v58 = vpop.f32.mrf.mxu0 }
 0x221   :  { %v2280_v59 = vadd.f32 %v2276_v58, %v2203_v56 }
 0x222   :  { %v3202_v60 = vpop.f32.mrf.mxu0 }
 0x223   :  { %v2353_v61 = vpop.f32.mrf.mxu1 }
 0x224   :  { %v2357_v63 = vadd.f32 %v2353_v61, %v2280_v59 }
 0x225   :  { %v3209_v0 = vpop.f32.mrf.mxu1 }
 0x226   :  { %v2430_v4 = vpop.f32.mrf.mxu0 }
 0x227   :  { %v2434_v25 = vadd.f32 %v2430_v4, %v2357_v63 }
 0x228   :  { %v3216_v26 = vpop.f32.mrf.mxu0  ;;  %v2507_v5 = vpop.f32.mrf.mxu1 }
 0x229   :  { %v2511_v6 = vadd.f32 %v2507_v5, %v2434_v25 }
 0x22a   :  { %v3223_v7 = vpop.f32.mrf.mxu1  ;;  %v2584_v42 = vpop.f32.mrf.mxu0 }
 0x22b   :  { %v2588_v2 = vadd.f32 %v2584_v42, %v2511_v6 }
 0x22c   :  { %v3230_v3 = vpop.f32.mrf.mxu0 }
 0x22d   :  { %v2589_v8 = vmax.f32 %v2588_v2, 0.0 }
 0x22f   :  { %3262 = vmatmul.mubr.msk.f32.vlgmr.msra.gmra.mxu1 %vm2612_vm5, %v2589_v8 }
 0x2ef   :  { %v2682_v15 = vpop.f32.mrf.mxu1 }
 0x2f0   :  { %v2683_v16 = vadd.f32 %v2948_v12, %v2682_v15 }
 0x2f1   :  { %v3263_v17 = vpop.f32.mrf.mxu1 }
 0x2f2   :  { %v2686_v18 = vmax.f32 %v2683_v16, 0.0 }
 0x2f4   :  { %3287 = vmatmul.mubr.msk.f32.vlgmr.msra.gmra.mxu0 %vm2705_vm6, %v2686_v18 }
 0x3b4   :  { %v2779_v1 = vpop.f32.mrf.mxu0 }
 0x3b5   :  { %v2780_v20 = vadd.f32 %v2950_v19, %v2779_v1 }
 0x3b6   :  { %v3288_v23 = vpop.f32.mrf.mxu0 }
 0x3b7   :  { %2784 = vst.msk [vmem:[#allocation2] sm:$0x3] %vm2783_vm7, %v2780_v20 }
 0x3b8   :  { %3303 = shalt.err (!%p3300_p4)
}
 0x3b9   :  { %2794 = dma.vmem_to_hbm [thread:$0]  %s2792_s16, 32, %s4296_s9, [#allocation3]  }
 0x3ba   :  { %3312 = dma.done.wait [#allocation3], 32  }
 0x3bb   :  { %3313 = vsyncadd [#allocation3], 4294967264 }
 0x3bc   :  { %2798 = vsyncpa [#allocation3], 1 }

</bundles_post_ra>
